<compile_context>
chip_gen: v7x
topology: tpu7x:2x2x1
jax: 0.10.0
libtpu: 0.0.40
codegen_flags: <defaults>
</compile_context>

<pallas_src>
import functools

import jax
import jax.numpy as jnp
from jax.experimental import pallas as pl
from jax.experimental.pallas import tpu as pltpu

# ----------------------------- model config ---------------------------------
VOCAB = 100
MAX_POS = 512
B = 2          # batch
S = 128        # sequence length (<= max_num_tokens=512 -> simple path)
H = 128        # hidden size
NH = 4         # num attention heads
DH = H // NH   # head dim
I = 256        # FFN intermediate size
LAYERS = 2
LN_EPS = 1e-12
SCALE = 1.0 / (DH ** 0.5)


# ----------------------------- Pallas kernel --------------------------------
def _ln(x, g, b):
    """LayerNorm over last dim, f32 math, one-pass variance."""
    mu = jnp.mean(x, axis=-1, keepdims=True)
    m2 = jnp.mean(x * x, axis=-1, keepdims=True)
    var = m2 - mu * mu
    return (x - mu) * jax.lax.rsqrt(var + LN_EPS) * g + b


def _encoder_stack_kernel(x_ref, bias_ref, maskv_ref,
                          wqkv_ref, bqkv_ref, wo_ref, bo_ref,
                          ln1_g_ref, ln1_b_ref,
                          wi_ref, bi_ref, wp_ref, bp_ref,
                          ln2_g_ref, ln2_b_ref,
                          out_ref, probs_ref):
    """One (batch, layer) grid step of the fused encoder stack.

    The hidden state is carried across the layer axis in out_ref (its block
    index is constant over `layer`, so it stays resident in VMEM and is only
    written back to HBM once per batch element).
    """
    layer = pl.program_id(1)

    @pl.when(layer == 0)
    def _():
        out_ref[0] = x_ref[0]            # seed the carry with the embeddings

    x = out_ref[0]                       # (S, H) f32, previous layer's output
    x_bf = x.astype(jnp.bfloat16)

    # ---- fused QKV projection: one (S,H) x (H,3H) MXU pass ----------------
    # (1/sqrt(Dh) is folded into the Q columns of wqkv/bqkv at init time)
    qkv = jnp.dot(x_bf, wqkv_ref[0],
                  preferred_element_type=jnp.float32) + bqkv_ref[0]
    qkv_bf = qkv.astype(jnp.bfloat16)    # single early cast; f32 qkv dies here
    q = qkv_bf[:, 0:H]                   # (S, H)  lane-aligned slices
    k = qkv_bf[:, H:2 * H]
    v = qkv_bf[:, 2 * H:3 * H]

    # ---- block-diagonal head packing (lane-dense, no transposes) ----------
    # mask_v[r, c] = 1 iff row-block r//S == head of column c (c//DH)
    mask_v = maskv_ref[...]                              # (NH*S, H) bf16
    kd = jnp.concatenate([k] * NH, axis=0) * mask_v      # (NH*S, H)
    vd = jnp.concatenate([v] * NH, axis=0) * mask_v      # (NH*S, H)

    # scores for ALL heads in one MXU matmul: (S,H) x (NH*S,H)^T -> (S, NH*S)
    s_all = jax.lax.dot_general(q, kd, (((1,), (1,)), ((), ())),
                                preferred_element_type=jnp.float32)
    s_all = s_all + bias_ref[0]          # additive mask, pre-tiled to (1, NH*S)

    # ---- per-head softmax on 128-lane-aligned column blocks ---------------
    probs_cols = []
    for h in range(NH):
        sh = s_all[:, h * S:(h + 1) * S]                 # whole-vreg slice
        m = jnp.max(sh, axis=-1, keepdims=True)
        p = jnp.exp(sh - m)
        dn = jnp.sum(p, axis=-1, keepdims=True)
        probs_cols.append(p / dn)        # exact divide (probs are returned)
    probs_all = jnp.concatenate(probs_cols, axis=-1)     # (S, NH*S), aligned

    # context for all heads in one matmul; output is already lane-dense (S,H)
    ctx = jnp.dot(probs_all.astype(jnp.bfloat16), vd,
                  preferred_element_type=jnp.float32)

    # ---- output projection + residual + LayerNorm 1 ------------------------
    attn_out = jnp.dot(ctx.astype(jnp.bfloat16), wo_ref[0],
                       preferred_element_type=jnp.float32) + bo_ref[0]
    h1 = _ln(attn_out + x, ln1_g_ref[0], ln1_b_ref[0])

    # ---- FFN (GELU) + residual + LayerNorm 2 --------------------------------
    # NOTE: tanh-approximate GELU; HF/PyTorch BERT default is exact erf GELU.
    # TODO(synk): switch to exact erf GELU if Mosaic erf lowering is available.
    ff = jnp.dot(h1.astype(jnp.bfloat16), wi_ref[0],
                 preferred_element_type=jnp.float32) + bi_ref[0]
    ff = jax.nn.gelu(ff, approximate=True)
    ff2 = jnp.dot(ff.astype(jnp.bfloat16), wp_ref[0],
                  preferred_element_type=jnp.float32) + bp_ref[0]
    out_ref[0] = _ln(ff2 + h1, ln2_g_ref[0], ln2_b_ref[0])

    # attention probs are only materialized/stored for the final layer
    @pl.when(layer == pl.num_programs(1) - 1)
    def _():
        for h in range(NH):
            probs_ref[0, h] = probs_cols[h]


def encoder_stack(hidden, bias_t, mask_v, sp):
    """hidden: [B,S,H] f32; bias_t: [B,1,NH*S] f32; mask_v: [NH*S,H] bf16;
    sp: dict of weights stacked along a leading layer axis."""
    b, s, hdim = hidden.shape
    three_h = 3 * hdim
    idx_x = lambda bi, li: (bi, 0, 0)            # per-batch, constant over layer
    idx_w = lambda bi, li: (li, 0, 0)            # per-layer weights
    idx_m = lambda bi, li: (0, 0)                # fetched once, resident

    in_specs = [
        pl.BlockSpec((1, s, hdim), idx_x),           # embeddings (layer-0 seed)
        pl.BlockSpec((1, 1, NH * s), idx_x),         # attention bias, head-tiled
        pl.BlockSpec((NH * s, hdim), idx_m),         # block-diag head mask (bf16)
        pl.BlockSpec((1, hdim, three_h), idx_w),     # wqkv (bf16)
        pl.BlockSpec((1, 1, three_h), idx_w),        # bqkv
        pl.BlockSpec((1, hdim, hdim), idx_w),        # wo (bf16)
        pl.BlockSpec((1, 1, hdim), idx_w),           # bo
        pl.BlockSpec((1, 1, hdim), idx_w),           # ln1_g
        pl.BlockSpec((1, 1, hdim), idx_w),           # ln1_b
        pl.BlockSpec((1, hdim, I), idx_w),           # wi (bf16)
        pl.BlockSpec((1, 1, I), idx_w),              # bi
        pl.BlockSpec((1, I, hdim), idx_w),           # wp (bf16)
        pl.BlockSpec((1, 1, hdim), idx_w),           # bp
        pl.BlockSpec((1, 1, hdim), idx_w),           # ln2_g
        pl.BlockSpec((1, 1, hdim), idx_w),           # ln2_b
    ]
    out_specs = (
        pl.BlockSpec((1, s, hdim), idx_x),                      # hidden (carry)
        pl.BlockSpec((1, NH, s, s), lambda bi, li: (bi, 0, 0, 0)),  # last probs
    )
    out_shape = (
        jax.ShapeDtypeStruct((b, s, hdim), jnp.float32),
        jax.ShapeDtypeStruct((b, NH, s, s), jnp.float32),
    )

    return pl.pallas_call(
        _encoder_stack_kernel,
        grid=(b, LAYERS),
        in_specs=in_specs,
        out_specs=out_specs,
        out_shape=out_shape,
        compiler_params=pltpu.CompilerParams(
            # batch shards across TensorCores (v7x); layers run sequentially
            dimension_semantics=("parallel", "arbitrary")),
    )(hidden, bias_t, mask_v,
      sp["wqkv"], sp["bqkv"], sp["wo"], sp["bo"],
      sp["ln1_g"], sp["ln1_b"],
      sp["wi"], sp["bi"], sp["wp"], sp["bp"],
      sp["ln2_g"], sp["ln2_b"])


# --------------------------- parameter construction -------------------------
def init_params(key):
    def nrm(k, shape, scale=0.02):
        return (scale * jax.random.normal(k, shape)).astype(jnp.float32)

    keys = jax.random.split(key, 4 + LAYERS)
    params = {
        "word_emb": nrm(keys[0], (VOCAB, H)),
        "pos_emb": nrm(keys[1], (MAX_POS, H)),
        "type_emb": nrm(keys[2], (2, H)),
        "emb_ln_g": jnp.ones((H,), jnp.float32),
        "emb_ln_b": jnp.zeros((H,), jnp.float32),
    }

    wqkv, bqkv, wo, bo = [], [], [], []
    ln1g, ln1b, wi, bi, wp, bp, ln2g, ln2b = [], [], [], [], [], [], [], []
    for li in range(LAYERS):
        lk = jax.random.split(keys[4 + li], 6)
        wq, wk, wv = nrm(lk[0], (H, H)), nrm(lk[1], (H, H)), nrm(lk[2], (H, H))
        # fused QKV weight, 1/sqrt(Dh) folded into the Q columns, stored bf16
        wqkv.append(jnp.concatenate([wq * SCALE, wk, wv], axis=1).astype(jnp.bfloat16))
        bq = jnp.zeros((H,), jnp.float32) * SCALE
        bqkv.append(jnp.concatenate([bq, jnp.zeros((2 * H,), jnp.float32)])[None, :])
        wo.append(nrm(lk[3], (H, H)).astype(jnp.bfloat16))
        bo.append(jnp.zeros((1, H), jnp.float32))
        ln1g.append(jnp.ones((1, H), jnp.float32))
        ln1b.append(jnp.zeros((1, H), jnp.float32))
        wi.append(nrm(lk[4], (H, I)).astype(jnp.bfloat16))
        bi.append(jnp.zeros((1, I), jnp.float32))
        wp.append(nrm(lk[5], (I, H)).astype(jnp.bfloat16))
        bp.append(jnp.zeros((1, H), jnp.float32))
        ln2g.append(jnp.ones((1, H), jnp.float32))
        ln2b.append(jnp.zeros((1, H), jnp.float32))

    params["stack"] = {
        "wqkv": jnp.stack(wqkv), "bqkv": jnp.stack(bqkv),
        "wo": jnp.stack(wo), "bo": jnp.stack(bo),
        "ln1_g": jnp.stack(ln1g), "ln1_b": jnp.stack(ln1b),
        "wi": jnp.stack(wi), "bi": jnp.stack(bi),
        "wp": jnp.stack(wp), "bp": jnp.stack(bp),
        "ln2_g": jnp.stack(ln2g), "ln2_b": jnp.stack(ln2b),
    }
    return params


# ------------------------------- forward pass --------------------------------
def transformer_forward(params, token_seqs, token_masks, token_types):
    """Equivalent to forward_o / forward_sd for seq_len <= 512:
    returns (batch_token_embs [B,S,H], batch_token_atts [B,nH,S,S])."""
    b, s = token_seqs.shape

    # embeddings (gather) + embedding LayerNorm: tiny elementwise work,
    # left to XLA (a dedicated pallas_call here is pure dispatch overhead).
    hidden = (params["word_emb"][token_seqs]
              + params["pos_emb"][:s][None, :, :]
              + params["type_emb"][token_types])
    mu = jnp.mean(hidden, axis=-1, keepdims=True)
    var = jnp.mean(jnp.square(hidden - mu), axis=-1, keepdims=True)
    hidden = ((hidden - mu) * jax.lax.rsqrt(var + LN_EPS)
              * params["emb_ln_g"] + params["emb_ln_b"])

    # additive attention-mask bias (BERT extended mask), tiled over heads
    bias = ((1.0 - token_masks.astype(jnp.float32)) * -10000.0)[:, None, :]
    bias_t = jnp.tile(bias, (1, 1, NH))                       # [B, 1, NH*S]

    # block-diagonal head-packing mask: mask_v[r, c] = (r // S == c // DH)
    row_head = jnp.arange(NH * s) // s
    col_head = jnp.arange(H) // DH
    mask_v = (row_head[:, None] == col_head[None, :]).astype(jnp.bfloat16)

    return encoder_stack(hidden, bias_t, mask_v, params["stack"])
# TODO(synk): the long-document segment/merge paths (>512 tokens) in
# forward_o/forward_sd involve dynamic Python-list chunking of variable length
# and are not expressed as a Pallas kernel; the short-sequence path (taken for
# S<=512) is fully implemented above.


# ---------------------------------- main -------------------------------------
if __name__ == "__main__":
    key = jax.random.PRNGKey(0)
    pkey, ikey = jax.random.split(key)
    params = init_params(pkey)

    token_seqs = jax.random.randint(ikey, (B, S), 0, VOCAB, dtype=jnp.int32)
    token_masks = jnp.ones((B, S), jnp.float32).at[1, S // 2:].set(0.0)  # pad half of doc 1
    token_types = jnp.zeros((B, S), jnp.int32)

    fwd = jax.jit(functools.partial(transformer_forward, params))
    embs, atts = fwd(token_seqs, token_masks, token_types)
    jax.block_until_ready((embs, atts))

    assert embs.shape == (B, S, H), embs.shape
    assert atts.shape == (B, NH, S, S), atts.shape
    print("KERNEL_OK")
</pallas_src>

<mosaic_0001>
module attributes {stable_mosaic.version = 11 : i64} {
  func.func @_encoder_stack_kernel(%arg0: i32, %arg1: i32, %arg2: memref<1x128x128xf32, #tpu.memory_space<vmem>>, %arg3: memref<1x1x512xf32, #tpu.memory_space<vmem>>, %arg4: memref<512x128xbf16, #tpu.memory_space<vmem>>, %arg5: memref<1x128x384xbf16, #tpu.memory_space<vmem>>, %arg6: memref<1x1x384xf32, #tpu.memory_space<vmem>>, %arg7: memref<1x128x128xbf16, #tpu.memory_space<vmem>>, %arg8: memref<1x1x128xf32, #tpu.memory_space<vmem>>, %arg9: memref<1x1x128xf32, #tpu.memory_space<vmem>>, %arg10: memref<1x1x128xf32, #tpu.memory_space<vmem>>, %arg11: memref<1x128x256xbf16, #tpu.memory_space<vmem>>, %arg12: memref<1x1x256xf32, #tpu.memory_space<vmem>>, %arg13: memref<1x256x128xbf16, #tpu.memory_space<vmem>>, %arg14: memref<1x1x128xf32, #tpu.memory_space<vmem>>, %arg15: memref<1x1x128xf32, #tpu.memory_space<vmem>>, %arg16: memref<1x1x128xf32, #tpu.memory_space<vmem>>, %arg17: memref<1x128x128xf32, #tpu.memory_space<vmem>>, %arg18: memref<1x4x128x128xf32, #tpu.memory_space<vmem>>) attributes {dimension_semantics = [#tpu.dimension_semantics<parallel>, #tpu.dimension_semantics<arbitrary>], iteration_bounds = array<i64: 2, 2>, scalar_prefetch = 0 : i64, scratch_operands = 0 : i64, tpu.core_type = #tpu.core_type<tc>, window_params = [{transform_indices = @transform_0, window_bounds = array<i64: 1, 128, 128>}, {transform_indices = @transform_1, window_bounds = array<i64: 1, 1, 512>}, {pipeline_mode = #tpu.pipeline_mode<synchronous>, transform_indices = @transform_2, window_bounds = array<i64: 512, 128>}, {transform_indices = @transform_3, window_bounds = array<i64: 1, 128, 384>}, {transform_indices = @transform_4, window_bounds = array<i64: 1, 1, 384>}, {transform_indices = @transform_5, window_bounds = array<i64: 1, 128, 128>}, {transform_indices = @transform_6, window_bounds = array<i64: 1, 1, 128>}, {transform_indices = @transform_7, window_bounds = array<i64: 1, 1, 128>}, {transform_indices = @transform_8, window_bounds = array<i64: 1, 1, 128>}, {transform_indices = @transform_9, window_bounds = array<i64: 1, 128, 256>}, {transform_indices = @transform_10, window_bounds = array<i64: 1, 1, 256>}, {transform_indices = @transform_11, window_bounds = array<i64: 1, 256, 128>}, {transform_indices = @transform_12, window_bounds = array<i64: 1, 1, 128>}, {transform_indices = @transform_13, window_bounds = array<i64: 1, 1, 128>}, {transform_indices = @transform_14, window_bounds = array<i64: 1, 1, 128>}, {transform_indices = @transform_15, window_bounds = array<i64: 1, 128, 128>}, {transform_indices = @transform_16, window_bounds = array<i64: 1, 4, 128, 128>}]} {
    %c0_i32 = arith.constant 0 : i32
    %0 = arith.cmpi eq, %arg1, %c0_i32 : i32
    %1 = arith.extui %0 : i1 to i32
    %c0_i32_0 = arith.constant 0 : i32
    %2 = arith.cmpi ne, %1, %c0_i32_0 : i32
    scf.if %2 {
      %c0_75 = arith.constant 0 : index
      %c0_76 = arith.constant 0 : index
      %c0_77 = arith.constant 0 : index
      %167 = vector.load %arg2[%c0_75, %c0_76, %c0_77] : memref<1x128x128xf32, #tpu.memory_space<vmem>>, vector<1x128x128xf32>
      %168 = vector.shape_cast %167 : vector<1x128x128xf32> to vector<128x128xf32>
      %c0_78 = arith.constant 0 : index
      %c0_79 = arith.constant 0 : index
      %c0_80 = arith.constant 0 : index
      %169 = vector.load %arg17[%c0_78, %c0_79, %c0_80] : memref<1x128x128xf32, #tpu.memory_space<vmem>>, vector<1x128x128xf32>
      %170 = vector.shape_cast %169 : vector<1x128x128xf32> to vector<128x128xf32>
      %171 = vector.shape_cast %168 : vector<128x128xf32> to vector<1x128x128xf32>
      tpu.vector_store %arg17[%c0_78, %c0_79, %c0_80], %171 {strides = array<i32>} : memref<1x128x128xf32, #tpu.memory_space<vmem>>, vector<1x128x128xf32>,
    } else {
    }
    %c0 = arith.constant 0 : index
    %c0_1 = arith.constant 0 : index
    %c0_2 = arith.constant 0 : index
    %3 = vector.load %arg17[%c0, %c0_1, %c0_2] : memref<1x128x128xf32, #tpu.memory_space<vmem>>, vector<1x128x128xf32>
    %4 = vector.shape_cast %3 : vector<1x128x128xf32> to vector<128x128xf32>
    %5 = arith.truncf %4 : vector<128x128xf32> to vector<128x128xbf16>
    %c0_3 = arith.constant 0 : index
    %c0_4 = arith.constant 0 : index
    %c0_5 = arith.constant 0 : index
    %6 = vector.load %arg5[%c0_3, %c0_4, %c0_5] : memref<1x128x384xbf16, #tpu.memory_space<vmem>>, vector<1x128x384xbf16>
    %7 = vector.shape_cast %6 : vector<1x128x384xbf16> to vector<128x384xbf16>
    %cst = arith.constant dense<0.000000e+00> : vector<128x384xf32>
    %8 = tpu.matmul %5, %7, %cst {dimension_numbers = #tpu.dot_dimension_numbers<[1], [0], [0], [1], [0, 0, 1, 1], [], []>} : vector<128x128xbf16>, vector<128x384xbf16>, vector<128x384xf32> -> vector<128x384xf32>
    %c0_6 = arith.constant 0 : index
    %c0_7 = arith.constant 0 : index
    %c0_8 = arith.constant 0 : index
    %9 = vector.load %arg6[%c0_6, %c0_7, %c0_8] : memref<1x1x384xf32, #tpu.memory_space<vmem>>, vector<1x1x384xf32>
    %10 = vector.shape_cast %9 : vector<1x1x384xf32> to vector<1x384xf32>
    %11 = vector.broadcast %10 : vector<1x384xf32> to vector<128x384xf32>
    %12 = arith.addf %8, %11 : vector<128x384xf32>
    %13 = arith.truncf %12 : vector<128x384xf32> to vector<128x384xbf16>
    %14 = vector.extract_strided_slice %13 {offsets = [0, 0], sizes = [128, 128], strides = [1, 1]} : vector<128x384xbf16> to vector<128x128xbf16>
    %15 = vector.extract_strided_slice %13 {offsets = [0, 128], sizes = [128, 128], strides = [1, 1]} : vector<128x384xbf16> to vector<128x128xbf16>
    %16 = vector.extract_strided_slice %13 {offsets = [0, 256], sizes = [128, 128], strides = [1, 1]} : vector<128x384xbf16> to vector<128x128xbf16>
    %c0_9 = arith.constant 0 : index
    %c0_10 = arith.constant 0 : index
    %17 = vector.load %arg4[%c0_9, %c0_10] : memref<512x128xbf16, #tpu.memory_space<vmem>>, vector<512x128xbf16>
    %18 = tpu.concatenate %15, %15, %15, %15 in 0 : vector<128x128xbf16>, vector<128x128xbf16>, vector<128x128xbf16>, vector<128x128xbf16> -> vector<512x128xbf16>
    %19 = arith.mulf %18, %17 : vector<512x128xbf16>
    %20 = tpu.concatenate %16, %16, %16, %16 in 0 : vector<128x128xbf16>, vector<128x128xbf16>, vector<128x128xbf16>, vector<128x128xbf16> -> vector<512x128xbf16>
    %21 = arith.mulf %20, %17 : vector<512x128xbf16>
    %cst_11 = arith.constant dense<0.000000e+00> : vector<128x512xf32>
    %22 = tpu.matmul %14, %19, %cst_11 {dimension_numbers = #tpu.dot_dimension_numbers<[1], [1], [0], [0], [0, 0, 1, 0], [], []>} : vector<128x128xbf16>, vector<512x128xbf16>, vector<128x512xf32> -> vector<128x512xf32>
    %c0_12 = arith.constant 0 : index
    %c0_13 = arith.constant 0 : index
    %c0_14 = arith.constant 0 : index
    %23 = vector.load %arg3[%c0_12, %c0_13, %c0_14] : memref<1x1x512xf32, #tpu.memory_space<vmem>>, vector<1x1x512xf32>
    %24 = vector.shape_cast %23 : vector<1x1x512xf32> to vector<1x512xf32>
    %25 = vector.broadcast %24 : vector<1x512xf32> to vector<128x512xf32>
    %26 = arith.addf %22, %25 : vector<128x512xf32>
    %27 = vector.extract_strided_slice %26 {offsets = [0, 0], sizes = [128, 128], strides = [1, 1]} : vector<128x512xf32> to vector<128x128xf32>
    %cst_15 = arith.constant dense<0xFF800000> : vector<128xf32>
    %28 = vector.multi_reduction <maximumf>, %27, %cst_15 [1] : vector<128x128xf32> to vector<128xf32>
    %29 = vector.shape_cast %28 : vector<128xf32> to vector<128x1xf32>
    %30 = vector.broadcast %29 : vector<128x1xf32> to vector<128x128xf32>
    %31 = arith.subf %27, %30 : vector<128x128xf32>
    %32 = math.exp %31 : vector<128x128xf32>
    %cst_16 = arith.constant dense<0.000000e+00> : vector<128xf32>
    %33 = vector.multi_reduction <add>, %32, %cst_16 [1] : vector<128x128xf32> to vector<128xf32>
    %34 = vector.shape_cast %33 : vector<128xf32> to vector<128x1xf32>
    %35 = vector.broadcast %34 : vector<128x1xf32> to vector<128x128xf32>
    %36 = arith.divf %32, %35 : vector<128x128xf32>
    %37 = vector.extract_strided_slice %26 {offsets = [0, 128], sizes = [128, 128], strides = [1, 1]} : vector<128x512xf32> to vector<128x128xf32>
    %cst_17 = arith.constant dense<0xFF800000> : vector<128xf32>
    %38 = vector.multi_reduction <maximumf>, %37, %cst_17 [1] : vector<128x128xf32> to vector<128xf32>
    %39 = vector.shape_cast %38 : vector<128xf32> to vector<128x1xf32>
    %40 = vector.broadcast %39 : vector<128x1xf32> to vector<128x128xf32>
    %41 = arith.subf %37, %40 : vector<128x128xf32>
    %42 = math.exp %41 : vector<128x128xf32>
    %cst_18 = arith.constant dense<0.000000e+00> : vector<128xf32>
    %43 = vector.multi_reduction <add>, %42, %cst_18 [1] : vector<128x128xf32> to vector<128xf32>
    %44 = vector.shape_cast %43 : vector<128xf32> to vector<128x1xf32>
    %45 = vector.broadcast %44 : vector<128x1xf32> to vector<128x128xf32>
    %46 = arith.divf %42, %45 : vector<128x128xf32>
    %47 = vector.extract_strided_slice %26 {offsets = [0, 256], sizes = [128, 128], strides = [1, 1]} : vector<128x512xf32> to vector<128x128xf32>
    %cst_19 = arith.constant dense<0xFF800000> : vector<128xf32>
    %48 = vector.multi_reduction <maximumf>, %47, %cst_19 [1] : vector<128x128xf32> to vector<128xf32>
    %49 = vector.shape_cast %48 : vector<128xf32> to vector<128x1xf32>
    %50 = vector.broadcast %49 : vector<128x1xf32> to vector<128x128xf32>
    %51 = arith.subf %47, %50 : vector<128x128xf32>
    %52 = math.exp %51 : vector<128x128xf32>
    %cst_20 = arith.constant dense<0.000000e+00> : vector<128xf32>
    %53 = vector.multi_reduction <add>, %52, %cst_20 [1] : vector<128x128xf32> to vector<128xf32>
    %54 = vector.shape_cast %53 : vector<128xf32> to vector<128x1xf32>
    %55 = vector.broadcast %54 : vector<128x1xf32> to vector<128x128xf32>
    %56 = arith.divf %52, %55 : vector<128x128xf32>
    %57 = vector.extract_strided_slice %26 {offsets = [0, 384], sizes = [128, 128], strides = [1, 1]} : vector<128x512xf32> to vector<128x128xf32>
    %cst_21 = arith.constant dense<0xFF800000> : vector<128xf32>
    %58 = vector.multi_reduction <maximumf>, %57, %cst_21 [1] : vector<128x128xf32> to vector<128xf32>
    %59 = vector.shape_cast %58 : vector<128xf32> to vector<128x1xf32>
    %60 = vector.broadcast %59 : vector<128x1xf32> to vector<128x128xf32>
    %61 = arith.subf %57, %60 : vector<128x128xf32>
    %62 = math.exp %61 : vector<128x128xf32>
    %cst_22 = arith.constant dense<0.000000e+00> : vector<128xf32>
    %63 = vector.multi_reduction <add>, %62, %cst_22 [1] : vector<128x128xf32> to vector<128xf32>
    %64 = vector.shape_cast %63 : vector<128xf32> to vector<128x1xf32>
    %65 = vector.broadcast %64 : vector<128x1xf32> to vector<128x128xf32>
    %66 = arith.divf %62, %65 : vector<128x128xf32>
    %67 = tpu.concatenate %36, %46, %56, %66 in 1 : vector<128x128xf32>, vector<128x128xf32>, vector<128x128xf32>, vector<128x128xf32> -> vector<128x512xf32>
    %68 = arith.truncf %67 : vector<128x512xf32> to vector<128x512xbf16>
    %cst_23 = arith.constant dense<0.000000e+00> : vector<128x128xf32>
    %69 = tpu.matmul %68, %21, %cst_23 {dimension_numbers = #tpu.dot_dimension_numbers<[1], [0], [0], [1], [0, 0, 1, 1], [], []>} : vector<128x512xbf16>, vector<512x128xbf16>, vector<128x128xf32> -> vector<128x128xf32>
    %70 = arith.truncf %69 : vector<128x128xf32> to vector<128x128xbf16>
    %c0_24 = arith.constant 0 : index
    %c0_25 = arith.constant 0 : index
    %c0_26 = arith.constant 0 : index
    %71 = vector.load %arg7[%c0_24, %c0_25, %c0_26] : memref<1x128x128xbf16, #tpu.memory_space<vmem>>, vector<1x128x128xbf16>
    %72 = vector.shape_cast %71 : vector<1x128x128xbf16> to vector<128x128xbf16>
    %cst_27 = arith.constant dense<0.000000e+00> : vector<128x128xf32>
    %73 = tpu.matmul %70, %72, %cst_27 {dimension_numbers = #tpu.dot_dimension_numbers<[1], [0], [0], [1], [0, 0, 1, 1], [], []>} : vector<128x128xbf16>, vector<128x128xbf16>, vector<128x128xf32> -> vector<128x128xf32>
    %c0_28 = arith.constant 0 : index
    %c0_29 = arith.constant 0 : index
    %c0_30 = arith.constant 0 : index
    %74 = vector.load %arg8[%c0_28, %c0_29, %c0_30] : memref<1x1x128xf32, #tpu.memory_space<vmem>>, vector<1x1x128xf32>
    %75 = vector.shape_cast %74 : vector<1x1x128xf32> to vector<1x128xf32>
    %76 = vector.broadcast %75 : vector<1x128xf32> to vector<128x128xf32>
    %77 = arith.addf %73, %76 : vector<128x128xf32>
    %78 = arith.addf %77, %4 : vector<128x128xf32>
    %c0_31 = arith.constant 0 : index
    %c0_32 = arith.constant 0 : index
    %c0_33 = arith.constant 0 : index
    %79 = vector.load %arg9[%c0_31, %c0_32, %c0_33] : memref<1x1x128xf32, #tpu.memory_space<vmem>>, vector<1x1x128xf32>
    %80 = vector.shape_cast %79 : vector<1x1x128xf32> to vector<1x128xf32>
    %c0_34 = arith.constant 0 : index
    %c0_35 = arith.constant 0 : index
    %c0_36 = arith.constant 0 : index
    %81 = vector.load %arg10[%c0_34, %c0_35, %c0_36] : memref<1x1x128xf32, #tpu.memory_space<vmem>>, vector<1x1x128xf32>
    %82 = vector.shape_cast %81 : vector<1x1x128xf32> to vector<1x128xf32>
    %cst_37 = arith.constant dense<0.000000e+00> : vector<128xf32>
    %83 = vector.multi_reduction <add>, %78, %cst_37 [1] : vector<128x128xf32> to vector<128xf32>
    %84 = vector.shape_cast %83 : vector<128xf32> to vector<128x1xf32>
    %cst_38 = arith.constant 1.280000e+02 : f32
    %85 = vector.broadcast %cst_38 : f32 to vector<128x1xf32>
    %86 = arith.divf %84, %85 : vector<128x1xf32>
    %87 = arith.mulf %78, %78 : vector<128x128xf32>
    %cst_39 = arith.constant dense<0.000000e+00> : vector<128xf32>
    %88 = vector.multi_reduction <add>, %87, %cst_39 [1] : vector<128x128xf32> to vector<128xf32>
    %89 = vector.shape_cast %88 : vector<128xf32> to vector<128x1xf32>
    %cst_40 = arith.constant 1.280000e+02 : f32
    %90 = vector.broadcast %cst_40 : f32 to vector<128x1xf32>
    %91 = arith.divf %89, %90 : vector<128x1xf32>
    %92 = arith.mulf %86, %86 : vector<128x1xf32>
    %93 = arith.subf %91, %92 : vector<128x1xf32>
    %94 = vector.broadcast %86 : vector<128x1xf32> to vector<128x128xf32>
    %95 = arith.subf %78, %94 : vector<128x128xf32>
    %cst_41 = arith.constant 9.99999996E-13 : f32
    %96 = vector.broadcast %cst_41 : f32 to vector<128x1xf32>
    %97 = arith.addf %93, %96 : vector<128x1xf32>
    %98 = math.rsqrt %97 : vector<128x1xf32>
    %99 = vector.broadcast %98 : vector<128x1xf32> to vector<128x128xf32>
    %100 = arith.mulf %95, %99 : vector<128x128xf32>
    %101 = vector.broadcast %80 : vector<1x128xf32> to vector<128x128xf32>
    %102 = arith.mulf %100, %101 : vector<128x128xf32>
    %103 = vector.broadcast %82 : vector<1x128xf32> to vector<128x128xf32>
    %104 = arith.addf %102, %103 : vector<128x128xf32>
    %105 = arith.truncf %104 : vector<128x128xf32> to vector<128x128xbf16>
    %c0_42 = arith.constant 0 : index
    %c0_43 = arith.constant 0 : index
    %c0_44 = arith.constant 0 : index
    %106 = vector.load %arg11[%c0_42, %c0_43, %c0_44] : memref<1x128x256xbf16, #tpu.memory_space<vmem>>, vector<1x128x256xbf16>
    %107 = vector.shape_cast %106 : vector<1x128x256xbf16> to vector<128x256xbf16>
    %cst_45 = arith.constant dense<0.000000e+00> : vector<128x256xf32>
    %108 = tpu.matmul %105, %107, %cst_45 {dimension_numbers = #tpu.dot_dimension_numbers<[1], [0], [0], [1], [0, 0, 1, 1], [], []>} : vector<128x128xbf16>, vector<128x256xbf16>, vector<128x256xf32> -> vector<128x256xf32>
    %c0_46 = arith.constant 0 : index
    %c0_47 = arith.constant 0 : index
    %c0_48 = arith.constant 0 : index
    %109 = vector.load %arg12[%c0_46, %c0_47, %c0_48] : memref<1x1x256xf32, #tpu.memory_space<vmem>>, vector<1x1x256xf32>
    %110 = vector.shape_cast %109 : vector<1x1x256xf32> to vector<1x256xf32>
    %111 = vector.broadcast %110 : vector<1x256xf32> to vector<128x256xf32>
    %112 = arith.addf %108, %111 : vector<128x256xf32>
    %113 = arith.mulf %112, %112 : vector<128x256xf32>
    %114 = arith.mulf %112, %113 : vector<128x256xf32>
    %cst_49 = arith.constant 4.471500e-02 : f32
    %115 = vector.broadcast %cst_49 : f32 to vector<128x256xf32>
    %116 = arith.mulf %115, %114 : vector<128x256xf32>
    %117 = arith.addf %112, %116 : vector<128x256xf32>
    %cst_50 = arith.constant 0.797884583 : f32
    %118 = vector.broadcast %cst_50 : f32 to vector<128x256xf32>
    %119 = arith.mulf %118, %117 : vector<128x256xf32>
    %120 = math.tanh %119 : vector<128x256xf32>
    %cst_51 = arith.constant 1.000000e+00 : f32
    %121 = vector.broadcast %cst_51 : f32 to vector<128x256xf32>
    %122 = arith.addf %121, %120 : vector<128x256xf32>
    %cst_52 = arith.constant 5.000000e-01 : f32
    %123 = vector.broadcast %cst_52 : f32 to vector<128x256xf32>
    %124 = arith.mulf %123, %122 : vector<128x256xf32>
    %125 = arith.mulf %112, %124 : vector<128x256xf32>
    %126 = arith.truncf %125 : vector<128x256xf32> to vector<128x256xbf16>
    %c0_53 = arith.constant 0 : index
    %c0_54 = arith.constant 0 : index
    %c0_55 = arith.constant 0 : index
    %127 = vector.load %arg13[%c0_53, %c0_54, %c0_55] : memref<1x256x128xbf16, #tpu.memory_space<vmem>>, vector<1x256x128xbf16>
    %128 = vector.shape_cast %127 : vector<1x256x128xbf16> to vector<256x128xbf16>
    %cst_56 = arith.constant dense<0.000000e+00> : vector<128x128xf32>
    %129 = tpu.matmul %126, %128, %cst_56 {dimension_numbers = #tpu.dot_dimension_numbers<[1], [0], [0], [1], [0, 0, 1, 1], [], []>} : vector<128x256xbf16>, vector<256x128xbf16>, vector<128x128xf32> -> vector<128x128xf32>
    %c0_57 = arith.constant 0 : index
    %c0_58 = arith.constant 0 : index
    %c0_59 = arith.constant 0 : index
    %130 = vector.load %arg14[%c0_57, %c0_58, %c0_59] : memref<1x1x128xf32, #tpu.memory_space<vmem>>, vector<1x1x128xf32>
    %131 = vector.shape_cast %130 : vector<1x1x128xf32> to vector<1x128xf32>
    %132 = vector.broadcast %131 : vector<1x128xf32> to vector<128x128xf32>
    %133 = arith.addf %129, %132 : vector<128x128xf32>
    %134 = arith.addf %133, %104 : vector<128x128xf32>
    %c0_60 = arith.constant 0 : index
    %c0_61 = arith.constant 0 : index
    %c0_62 = arith.constant 0 : index
    %135 = vector.load %arg15[%c0_60, %c0_61, %c0_62] : memref<1x1x128xf32, #tpu.memory_space<vmem>>, vector<1x1x128xf32>
    %136 = vector.shape_cast %135 : vector<1x1x128xf32> to vector<1x128xf32>
    %c0_63 = arith.constant 0 : index
    %c0_64 = arith.constant 0 : index
    %c0_65 = arith.constant 0 : index
    %137 = vector.load %arg16[%c0_63, %c0_64, %c0_65] : memref<1x1x128xf32, #tpu.memory_space<vmem>>, vector<1x1x128xf32>
    %138 = vector.shape_cast %137 : vector<1x1x128xf32> to vector<1x128xf32>
    %cst_66 = arith.constant dense<0.000000e+00> : vector<128xf32>
    %139 = vector.multi_reduction <add>, %134, %cst_66 [1] : vector<128x128xf32> to vector<128xf32>
    %140 = vector.shape_cast %139 : vector<128xf32> to vector<128x1xf32>
    %cst_67 = arith.constant 1.280000e+02 : f32
    %141 = vector.broadcast %cst_67 : f32 to vector<128x1xf32>
    %142 = arith.divf %140, %141 : vector<128x1xf32>
    %143 = arith.mulf %134, %134 : vector<128x128xf32>
    %cst_68 = arith.constant dense<0.000000e+00> : vector<128xf32>
    %144 = vector.multi_reduction <add>, %143, %cst_68 [1] : vector<128x128xf32> to vector<128xf32>
    %145 = vector.shape_cast %144 : vector<128xf32> to vector<128x1xf32>
    %cst_69 = arith.constant 1.280000e+02 : f32
    %146 = vector.broadcast %cst_69 : f32 to vector<128x1xf32>
    %147 = arith.divf %145, %146 : vector<128x1xf32>
    %148 = arith.mulf %142, %142 : vector<128x1xf32>
    %149 = arith.subf %147, %148 : vector<128x1xf32>
    %150 = vector.broadcast %142 : vector<128x1xf32> to vector<128x128xf32>
    %151 = arith.subf %134, %150 : vector<128x128xf32>
    %cst_70 = arith.constant 9.99999996E-13 : f32
    %152 = vector.broadcast %cst_70 : f32 to vector<128x1xf32>
    %153 = arith.addf %149, %152 : vector<128x1xf32>
    %154 = math.rsqrt %153 : vector<128x1xf32>
    %155 = vector.broadcast %154 : vector<128x1xf32> to vector<128x128xf32>
    %156 = arith.mulf %151, %155 : vector<128x128xf32>
    %157 = vector.broadcast %136 : vector<1x128xf32> to vector<128x128xf32>
    %158 = arith.mulf %156, %157 : vector<128x128xf32>
    %159 = vector.broadcast %138 : vector<1x128xf32> to vector<128x128xf32>
    %160 = arith.addf %158, %159 : vector<128x128xf32>
    %c0_71 = arith.constant 0 : index
    %c0_72 = arith.constant 0 : index
    %c0_73 = arith.constant 0 : index
    %161 = vector.load %arg17[%c0_71, %c0_72, %c0_73] : memref<1x128x128xf32, #tpu.memory_space<vmem>>, vector<1x128x128xf32>
    %162 = vector.shape_cast %161 : vector<1x128x128xf32> to vector<128x128xf32>
    %163 = vector.shape_cast %160 : vector<128x128xf32> to vector<1x128x128xf32>
    tpu.vector_store %arg17[%c0_71, %c0_72, %c0_73], %163 {strides = array<i32>} : memref<1x128x128xf32, #tpu.memory_space<vmem>>, vector<1x128x128xf32>,
    %c1_i32 = arith.constant 1 : i32
    %164 = arith.cmpi eq, %arg1, %c1_i32 : i32
    %165 = arith.extui %164 : i1 to i32
    %c0_i32_74 = arith.constant 0 : i32
    %166 = arith.cmpi ne, %165, %c0_i32_74 : i32
    scf.if %166 {
      %c0_75 = arith.constant 0 : index
      %c0_76 = arith.constant 0 : index
      %c0_77 = arith.constant 0 : index
      %c0_78 = arith.constant 0 : index
      %167 = vector.load %arg18[%c0_75, %c0_76, %c0_77, %c0_78] : memref<1x4x128x128xf32, #tpu.memory_space<vmem>>, vector<1x1x128x128xf32>
      %168 = vector.shape_cast %167 : vector<1x1x128x128xf32> to vector<128x128xf32>
      %169 = vector.shape_cast %36 : vector<128x128xf32> to vector<1x1x128x128xf32>
      tpu.vector_store %arg18[%c0_75, %c0_76, %c0_77, %c0_78], %169 {strides = array<i32>} : memref<1x4x128x128xf32, #tpu.memory_space<vmem>>, vector<1x1x128x128xf32>,
      %c0_79 = arith.constant 0 : index
      %c1 = arith.constant 1 : index
      %c0_80 = arith.constant 0 : index
      %c0_81 = arith.constant 0 : index
      %170 = vector.load %arg18[%c0_79, %c1, %c0_80, %c0_81] : memref<1x4x128x128xf32, #tpu.memory_space<vmem>>, vector<1x1x128x128xf32>
      %171 = vector.shape_cast %170 : vector<1x1x128x128xf32> to vector<128x128xf32>
      %172 = vector.shape_cast %46 : vector<128x128xf32> to vector<1x1x128x128xf32>
      tpu.vector_store %arg18[%c0_79, %c1, %c0_80, %c0_81], %172 {strides = array<i32>} : memref<1x4x128x128xf32, #tpu.memory_space<vmem>>, vector<1x1x128x128xf32>,
      %c0_82 = arith.constant 0 : index
      %c2 = arith.constant 2 : index
      %c0_83 = arith.constant 0 : index
      %c0_84 = arith.constant 0 : index
      %173 = vector.load %arg18[%c0_82, %c2, %c0_83, %c0_84] : memref<1x4x128x128xf32, #tpu.memory_space<vmem>>, vector<1x1x128x128xf32>
      %174 = vector.shape_cast %173 : vector<1x1x128x128xf32> to vector<128x128xf32>
      %175 = vector.shape_cast %56 : vector<128x128xf32> to vector<1x1x128x128xf32>
      tpu.vector_store %arg18[%c0_82, %c2, %c0_83, %c0_84], %175 {strides = array<i32>} : memref<1x4x128x128xf32, #tpu.memory_space<vmem>>, vector<1x1x128x128xf32>,
      %c0_85 = arith.constant 0 : index
      %c3 = arith.constant 3 : index
      %c0_86 = arith.constant 0 : index
      %c0_87 = arith.constant 0 : index
      %176 = vector.load %arg18[%c0_85, %c3, %c0_86, %c0_87] : memref<1x4x128x128xf32, #tpu.memory_space<vmem>>, vector<1x1x128x128xf32>
      %177 = vector.shape_cast %176 : vector<1x1x128x128xf32> to vector<128x128xf32>
      %178 = vector.shape_cast %66 : vector<128x128xf32> to vector<1x1x128x128xf32>
      tpu.vector_store %arg18[%c0_85, %c3, %c0_86, %c0_87], %178 {strides = array<i32>} : memref<1x4x128x128xf32, #tpu.memory_space<vmem>>, vector<1x1x128x128xf32>,
    } else {
    }
    return
  }
  func.func @transform_0(%arg0: i32, %arg1: i32) -> (i32, i32, i32) {
    %c0_i32 = arith.constant 0 : i32
    %c0_i32_0 = arith.constant 0 : i32
    %c0_i32_1 = arith.constant 0 : i32
    return %arg0, %c0_i32, %c0_i32_0 : i32, i32, i32
  }
  func.func @transform_1(%arg0: i32, %arg1: i32) -> (i32, i32, i32) {
    %c0_i32 = arith.constant 0 : i32
    %c0_i32_0 = arith.constant 0 : i32
    %c0_i32_1 = arith.constant 0 : i32
    return %arg0, %c0_i32, %c0_i32_0 : i32, i32, i32
  }
  func.func @transform_2(%arg0: i32, %arg1: i32) -> (i32, i32) {
    %c0_i32 = arith.constant 0 : i32
    %c0_i32_0 = arith.constant 0 : i32
    %c0_i32_1 = arith.constant 0 : i32
    return %c0_i32, %c0_i32_0 : i32, i32
  }
  func.func @transform_3(%arg0: i32, %arg1: i32) -> (i32, i32, i32) {
    %c0_i32 = arith.constant 0 : i32
    %c0_i32_0 = arith.constant 0 : i32
    %c0_i32_1 = arith.constant 0 : i32
    return %arg1, %c0_i32, %c0_i32_0 : i32, i32, i32
  }
  func.func @transform_4(%arg0: i32, %arg1: i32) -> (i32, i32, i32) {
    %c0_i32 = arith.constant 0 : i32
    %c0_i32_0 = arith.constant 0 : i32
    %c0_i32_1 = arith.constant 0 : i32
    return %arg1, %c0_i32, %c0_i32_0 : i32, i32, i32
  }
  func.func @transform_5(%arg0: i32, %arg1: i32) -> (i32, i32, i32) {
    %c0_i32 = arith.constant 0 : i32
    %c0_i32_0 = arith.constant 0 : i32
    %c0_i32_1 = arith.constant 0 : i32
    return %arg1, %c0_i32, %c0_i32_0 : i32, i32, i32
  }
  func.func @transform_6(%arg0: i32, %arg1: i32) -> (i32, i32, i32) {
    %c0_i32 = arith.constant 0 : i32
    %c0_i32_0 = arith.constant 0 : i32
    %c0_i32_1 = arith.constant 0 : i32
    return %arg1, %c0_i32, %c0_i32_0 : i32, i32, i32
  }
  func.func @transform_7(%arg0: i32, %arg1: i32) -> (i32, i32, i32) {
    %c0_i32 = arith.constant 0 : i32
    %c0_i32_0 = arith.constant 0 : i32
    %c0_i32_1 = arith.constant 0 : i32
    return %arg1, %c0_i32, %c0_i32_0 : i32, i32, i32
  }
  func.func @transform_8(%arg0: i32, %arg1: i32) -> (i32, i32, i32) {
    %c0_i32 = arith.constant 0 : i32
    %c0_i32_0 = arith.constant 0 : i32
    %c0_i32_1 = arith.constant 0 : i32
    return %arg1, %c0_i32, %c0_i32_0 : i32, i32, i32
  }
  func.func @transform_9(%arg0: i32, %arg1: i32) -> (i32, i32, i32) {
    %c0_i32 = arith.constant 0 : i32
    %c0_i32_0 = arith.constant 0 : i32
    %c0_i32_1 = arith.constant 0 : i32
    return %arg1, %c0_i32, %c0_i32_0 : i32, i32, i32
  }
  func.func @transform_10(%arg0: i32, %arg1: i32) -> (i32, i32, i32) {
    %c0_i32 = arith.constant 0 : i32
    %c0_i32_0 = arith.constant 0 : i32
    %c0_i32_1 = arith.constant 0 : i32
    return %arg1, %c0_i32, %c0_i32_0 : i32, i32, i32
  }
  func.func @transform_11(%arg0: i32, %arg1: i32) -> (i32, i32, i32) {
    %c0_i32 = arith.constant 0 : i32
    %c0_i32_0 = arith.constant 0 : i32
    %c0_i32_1 = arith.constant 0 : i32
    return %arg1, %c0_i32, %c0_i32_0 : i32, i32, i32
  }
  func.func @transform_12(%arg0: i32, %arg1: i32) -> (i32, i32, i32) {
    %c0_i32 = arith.constant 0 : i32
    %c0_i32_0 = arith.constant 0 : i32
    %c0_i32_1 = arith.constant 0 : i32
    return %arg1, %c0_i32, %c0_i32_0 : i32, i32, i32
  }
  func.func @transform_13(%arg0: i32, %arg1: i32) -> (i32, i32, i32) {
    %c0_i32 = arith.constant 0 : i32
    %c0_i32_0 = arith.constant 0 : i32
    %c0_i32_1 = arith.constant 0 : i32
    return %arg1, %c0_i32, %c0_i32_0 : i32, i32, i32
  }
  func.func @transform_14(%arg0: i32, %arg1: i32) -> (i32, i32, i32) {
    %c0_i32 = arith.constant 0 : i32
    %c0_i32_0 = arith.constant 0 : i32
    %c0_i32_1 = arith.constant 0 : i32
    return %arg1, %c0_i32, %c0_i32_0 : i32, i32, i32
  }
  func.func @transform_15(%arg0: i32, %arg1: i32) -> (i32, i32, i32) {
    %c0_i32 = arith.constant 0 : i32
    %c0_i32_0 = arith.constant 0 : i32
    %c0_i32_1 = arith.constant 0 : i32
    return %arg0, %c0_i32, %c0_i32_0 : i32, i32, i32
  }
  func.func @transform_16(%arg0: i32, %arg1: i32) -> (i32, i32, i32, i32) {
    %c0_i32 = arith.constant 0 : i32
    %c0_i32_0 = arith.constant 0 : i32
    %c0_i32_1 = arith.constant 0 : i32
    %c0_i32_2 = arith.constant 0 : i32
    return %arg0, %c0_i32, %c0_i32_0, %c0_i32_1 : i32, i32, i32, i32
  }
}

</mosaic_0001>

<bundles_post_ra>
// kernel: transformer_forward.1
= control target key start
LH: loop header
LB: loop body
LE: loop exit
PB: predicated region body
PF: predicated region fallthrough
CT: control target
= control target key end

     0   :  { %s8216_s0 = inlined_call_operand.vmem [shape: f32[2,128,128], index: 0, kind: input, shape index: {}]   ;;  %s8217_s1 = inlined_call_operand.vmem [shape: f32[2,1,512], index: 1, kind: input, shape index: {}]   ;;  %s8218_s2 = inlined_call_operand.vmem [shape: bf16[512,128], index: 2, kind: input, shape index: {}]   ;;  %s8219_s3 = inlined_call_operand.vmem [shape: bf16[2,128,384], index: 3, kind: input, shape index: {}]   ;;  %s8220_s4 = inlined_call_operand.vmem [shape: f32[2,1,384], index: 4, kind: input, shape index: {}]   ;;  %s8221_s5 = inlined_call_operand.vmem [shape: bf16[2,128,128], index: 5, kind: input, shape index: {}]   ;;  %s8222_s6 = inlined_call_operand.vmem [shape: f32[2,1,128], index: 6, kind: input, shape index: {}, may-alias: {6,8,12,14}]   ;;  %s8223_s7 = inlined_call_operand.vmem [shape: f32[2,1,128], index: 7, kind: input, shape index: {}, may-alias: {7,13}]   ;;  %s8224_s8 = inlined_call_operand.vmem [shape: f32[2,1,128], index: 8, kind: input, shape index: {}, may-alias: {6,8,12,14}]   ;;  %s8225_s9 = inlined_call_operand.vmem [shape: bf16[2,128,256], index: 9, kind: input, shape index: {}]   ;;  %s8226_s10 = inlined_call_operand.vmem [shape: f32[2,1,256], index: 10, kind: input, shape index: {}]   ;;  %s8227_s11 = inlined_call_operand.vmem [shape: bf16[2,256,128], index: 11, kind: input, shape index: {}]   ;;  %s8228_s12 = inlined_call_operand.vmem [shape: f32[2,1,128], index: 12, kind: input, shape index: {}, may-alias: {6,8,12,14}]   ;;  %s8229_s13 = inlined_call_operand.vmem [shape: f32[2,1,128], index: 13, kind: input, shape index: {}, may-alias: {7,13}]   ;;  %s8230_s14 = inlined_call_operand.vmem [shape: f32[2,1,128], index: 14, kind: input, shape index: {}, may-alias: {6,8,12,14}]   ;;  %s8231_s15 = inlined_call_operand.hbm [shape: f32[2,128,128], index: 15, kind: output, shape index: {0}]   ;;  %s8232_s16 = inlined_call_operand.hbm [shape: f32[2,4,128,128], index: 16, kind: output, shape index: {1}]  }
   0x1   :  { %8339 = sst [smem:[#allocation77_spill]] %s8216_s0 }
   0x2   :  { %8340 = sst [smem:[#allocation78_spill]] %s8217_s1 }
   0x3   :  { %8341 = sst [smem:[#allocation79_spill]] %s8218_s2 }
   0x4   :  { %8342 = sst [smem:[#allocation80_spill]] %s8219_s3 }
   0x5   :  { %8343 = sst [smem:[#allocation81_spill]] %s8220_s4 }
   0x6   :  { %8344 = sst [smem:[#allocation82_spill]] %s8221_s5 }
   0x7   :  { %8345 = sst [smem:[#allocation83_spill]] %s8224_s8 }
   0x8   :  { %8346 = sst [smem:[#allocation84_spill]] %s8225_s9 }
   0x9   :  { %8347 = sst [smem:[#allocation85_spill]] %s8230_s14 }
   0xa   :  { %8348 = sst [smem:[#allocation86_spill]] %s8231_s15 }
   0xb   :  { %8349 = sst [smem:[#allocation87_spill]] %s8232_s16 }
   0xc   :  { %22 = vsyncpa [#allocation3], 0 }
   0xd   :  { %24 = vsyncpa [#allocation3 + $0x1], 0 }
   0xe   :  { %25 = vsyncpa [#allocation5], 0 }
   0xf   :  { %27 = vsyncpa [#allocation5 + $0x1], 0  ;;  %s5810_s21 = smov 0   ;;  %s5812_s22 = smov 0  }
  0x10   :  { %s5814_s23 = smov 0   ;;  %s5816_s24 = smov 0  }
  0x11   :  { %s5818_s25 = smov 0   ;;  %s5820_s26 = smov 0  }
  0x12   :  { %s5822_s27 = smov 0   ;;  %s5824_s28 = smov 0  }
  0x13 LB: > { %8350 = sst [smem:[#allocation8_spill]] %s5690_s21  ;;  %s4447_s29 = sadd.s32 4294967295, %s5718_s28   ;;  %s5718_s28 = sphi %s5824_s28, %s33_s28   ;;  %s5714_s27 = sphi %s5822_s27, %s8569_s27   ;;  %s5710_s26 = sphi %s5820_s26, %s8568_s26   ;;  %s5706_s25 = sphi %s5818_s25, %s8567_s25   ;;  %s5702_s24 = sphi %s5816_s24, %s8566_s24   ;;  %s5698_s23 = sphi %s5814_s23, %s8565_s23   ;;  %s5694_s22 = sphi %s5812_s22, %s8564_s22   ;;  %s5690_s21 = sphi %s5810_s21, %s8563_s21  }
  0x14   : > { %8351 = sst [smem:[#allocation9_spill]] %s5694_s22  ;;  %s4448_s30 = sadd.s32 4294967294, %s5718_s28  }
  0x15   : > { %8352 = sst [smem:[#allocation10_spill]] %s5698_s23  ;;  %s42_s0 = sadd.s32 1, %s5710_s26 }
  0x16   : > { %8353 = sst [smem:[#allocation11_spill]] %s5702_s24  ;;  %p43_p0 = scmp.ge.s32.totalorder %s42_s0, 2 }
  0x17   : > { %8354 = sst [smem:[#allocation12_spill]] %s5706_s25  ;;  %s45_s17 = sadd.s32 1, %s5714_s27 }
  0x18   : > { %8355 = sst [smem:[#allocation13_spill]] %s5710_s26  ;;  %p447_p1 = scmp.ne.s32.totalorder %s5698_s23, %s5694_s22 }
  0x19   : > { %8356 = sst [smem:[#allocation14_spill]] %s5714_s27  ;;  %p448_p2 = scmp.eq.s32.totalorder %s4447_s29, 3 }
  0x1a   : > { %8357 = sst [smem:[#allocation15_spill]] %s5718_s28  ;;  %s8571_s0 = smov (%p43_p0, %s42_s0), 0 }
  0x1b   : > { %8358 = sst [smem:[#allocation16_spill]] %s8571_s0  ;;  %s8573_s17 = smov (!%p43_p0, %s45_s17), %s5714_s27 }
  0x1c   : > { %p5859_p3 = por %p448_p2, %p447_p1  ;;  %p453_p4 = scmp.ne.s32.totalorder %s5694_s22, %s5690_s21 }
  0x1d   : > { %p47_p5 = scmp.ge.s32.totalorder %s8573_s17, 2  ;;  %p454_p6 = scmp.eq.s32.totalorder %s4448_s30, 3 }
  0x1e   : > { %s8359_s18 = scalar_select %p5859_p3, 1, 0 }
  0x1f   : > { %p4451_p7 = scmp.ge.s32.totalorder %s5718_s28, 1  ;;  %p598_p8 = scmp.lt.s32.totalorder %s5718_s28, 5 }
  0x20   : > { %8360 = sst [smem:[#allocation17_spill]] %s8359_s18  ;;  %s8575_s17 = smov (%p47_p5, %s8573_s17), 0 }
  0x21   : > { %8361 = sst [smem:[#allocation18_spill]] %s8575_s17  ;;  %p5869_p9 = por %p454_p6, %p453_p4 }
  0x22   : > { %p599_p10 = pnand %p4451_p7, %p598_p8  ;;  %s434_s20 = ssub.s32 %s5714_s27, %s8575_s17 }
  0x23   : > { %s8362_s19 = scalar_select %p5869_p9, 1, 0 }
  0x24   : > { %s437_s29 = sadd.s32 1, %s5698_s23  ;;  %p435_p11 = scmp.eq.s32.totalorder %s434_s20, 0 }
  0x25   : > { %8363 = sst [smem:[#allocation19_spill]] %s8362_s19  ;;  %602 = sbr.rel (%p599_p10) target bundleno = 2368 (0x940), region = 80 }
  0x26   : > { %s5877_s0 = scalar_select %p435_p11, %s5698_s23, %s437_s29  }
  0x28   : > { %8364 = sst [smem:[#allocation20_spill]] %s5877_s0 }
  0x2c   : > { %s5880_s30 = sand.u32 1, %s5694_s22   ;;  %p703_p12 = scmp.lt.s32.totalorder %s5706_s25, 1 }
  0x2d   : > { %8365 = sst [smem:[#allocation21_spill]] %s5880_s30  ;;  %s4452_s26 = sshll.u32 %s5880_s30, 7 }
  0x2e   : > { %s4453_s21 = sshll.u32 %s5880_s30, 9  ;;  %p712_p13 = scmp.lt.s32.totalorder %s5702_s24, 1 }
  0x2f   : > { %s704_s19 = scalar_select %p703_p12, %s5706_s25, 1 }
  0x30   : > { %s8366_s0 = sld [smem:[#allocation77_spill]]  ;;  %s8368_s1 = sld [smem:[#allocation78_spill]] }
  0x31   : > { %s4625_s17 = sshll.u32 %s704_s19, 7  ;;  %s4456_s27 = sshll.u32 %s704_s19, 2 }
  0x32   : > { %s5898_s22 = scalar_select %p712_p13, %s5702_s24, 1 }
  0x33   : > { %s8370_s5 = sld [smem:[#allocation82_spill]]  ;;  %s8371_s3 = sld [smem:[#allocation80_spill]] }
  0x34   : > { %s4999_s19 = smul.u32 192, %s5898_s22  ;;  %s8372_s4 = sld [smem:[#allocation81_spill]] }
  0x35   : > { %s4627_s28 = sshll.u32 %s5898_s22, 7  ;;  %s8374_s9 = sld [smem:[#allocation84_spill]] }
  0x36   : > { %s5890_s23 = scalar_lea.vmem %s8366_s0, %s4625_s17  ;;  %s5895_s15 = scalar_lea.vmem %s8368_s1, %s4456_s27 }
  0x37   : > { %8367 = sst [smem:[#allocation22_spill]] %s5890_s23  ;;  %s4626_s0 = sshll.u32 %s5898_s22, 6 }
  0x38   : > { %8369 = sst [smem:[#allocation23_spill]] %s5895_s15  ;;  %s5000_s17 = smul.u32 3, %s5898_s22 }
  0x39   : > { %s5906_s27 = scalar_lea.vmem %s8370_s5, %s4626_s0  ;;  %s5911_s1 = scalar_lea.vmem %s8371_s3, %s4999_s19 }
  0x3a   : > { %s5920_s23 = scalar_lea.vmem %s8372_s4, %s5000_s17  ;;  %s4462_s18 = sshll.u32 %s5898_s22, 1 }
  0x3b   : > { %s5934_s3 = scalar_lea.vmem %s8374_s9, %s4627_s28  ;;  %s5940_s2 = scalar_lea.vmem %s8226_s10, %s4462_s18 }
  0x3c   : > { %s5945_s14 = scalar_lea.vmem %s8227_s11, %s4627_s28  ;;  %s751_s16 = scalar_lea.vmem %s8228_s12, %s5898_s22 }
  0x3d   : > { %s754_s19 = scalar_lea.vmem %s8229_s13, %s5898_s22  ;;  %s8375_s9 = sld [smem:[#allocation85_spill]] }
  0x3e   : > { %s5959_s25 = scalar_lea.vmem [#allocation2], %s4452_s26  ;;  %s5961_s18 = scalar_lea.vmem [#allocation4], %s4453_s21 }
  0x3f   : > { %s8376_s30 = sld [smem:[#allocation11_spill]] }
  0x43   : > { %s757_s8 = scalar_lea.vmem %s8375_s9, %s5898_s22 }
  0x45   : > { %p4465_p0 = scmp.ne.s32.totalorder %s8376_s30, 0 }
  0x46   : > { %s8377_s28 = sld [smem:[#allocation22_spill]] (!%p4465_p0) }
  0x47   : > { %762 = sbr.rel (%p4465_p0) target bundleno = 85 (0x55), region = 84 }
  0x4c   : > { %v763_v0 = vld [vmem:[%s8377_s28] sm:$0xff] (!%p4465_p0)  ;;  %v764_v1 = vld [vmem:[%s8377_s28 + $0x8] sm:$0xff] (!%p4465_p0)  ;;  %v765_v2 = vld [vmem:[%s8377_s28 + $0x10] sm:$0xff] (!%p4465_p0) }
  0x4d   : > { %779 = vst [vmem:[%s5959_s25] sm:$0xff] (!%p4465_p0), %v763_v0  ;;  %780 = vst [vmem:[%s5959_s25 + $0x8] sm:$0xff] (!%p4465_p0), %v764_v1  ;;  %v766_v3 = vld [vmem:[%s8377_s28 + $0x18] sm:$0xff] (!%p4465_p0)  ;;  %v767_v4 = vld [vmem:[%s8377_s28 + $0x20] sm:$0xff] (!%p4465_p0) }
  0x4e   : > { %781 = vst [vmem:[%s5959_s25 + $0x10] sm:$0xff] %v765_v2  ;;  %v768_v5 = vld [vmem:[%s8377_s28 + $0x28] sm:$0xff]  ;;  %782 = vst [vmem:[%s5959_s25 + $0x18] sm:$0xff] %v766_v3  ;;  %v769_v6 = vld [vmem:[%s8377_s28 + $0x30] sm:$0xff] }
  0x4f   : > { %783 = vst [vmem:[%s5959_s25 + $0x20] sm:$0xff] %v767_v4  ;;  %784 = vst [vmem:[%s5959_s25 + $0x28] sm:$0xff] %v768_v5  ;;  %v770_v7 = vld [vmem:[%s8377_s28 + $0x38] sm:$0xff]  ;;  %v771_v8 = vld [vmem:[%s8377_s28 + $0x40] sm:$0xff] }
  0x50   : > { %785 = vst [vmem:[%s5959_s25 + $0x30] sm:$0xff] %v769_v6  ;;  %786 = vst [vmem:[%s5959_s25 + $0x38] sm:$0xff] %v770_v7  ;;  %v772_v9 = vld [vmem:[%s8377_s28 + $0x48] sm:$0xff]  ;;  %v773_v10 = vld [vmem:[%s8377_s28 + $0x50] sm:$0xff] }
  0x51   : > { %787 = vst [vmem:[%s5959_s25 + $0x40] sm:$0xff] %v771_v8  ;;  %v774_v11 = vld [vmem:[%s8377_s28 + $0x58] sm:$0xff]  ;;  %788 = vst [vmem:[%s5959_s25 + $0x48] sm:$0xff] %v772_v9  ;;  %v775_v12 = vld [vmem:[%s8377_s28 + $0x60] sm:$0xff] }
  0x52   : > { %789 = vst [vmem:[%s5959_s25 + $0x50] sm:$0xff] %v773_v10  ;;  %790 = vst [vmem:[%s5959_s25 + $0x58] sm:$0xff] %v774_v11  ;;  %v776_v13 = vld [vmem:[%s8377_s28 + $0x68] sm:$0xff]  ;;  %v777_v14 = vld [vmem:[%s8377_s28 + $0x70] sm:$0xff] }
  0x53   : > { %791 = vst [vmem:[%s5959_s25 + $0x60] sm:$0xff] %v775_v12  ;;  %792 = vst [vmem:[%s5959_s25 + $0x68] sm:$0xff] %v776_v13  ;;  %v778_v15 = vld [vmem:[%s8377_s28 + $0x78] sm:$0xff] }
  0x54   : > { %793 = vst [vmem:[%s5959_s25 + $0x70] sm:$0xff] %v777_v14  ;;  %794 = vst [vmem:[%s5959_s25 + $0x78] sm:$0xff] %v778_v15 }
  0x55 PF: > { %v5080_v16 = vld [vmem:[%s5911_s1 + $0x4] ss:$12 sps:$4 sm:$0xff]   ;;  %v5082_v17 = vld [vmem:[%s5911_s1] ss:$12 sps:$4 sm:$0xff]   ;;  %v8253_v18 = vmov 0   ;;  %v853_v1 = vlaneseq  ;;  %s8380_s5 = sld [smem:[#allocation79_spill]]  ;;  %s8499_s0 = scalar_lea.vmem %s8222_s6, %s5898_s22 }
  0x56   : > { %1028 = vmatprep.mubr.bf16.mxu0 %v8253_v18  ;;  %996 = vmatprep.subr.bf16.mxu0 %v5080_v16  ;;  %v5083_v19 = vld [vmem:[%s5911_s1 + $0x1c] ss:$12 sps:$4 sm:$0xff]   ;;  %v5085_v20 = vld [vmem:[%s5911_s1 + $0x18] ss:$12 sps:$4 sm:$0xff]   ;;  %v5086_v21 = vld [vmem:[%s5911_s1 + $0x34] ss:$12 sps:$4 sm:$0xff]   ;;  %s8500_s30 = scalar_lea.vmem %s8223_s7, %s5898_s22 }
  0x57   : > { %997 = vmatpush1.bf16.msra.mxu0 %v5082_v17  ;;  %v5088_v22 = vld [vmem:[%s5911_s1 + $0x30] ss:$12 sps:$4 sm:$0xff]   ;;  %v5089_v23 = vld [vmem:[%s5911_s1 + $0x4c] ss:$12 sps:$4 sm:$0xff]   ;;  %v5091_v25 = vld [vmem:[%s5911_s1 + $0x48] ss:$12 sps:$4 sm:$0xff]  }
  0x58   : > { %998 = vmatprep.subr.bf16.mxu0 %v5083_v19  ;;  %v5092_v27 = vld [vmem:[%s5911_s1 + $0x64] ss:$12 sps:$4 sm:$0xff]   ;;  %v5094_v29 = vld [vmem:[%s5911_s1 + $0x60] ss:$12 sps:$4 sm:$0xff]   ;;  %v5095_v30 = vld [vmem:[%s5911_s1 + $0x7c] ss:$12 sps:$4 sm:$0xff]  }
  0x59   : > { %v5104_v31 = vld [vmem:[%s5911_s1 + $0x8] ss:$12 sps:$4 sm:$0xff]   ;;  %v5105_v32 = vld [vmem:[%s5911_s1 + $0x20] ss:$12 sps:$4 sm:$0xff]   ;;  %v5097_v33 = vld [vmem:[%s5911_s1 + $0x78] ss:$12 sps:$4 sm:$0xff]  }
  0x5a   : > { %4919 = vmatprep.subr.bf16.mxu1 %v5104_v31  ;;  %v5098_v34 = vld [vmem:[%s5911_s1 + $0x94] ss:$12 sps:$4 sm:$0xff]   ;;  %v5106_v35 = vld [vmem:[%s5911_s1 + $0x38] ss:$12 sps:$4 sm:$0xff]   ;;  %v5100_v36 = vld [vmem:[%s5911_s1 + $0x90] ss:$12 sps:$4 sm:$0xff]  }
  0x5b   : > { %999 = vmatpush1.bf16.msra.mxu0 %v5085_v20  ;;  %v795_v24 = vld [vmem:[%s5959_s25] sm:$0xff]  ;;  %v796_v26 = vld [vmem:[%s5959_s25 + $0x8] sm:$0xff]  ;;  %4920 = vmatpush3.bf16.msra.mxu1 %v5104_v31  ;;  %v5107_v38 = vld [vmem:[%s5911_s1 + $0x50] ss:$12 sps:$4 sm:$0xff]   ;;  %v6044_v2 = vshrl.u32 %v853_v1, 7  ;;  %s8381_s17 = sld [smem:[#allocation23_spill]] }
  0x5c   : > { %1000 = vmatprep.subr.bf16.mxu0 %v5086_v21  ;;  %v811_v28 = vpack.c.bf16 %v796_v26, %v795_v24  ;;  %4921 = vmatprep.subr.bf16.mxu1 %v5105_v32  ;;  %v5101_v37 = vld [vmem:[%s5911_s1 + $0xac] ss:$12 sps:$4 sm:$0xff]   ;;  %v5103_v39 = vld [vmem:[%s5911_s1 + $0xa8] ss:$12 sps:$4 sm:$0xff]   ;;  %v5111_v46 = vld [vmem:[%s5911_s1 + $0xb0] ss:$12 sps:$4 sm:$0xff]  }
  0x5d   : > { %v5108_v40 = vld [vmem:[%s5911_s1 + $0x68] ss:$12 sps:$4 sm:$0xff]   ;;  %v5109_v41 = vld [vmem:[%s5911_s1 + $0x80] ss:$12 sps:$4 sm:$0xff]   ;;  %v798_v43 = vld [vmem:[%s5959_s25 + $0x18] sm:$0xff]  ;;  %v6047_v3 = vsub.s32 0, %v6044_v2 }
  0x5e   : > { %4935 = vmatprep.mubr.bf16.mxu1 %v811_v28  ;;  %v797_v42 = vld [vmem:[%s5959_s25 + $0x10] sm:$0xff]  ;;  %v5110_v44 = vld [vmem:[%s5911_s1 + $0x98] ss:$12 sps:$4 sm:$0xff]   ;;  %v800_v48 = vld [vmem:[%s5959_s25 + $0x28] sm:$0xff]  ;;  %v6051_v5 = vsub.s32 1, %v6044_v2  ;;  %v8255_v31 = vsub.s32 2, %v6044_v2 }
  0x5f   : > { %1001 = vmatpush1.bf16.msra.mxu0 %v5088_v22  ;;  %4922 = vmatpush3.bf16.msra.mxu1 %v5105_v32  ;;  %v812_v45 = vpack.c.bf16 %v798_v43, %v797_v42  ;;  %v799_v47 = vld [vmem:[%s5959_s25 + $0x20] sm:$0xff]  ;;  %v801_v50 = vld [vmem:[%s5959_s25 + $0x30] sm:$0xff]  ;;  %v802_v51 = vld [vmem:[%s5959_s25 + $0x38] sm:$0xff]  ;;  %8378 = vst [vmem:[#allocation24_spill] sm:$0xff] %v6047_v3  ;;  %s8501_s4 = sld [smem:[#allocation83_spill]] }
  0x60   : > { %1002 = vmatprep.subr.bf16.mxu0 %v5089_v23  ;;  %4923 = vmatprep.subr.bf16.mxu1 %v5106_v35  ;;  %v813_v49 = vpack.c.bf16 %v800_v48, %v799_v47  ;;  %v803_v52 = vld [vmem:[%s5959_s25 + $0x40] sm:$0xff]  ;;  %v804_v53 = vld [vmem:[%s5959_s25 + $0x48] sm:$0xff]  ;;  %v814_v54 = vpack.c.bf16 %v802_v51, %v801_v50  ;;  %v805_v56 = vld [vmem:[%s5959_s25 + $0x50] sm:$0xff]  ;;  %8379 = vst [vmem:[#allocation25_spill] sm:$0xff] %v6051_v5 }
  0x61   : > { %v815_v55 = vpack.c.bf16 %v804_v53, %v803_v52  ;;  %v806_v57 = vld [vmem:[%s5959_s25 + $0x58] sm:$0xff]  ;;  %v807_v58 = vld [vmem:[%s5959_s25 + $0x60] sm:$0xff]  ;;  %v808_v59 = vld [vmem:[%s5959_s25 + $0x68] sm:$0xff] }
  0x62   : > { %v816_v60 = vpack.c.bf16 %v806_v57, %v805_v56  ;;  %v817_v61 = vpack.c.bf16 %v808_v59, %v807_v58  ;;  %v809_v62 = vld [vmem:[%s5959_s25 + $0x70] sm:$0xff]  ;;  %v810_v63 = vld [vmem:[%s5959_s25 + $0x78] sm:$0xff]  ;;  %v851_v4 = vld [vmem:[%s5920_s23] sm:$0x7] }
  0x63   : > { %1003 = vmatpush1.bf16.msra.mxu0 %v5091_v25  ;;  %4924 = vmatpush3.bf16.msra.mxu1 %v5106_v35  ;;  %v818_v0 = vpack.c.bf16 %v810_v63, %v809_v62  ;;  %v6054_v6 = vrot.slane %v851_v4, %v6047_v3  ;;  %v6057_v8 = vrot.slane %v851_v4, %v6051_v5  ;;  %v6064_v14 = vld [vmem:[%s8380_s5 + $0x40] sm:$0xff]   ;;  %v6133_v58 = vld [vmem:[%s8380_s5 + $0x50] sm:$0xff]  }
  0x64   : > { %1004 = vmatprep.subr.bf16.mxu0 %v5092_v27  ;;  %4925 = vmatprep.subr.bf16.mxu1 %v5107_v38  ;;  %v6071_v17 = vld [vmem:[%s8380_s5 + $0xc0] sm:$0xff]   ;;  %v6120_v42 = vrot.slane %v851_v4, %v8255_v31  ;;  %v6141_v63 = vld [vmem:[%s8380_s5 + $0xd0] sm:$0xff]  }
  0x65   : > { %v6076_v19 = vld [vmem:[%s8380_s5] sm:$0xff]   ;;  %v6151_v1 = vld [vmem:[%s8380_s5 + $0x90] sm:$0xff]   ;;  %s8502_s9 = scalar_lea.vmem %s8501_s4, %s5898_s22 }
  0x66   : > { %v6081_v20 = vld [vmem:[%s8380_s5 + $0x80] sm:$0xff]  }
  0x67   : > { %1005 = vmatpush1.bf16.msra.mxu0 %v5094_v29  ;;  %4926 = vmatpush3.bf16.msra.mxu1 %v5107_v38  ;;  %v6109_v38 = vld [vmem:[%s8380_s5 + $0x8] sm:$0xff]  }
  0x68   : > { %1006 = vmatprep.subr.bf16.mxu0 %v5095_v30  ;;  %4927 = vmatprep.subr.bf16.mxu1 %v5108_v40 }
  0x6b   : > { %1007 = vmatpush1.bf16.msra.mxu0 %v5097_v33  ;;  %4928 = vmatpush3.bf16.msra.mxu1 %v5108_v40 }
  0x6c   : > { %1008 = vmatprep.subr.bf16.mxu0 %v5098_v34  ;;  %4929 = vmatprep.subr.bf16.mxu1 %v5109_v41  ;;  %v6097_v34 = vld [vmem:[%s8380_s5 + $0x48] sm:$0xff]  }
  0x6f   : > { %1009 = vmatpush1.bf16.msra.mxu0 %v5100_v36  ;;  %4930 = vmatpush3.bf16.msra.mxu1 %v5109_v41 }
  0x70   : > { %1010 = vmatprep.subr.bf16.mxu0 %v5101_v37  ;;  %4931 = vmatprep.subr.bf16.mxu1 %v5110_v44  ;;  %v6104_v37 = vld [vmem:[%s8380_s5 + $0xc8] sm:$0xff]  }
  0x73   : > { %1011 = vmatpush1.bf16.msra.mxu0 %v5103_v39  ;;  %4932 = vmatpush3.bf16.msra.mxu1 %v5110_v44  ;;  %v6114_v39 = vld [vmem:[%s8380_s5 + $0x88] sm:$0xff]  }
  0x74   : > { %4933 = vmatprep.subr.bf16.mxu1 %v5111_v46 }
  0x76   : > { %1029 = vmatmul.mubr.bf16.vlgmr.msra.gmra.mrb[0].mxu0 %v811_v28 }
  0x77   : > { %1038 = vmatprep.mubr.bf16.mxu0 %v8253_v18  ;;  %4934 = vmatpush3.bf16.msra.mxu1 %v5111_v46 }
  0x7a   : > { %4936 = vmatmul.mubr.bf16.vlgmr.msra.gmra.mrb[0].mxu1 %v812_v45 }
  0x7b   : > { %4939 = vmatprep.mubr.bf16.mxu1 %v813_v49 }
  0x7e   : > { %1039 = vmatmul.mubr.bf16.gmra.mrb[4].mxu0 %v812_v45 }
  0x7f   : > { %1048 = vmatprep.mubr.bf16.mxu0 %v8253_v18 }
  0x82   : > { %4940 = vmatmul.mubr.bf16.gmra.mrb[4].mxu1 %v814_v54 }
  0x83   : > { %4943 = vmatprep.mubr.bf16.mxu1 %v815_v55 }
  0x86   : > { %1049 = vmatmul.mubr.bf16.gmra.mrb[8].mxu0 %v813_v49 }
  0x87   : > { %1058 = vmatprep.mubr.bf16.mxu0 %v8253_v18 }
  0x8a   : > { %4944 = vmatmul.mubr.bf16.gmra.mrb[8].mxu1 %v816_v60 }
  0x8b   : > { %4947 = vmatprep.mubr.bf16.mxu1 %v817_v61 }
  0x8e   : > { %1059 = vmatmul.mubr.bf16.gmra.mrb[12].mxu0 %v814_v54 }
  0x8f   : > { %1068 = vmatprep.mubr.bf16.mxu0 %v8253_v18 }
  0x92   : > { %4948 = vmatmul.mubr.bf16.gmra.mrb[12].mxu1 %v818_v0 }
  0x96   : > { %1069 = vmatmul.mubr.bf16.gmra.mrb[16].mxu0 %v815_v55 }
  0x97   : > { %1078 = vmatprep.mubr.bf16.mxu0 %v8253_v18 }
  0x9e   : > { %1079 = vmatmul.mubr.bf16.gmra.mrb[20].mxu0 %v816_v60 }
  0x9f   : > { %1088 = vmatprep.mubr.bf16.mxu0 %v8253_v18 }
  0xa6   : > { %1089 = vmatmul.mubr.bf16.gmra.mrb[24].mxu0 %v817_v61 }
  0xa7   : > { %1098 = vmatprep.mubr.bf16.mxu0 %v8253_v18 }
  0xae   : > { %1099 = vmatmul.mubr.bf16.gmra.mrb[28].mxu0 %v818_v0  ;;  %v6146_v0 = vld [vmem:[%s8380_s5 + $0x10] sm:$0xff]  }
 0x149   : > { %v1030_v7 = vpop.f32.mrb[0].mxu0 }
 0x14a   : > { %v1032_v9 = vpop.f32.mrb[1].mxu0  ;;  %v1031_v11 = vadd.f32 %v1030_v7, %v6054_v6 }
 0x14b   : > { %v1034_v10 = vpop.f32.mrb[2].mxu0  ;;  %v1033_v15 = vadd.f32 %v1032_v9, %v6057_v8 }
 0x14c   : > { %v1035_v12 = vadd.f32 %v1034_v10, %v6054_v6  ;;  %v1036_v13 = vpop.f32.mrb[3].mxu0 }
 0x14d   : > { %v1037_v16 = vadd.f32 %v1036_v13, %v6057_v8  ;;  %v4937_v48 = vpop.f32.mrb[0].mxu1 }
 0x14e   : > { %v6083_v21 = vpack.c.bf16 %v1035_v12, %v1031_v11  ;;  %v1152_v51 = vadd.f32 %v4937_v48, %v6120_v42  ;;  %v1143_v52 = vpop.f32.mrb[1].mxu1  ;;  %v6188_v48 = vld [vmem:[%s8380_s5 + $0x18] sm:$0xff]  }
 0x14f   : > { %v1207_v22 = vpack.c.bf16 %v1037_v16, %v1033_v15  ;;  %v1144_v54 = vadd.f32 %v1143_v52, %v6120_v42  ;;  %v4938_v55 = vpop.f32.mrb[2].mxu1 }
 0x150   : > { %4663 = vmatprep.mubr.bf16.mxu0 %v6083_v21  ;;  %4695 = vmatprep.mubr.bf16.mxu1 %v6083_v21  ;;  %v1155_v59 = vadd.f32 %v4938_v55, %v6120_v42  ;;  %v1146_v60 = vpop.f32.mrb[3].mxu1 }
 0x151   : > { %v1040_v23 = vpop.f32.mrb[4].mxu0  ;;  %v1494_v24 = vmul.bf16 %v6064_v14, %v1207_v22  ;;  %v1510_v25 = vmul.bf16 %v6071_v17, %v1207_v22  ;;  %v1486_v26 = vmul.bf16 %v6076_v19, %v1207_v22  ;;  %v1502_v27 = vmul.bf16 %v6081_v20, %v1207_v22 }
 0x152   : > { %v1041_v28 = vadd.f32 %v1040_v23, %v6054_v6  ;;  %v1042_v29 = vpop.f32.mrb[5].mxu0  ;;  %v1147_v4 = vadd.f32 %v1146_v60, %v6120_v42  ;;  %v6156_v9 = vpack.c.bf16 %v1155_v59, %v1152_v51 }
 0x153   : > { %v1044_v30 = vpop.f32.mrb[6].mxu0  ;;  %4647 = vmatprep.subr.bf16.mxu0 %v1494_v24  ;;  %4679 = vmatprep.subr.bf16.mxu1 %v1510_v25  ;;  %v1043_v35 = vadd.f32 %v1042_v29, %v6057_v8 }
 0x154   : > { %v1045_v32 = vadd.f32 %v1044_v30, %v6054_v6  ;;  %v1046_v33 = vpop.f32.mrb[7].mxu0  ;;  %4648 = vmatpush3.bf16.xpose.msra.mxu0 %v1486_v26  ;;  %4680 = vmatpush3.bf16.xpose.msra.mxu1 %v1502_v27  ;;  %v6158_v11 = vpack.c.bf16 %v1147_v4, %v1144_v54 }
 0x155   : > { %v1047_v36 = vadd.f32 %v1046_v33, %v6057_v8  ;;  %v4941_v23 = vpop.f32.mrb[4].mxu1 }
 0x156   : > { %v6116_v40 = vpack.c.bf16 %v1045_v32, %v1041_v28  ;;  %v1518_v26 = vmul.bf16 %v6076_v19, %v6158_v11  ;;  %v1159_v27 = vpop.f32.mrb[5].mxu1  ;;  %v1534_v29 = vmul.bf16 %v6081_v20, %v6158_v11  ;;  %v1168_v30 = vadd.f32 %v4941_v23, %v6120_v42 }
 0x157   : > { %v1210_v41 = vpack.c.bf16 %v1047_v36, %v1043_v35  ;;  %v4942_v32 = vpop.f32.mrb[6].mxu1  ;;  %v6174_v36 = vld [vmem:[%s8380_s5 + $0x58] sm:$0xff]  }
 0x159   : > { %v1050_v43 = vpop.f32.mrb[8].mxu0  ;;  %v1495_v44 = vmul.bf16 %v6097_v34, %v1210_v41  ;;  %v1511_v45 = vmul.bf16 %v6104_v37, %v1210_v41  ;;  %v1487_v46 = vmul.bf16 %v6109_v38, %v1210_v41  ;;  %v1503_v47 = vmul.bf16 %v6114_v39, %v1210_v41 }
 0x15a   : > { %v1051_v49 = vadd.f32 %v1050_v43, %v6054_v6  ;;  %v1052_v50 = vpop.f32.mrb[9].mxu0  ;;  %v1160_v41 = vadd.f32 %v1159_v27, %v6120_v42  ;;  %v1171_v43 = vadd.f32 %v4942_v32, %v6120_v42  ;;  %v6221_v32 = vld [vmem:[%s8380_s5 + $0xe0] sm:$0xff]  }
 0x15b   : > { %v1054_v53 = vpop.f32.mrb[10].mxu0  ;;  %4649 = vmatprep.subr.bf16.mxu0 %v1495_v44  ;;  %4681 = vmatprep.subr.bf16.mxu1 %v1511_v45  ;;  %v1053_v61 = vadd.f32 %v1052_v50, %v6057_v8  ;;  %v1162_v44 = vpop.f32.mrb[7].mxu1 }
 0x15c   : > { %v1055_v56 = vadd.f32 %v1054_v53, %v6054_v6  ;;  %v1056_v57 = vpop.f32.mrb[11].mxu0  ;;  %4650 = vmatpush3.bf16.xpose.msra.mxu0 %v1487_v46  ;;  %4682 = vmatpush3.bf16.xpose.msra.mxu1 %v1503_v47  ;;  %v6183_v47 = vld [vmem:[%s8380_s5 + $0xd8] sm:$0xff]   ;;  %v1163_v50 = vadd.f32 %v1162_v44, %v6120_v42  ;;  %v6198_v52 = vpack.c.bf16 %v1171_v43, %v1168_v30 }
 0x15d   : > { %v1057_v62 = vadd.f32 %v1056_v57, %v6057_v8 }
 0x15e   : > { %v6154_v7 = vpack.c.bf16 %v1055_v56, %v1051_v49  ;;  %v6193_v49 = vld [vmem:[%s8380_s5 + $0x98] sm:$0xff]   ;;  %v6200_v54 = vpack.c.bf16 %v1163_v50, %v1160_v41 }
 0x15f   : > { %v1213_v10 = vpack.c.bf16 %v1057_v62, %v1053_v61  ;;  %v4945_v61 = vpop.f32.mrb[8].mxu1 }
 0x160   : > { %v1520_v19 = vmul.bf16 %v6146_v0, %v6200_v54  ;;  %v1536_v20 = vmul.bf16 %v6151_v1, %v6200_v54 }
 0x161   : > { %v1060_v12 = vpop.f32.mrb[12].mxu0  ;;  %v1496_v13 = vmul.bf16 %v6133_v58, %v1213_v10  ;;  %v1512_v15 = vmul.bf16 %v6141_v63, %v1213_v10  ;;  %v1488_v16 = vmul.bf16 %v6146_v0, %v1213_v10  ;;  %v1504_v22 = vmul.bf16 %v6151_v1, %v1213_v10 }
 0x162   : > { %v1061_v24 = vadd.f32 %v1060_v12, %v6054_v6  ;;  %v1062_v25 = vpop.f32.mrb[13].mxu0  ;;  %v1184_v10 = vadd.f32 %v4945_v61, %v6120_v42  ;;  %v1175_v12 = vpop.f32.mrb[9].mxu1 }
 0x163   : > { %v1064_v28 = vpop.f32.mrb[14].mxu0  ;;  %4651 = vmatprep.subr.bf16.mxu0 %v1496_v13  ;;  %4683 = vmatprep.subr.bf16.mxu1 %v1512_v15  ;;  %v1063_v45 = vadd.f32 %v1062_v25, %v6057_v8  ;;  %v1176_v15 = vadd.f32 %v1175_v12, %v6120_v42 }
 0x164   : > { %v1065_v33 = vadd.f32 %v1064_v28, %v6054_v6  ;;  %v1066_v35 = vpop.f32.mrb[15].mxu0  ;;  %4652 = vmatpush3.bf16.xpose.msra.mxu0 %v1488_v16  ;;  %4684 = vmatpush3.bf16.xpose.msra.mxu1 %v1504_v22  ;;  %v4946_v16 = vpop.f32.mrb[10].mxu1 }
 0x165   : > { %v1067_v46 = vadd.f32 %v1066_v35, %v6057_v8  ;;  %v1187_v25 = vadd.f32 %v4946_v16, %v6120_v42  ;;  %v1178_v27 = vpop.f32.mrb[11].mxu1  ;;  %v6231_v35 = vld [vmem:[%s8380_s5 + $0xa0] sm:$0xff]  }
 0x166   : > { %v6196_v51 = vpack.c.bf16 %v1065_v33, %v1061_v24  ;;  %v6213_v24 = vld [vmem:[%s8380_s5 + $0x60] sm:$0xff]   ;;  %v1179_v41 = vadd.f32 %v1178_v27, %v6120_v42 }
 0x167   : > { %v1216_v53 = vpack.c.bf16 %v1067_v46, %v1063_v45  ;;  %v6226_v33 = vld [vmem:[%s8380_s5 + $0x20] sm:$0xff]   ;;  %v6236_v44 = vpack.c.bf16 %v1187_v25, %v1184_v10 }
 0x168   : > { %v6238_v46 = vpack.c.bf16 %v1179_v41, %v1176_v15  ;;  %v6264_v41 = vld [vmem:[%s8380_s5 + $0x28] sm:$0xff]  }
 0x169   : > { %v1070_v55 = vpop.f32.mrb[16].mxu0  ;;  %v1497_v56 = vmul.bf16 %v6174_v36, %v1216_v53  ;;  %v1513_v57 = vmul.bf16 %v6183_v47, %v1216_v53  ;;  %v1489_v59 = vmul.bf16 %v6188_v48, %v1216_v53  ;;  %v1505_v60 = vmul.bf16 %v6193_v49, %v1216_v53 }
 0x16a   : > { %v1071_v62 = vadd.f32 %v1070_v55, %v6054_v6  ;;  %v1072_v4 = vpop.f32.mrb[17].mxu0  ;;  %v1530_v0 = vmul.bf16 %v6213_v24, %v6238_v46  ;;  %v1522_v1 = vmul.bf16 %v6226_v33, %v6238_v46 }
 0x16b   : > { %v1074_v13 = vpop.f32.mrb[18].mxu0  ;;  %4653 = vmatprep.subr.bf16.mxu0 %v1497_v56  ;;  %4685 = vmatprep.subr.bf16.mxu1 %v1513_v57  ;;  %v1073_v28 = vadd.f32 %v1072_v4, %v6057_v8 }
 0x16c   : > { %v1075_v22 = vadd.f32 %v1074_v13, %v6054_v6  ;;  %v1076_v23 = vpop.f32.mrb[19].mxu0  ;;  %4654 = vmatpush3.bf16.xpose.msra.mxu0 %v1489_v59  ;;  %4686 = vmatpush3.bf16.xpose.msra.mxu1 %v1505_v60  ;;  %v4949_v59 = vpop.f32.mrb[12].mxu1 }
 0x16d   : > { %v1077_v30 = vadd.f32 %v1076_v23, %v6057_v8  ;;  %v1191_v4 = vpop.f32.mrb[13].mxu1 }
 0x16e   : > { %v6234_v43 = vpack.c.bf16 %v1075_v22, %v1071_v62  ;;  %v1200_v62 = vadd.f32 %v4949_v59, %v6120_v42  ;;  %v1192_v12 = vadd.f32 %v1191_v4, %v6120_v42  ;;  %v4950_v13 = vpop.f32.mrb[14].mxu1  ;;  %v6251_v22 = vld [vmem:[%s8380_s5 + $0x68] sm:$0xff]  }
 0x16f   : > { %v1219_v45 = vpack.c.bf16 %v1077_v30, %v1073_v28  ;;  %v1203_v23 = vadd.f32 %v4950_v13, %v6120_v42  ;;  %v1194_v25 = vpop.f32.mrb[15].mxu1  ;;  %v6259_v30 = vld [vmem:[%s8380_s5 + $0xe8] sm:$0xff]  }
 0x171   : > { %v1080_v50 = vpop.f32.mrb[20].mxu0  ;;  %v1498_v53 = vmul.bf16 %v6213_v24, %v1219_v45  ;;  %v1514_v55 = vmul.bf16 %v6221_v32, %v1219_v45  ;;  %v1490_v56 = vmul.bf16 %v6226_v33, %v1219_v45  ;;  %v1506_v57 = vmul.bf16 %v6231_v35, %v1219_v45  ;;  %v6269_v45 = vld [vmem:[%s8380_s5 + $0xa8] sm:$0xff]  }
 0x172   : > { %v1081_v60 = vadd.f32 %v1080_v50, %v6054_v6  ;;  %v1082_v61 = vpop.f32.mrb[21].mxu0  ;;  %v1195_v50 = vadd.f32 %v1194_v25, %v6120_v42  ;;  %v6294_v25 = vld [vmem:[%s8380_s5 + $0xf0] sm:$0xff]   ;;  %v1566_v33 = vsub.s32 3, %v6044_v2 }
 0x173   : > { %v1084_v10 = vpop.f32.mrb[22].mxu0  ;;  %4655 = vmatprep.subr.bf16.mxu0 %v1498_v53  ;;  %4687 = vmatprep.subr.bf16.mxu1 %v1514_v55  ;;  %v1083_v27 = vadd.f32 %v1082_v61, %v6057_v8  ;;  %v6274_v55 = vpack.c.bf16 %v1203_v23, %v1200_v62 }
 0x174   : > { %v1085_v15 = vadd.f32 %v1084_v10, %v6054_v6  ;;  %v1086_v16 = vpop.f32.mrb[23].mxu0  ;;  %4656 = vmatpush3.bf16.xpose.msra.mxu0 %v1490_v56  ;;  %4688 = vmatpush3.bf16.xpose.msra.mxu1 %v1506_v57  ;;  %v6276_v57 = vpack.c.bf16 %v1195_v50, %v1192_v12  ;;  %v6287_v12 = vld [vmem:[%s8380_s5 + $0x70] sm:$0xff]  }
 0x175   : > { %v1087_v28 = vadd.f32 %v1086_v16, %v6057_v8 }
 0x176   : > { %v6272_v53 = vpack.c.bf16 %v1085_v15, %v1081_v60 }
 0x177   : > { %v1222_v56 = vpack.c.bf16 %v1087_v28, %v1083_v27  ;;  %v6299_v27 = vld [vmem:[%s8380_s5 + $0x30] sm:$0xff]  }
 0x178   : > { %v6304_v28 = vld [vmem:[%s8380_s5 + $0xb0] sm:$0xff]  }
 0x179   : > { %v1090_v59 = vpop.f32.mrb[24].mxu0  ;;  %v1499_v61 = vmul.bf16 %v6251_v22, %v1222_v56  ;;  %v1515_v4 = vmul.bf16 %v6259_v30, %v1222_v56  ;;  %v1491_v10 = vmul.bf16 %v6264_v41, %v1222_v56  ;;  %v1507_v13 = vmul.bf16 %v6269_v45, %v1222_v56 }
 0x17a   : > { %v1091_v16 = vadd.f32 %v1090_v59, %v6054_v6  ;;  %v1092_v18 = vpop.f32.mrb[25].mxu0 }
 0x17b   : > { %v1094_v42 = vpop.f32.mrb[26].mxu0  ;;  %4657 = vmatprep.subr.bf16.mxu0 %v1499_v61  ;;  %4689 = vmatprep.subr.bf16.mxu1 %v1515_v4  ;;  %v1093_v15 = vadd.f32 %v1092_v18, %v6057_v8 }
 0x17c   : > { %v1095_v60 = vadd.f32 %v1094_v42, %v6054_v6  ;;  %v1096_v62 = vpop.f32.mrb[27].mxu0  ;;  %4658 = vmatpush3.bf16.xpose.msra.mxu0 %v1491_v10  ;;  %4690 = vmatpush3.bf16.xpose.msra.mxu1 %v1507_v13 }
 0x17d   : > { %v1097_v23 = vadd.f32 %v1096_v62, %v6057_v8 }
 0x17e   : > { %v6306_v50 = vpack.c.bf16 %v1095_v60, %v1091_v16  ;;  %v6317_v60 = vld [vmem:[%s8380_s5 + $0x78] sm:$0xff]  }
 0x17f   : > { %v1225_v18 = vpack.c.bf16 %v1097_v23, %v1093_v15 }
 0x181   : > { %v1100_v56 = vpop.f32.mrb[28].mxu0  ;;  %v1500_v59 = vmul.bf16 %v6287_v12, %v1225_v18  ;;  %v1516_v61 = vmul.bf16 %v6294_v25, %v1225_v18  ;;  %v1492_v4 = vmul.bf16 %v6299_v27, %v1225_v18  ;;  %v1508_v10 = vmul.bf16 %v6304_v28, %v1225_v18  ;;  %v6324_v18 = vld [vmem:[%s8380_s5 + $0xf8] sm:$0xff]  }
 0x182   : > { %v1101_v13 = vadd.f32 %v1100_v56, %v6054_v6  ;;  %v1102_v42 = vpop.f32.mrb[29].mxu0  ;;  %v6334_v56 = vld [vmem:[%s8380_s5 + $0xb8] sm:$0xff]  }
 0x183   : > { %v1104_v62 = vpop.f32.mrb[30].mxu0  ;;  %4659 = vmatprep.subr.bf16.mxu0 %v1500_v59  ;;  %4691 = vmatprep.subr.bf16.mxu1 %v1516_v61  ;;  %v1103_v15 = vadd.f32 %v1102_v42, %v6057_v8 }
 0x184   : > { %v1105_v31 = vadd.f32 %v1104_v62, %v6054_v6  ;;  %v1106_v16 = vpop.f32.mrb[31].mxu0  ;;  %4660 = vmatpush3.bf16.xpose.msra.mxu0 %v1492_v4  ;;  %4692 = vmatpush3.bf16.xpose.msra.mxu1 %v1508_v10  ;;  %v6329_v6 = vld [vmem:[%s8380_s5 + $0x38] sm:$0xff]   ;;  %v1542_v4 = vmul.bf16 %v6071_v17, %v6158_v11  ;;  %v1543_v17 = vmul.bf16 %v6104_v37, %v6156_v9 }
 0x185   : > { %v1107_v23 = vadd.f32 %v1106_v16, %v6057_v8  ;;  %v1526_v8 = vmul.bf16 %v6064_v14, %v6158_v11  ;;  %v1527_v14 = vmul.bf16 %v6097_v34, %v6156_v9  ;;  %v1535_v34 = vmul.bf16 %v6114_v39, %v6156_v9 }
 0x186   : > { %v6336_v59 = vpack.c.bf16 %v1105_v31, %v1101_v13  ;;  %v1519_v31 = vmul.bf16 %v6109_v38, %v6156_v9  ;;  %v1544_v37 = vmul.bf16 %v6141_v63, %v6200_v54  ;;  %v1529_v38 = vmul.bf16 %v6174_v36, %v6198_v52 }
 0x187   : > { %v1228_v61 = vpack.c.bf16 %v1107_v23, %v1103_v15  ;;  %v1545_v39 = vmul.bf16 %v6183_v47, %v6198_v52  ;;  %v1537_v63 = vmul.bf16 %v6193_v49, %v6198_v52  ;;  %v1538_v9 = vmul.bf16 %v6231_v35, %v6238_v46 }
 0x188   : > { %v1531_v11 = vmul.bf16 %v6251_v22, %v6236_v44  ;;  %v1539_v36 = vmul.bf16 %v6269_v45, %v6236_v44  ;;  %v1532_v47 = vmul.bf16 %v6287_v12, %v6276_v57  ;;  %v1540_v49 = vmul.bf16 %v6304_v28, %v6276_v57 }
 0x189   : > { %v1501_v10 = vmul.bf16 %v6317_v60, %v1228_v61  ;;  %v1517_v42 = vmul.bf16 %v6324_v18, %v1228_v61  ;;  %v1493_v62 = vmul.bf16 %v6329_v6, %v1228_v61  ;;  %v1509_v16 = vmul.bf16 %v6334_v56, %v1228_v61 }
 0x18a   : > { %v1525_v24 = vmul.bf16 %v6329_v6, %v6274_v55 }
 0x18b   : > { %4661 = vmatprep.subr.bf16.mxu0 %v1501_v10  ;;  %4693 = vmatprep.subr.bf16.mxu1 %v1517_v42 }
 0x18c   : > { %4662 = vmatpush3.bf16.xpose.msra.mxu0 %v1493_v62  ;;  %4694 = vmatpush3.bf16.xpose.msra.mxu1 %v1509_v16 }
 0x18d   : > { %4711 = vmatprep.subr.bf16.mxu0 %v1526_v8  ;;  %4775 = vmatprep.subr.bf16.mxu1 %v1542_v4 }
 0x193   : > { %4664 = vmatmul.mubr.bf16.vlgmr.msra.gmra.mrb[32].mxu0 %v6083_v21  ;;  %4696 = vmatmul.mubr.bf16.vlgmr.msra.gmra.mrb[16].mxu1 %v6083_v21  ;;  %v1528_v21 = vmul.bf16 %v6133_v58, %v6200_v54  ;;  %v1521_v58 = vmul.bf16 %v6188_v48, %v6198_v52  ;;  %v1524_v48 = vmul.bf16 %v6299_v27, %v6276_v57 }
 0x194   : > { %4665 = vmatprep.mubr.bf16.mxu0 %v6116_v40  ;;  %4697 = vmatprep.mubr.bf16.mxu1 %v6116_v40  ;;  %v1533_v52 = vmul.bf16 %v6317_v60, %v6274_v55  ;;  %v1549_v54 = vmul.bf16 %v6324_v18, %v6274_v55 }
 0x195   : > { %4712 = vmatpush3.bf16.msra.mxu0 %v1518_v26  ;;  %4776 = vmatpush3.bf16.msra.mxu1 %v1534_v29  ;;  %v1547_v26 = vmul.bf16 %v6259_v30, %v6236_v44  ;;  %v1523_v29 = vmul.bf16 %v6264_v41, %v6236_v44  ;;  %v8382_v30 = vsub.s32 2, %v6044_v2 }
 0x196   : > { %4713 = vmatprep.subr.bf16.mxu0 %v1527_v14  ;;  %4777 = vmatprep.subr.bf16.mxu1 %v1543_v17 }
 0x199   : > { %4714 = vmatpush3.bf16.msra.mxu0 %v1519_v31  ;;  %4778 = vmatpush3.bf16.msra.mxu1 %v1535_v34 }
 0x19a   : > { %4715 = vmatprep.subr.bf16.mxu0 %v1528_v21  ;;  %4779 = vmatprep.subr.bf16.mxu1 %v1544_v37 }
 0x19b   : > { %4666 = vmatmul.mubr.bf16.gmra.mrb[36].mxu0 %v6116_v40  ;;  %4698 = vmatmul.mubr.bf16.gmra.mrb[20].mxu1 %v6116_v40  ;;  %v1546_v40 = vmul.bf16 %v6221_v32, %v6238_v46  ;;  %v1541_v32 = vmul.bf16 %v6334_v56, %v6274_v55 }
 0x19c   : > { %4667 = vmatprep.mubr.bf16.mxu0 %v6154_v7  ;;  %4699 = vmatprep.mubr.bf16.mxu1 %v6154_v7 }
 0x19d   : > { %4716 = vmatpush3.bf16.msra.mxu0 %v1520_v19  ;;  %4780 = vmatpush3.bf16.msra.mxu1 %v1536_v20 }
 0x19e   : > { %4717 = vmatprep.subr.bf16.mxu0 %v1529_v38  ;;  %4781 = vmatprep.subr.bf16.mxu1 %v1545_v39 }
 0x1a1   : > { %4718 = vmatpush3.bf16.msra.mxu0 %v1521_v58  ;;  %4782 = vmatpush3.bf16.msra.mxu1 %v1537_v63 }
 0x1a2   : > { %4719 = vmatprep.subr.bf16.mxu0 %v1530_v0  ;;  %4783 = vmatprep.subr.bf16.mxu1 %v1546_v40 }
 0x1a3   : > { %4668 = vmatmul.mubr.bf16.gmra.mrb[40].mxu0 %v6154_v7  ;;  %4700 = vmatmul.mubr.bf16.gmra.mrb[24].mxu1 %v6154_v7  ;;  %v1548_v7 = vmul.bf16 %v6294_v25, %v6276_v57 }
 0x1a4   : > { %4669 = vmatprep.mubr.bf16.mxu0 %v6196_v51  ;;  %4701 = vmatprep.mubr.bf16.mxu1 %v6196_v51 }
 0x1a5   : > { %4720 = vmatpush3.bf16.msra.mxu0 %v1522_v1  ;;  %4784 = vmatpush3.bf16.msra.mxu1 %v1538_v9 }
 0x1a6   : > { %4721 = vmatprep.subr.bf16.mxu0 %v1531_v11  ;;  %4785 = vmatprep.subr.bf16.mxu1 %v1547_v26 }
 0x1a9   : > { %4722 = vmatpush3.bf16.msra.mxu0 %v1523_v29  ;;  %4786 = vmatpush3.bf16.msra.mxu1 %v1539_v36 }
 0x1aa   : > { %4723 = vmatprep.subr.bf16.mxu0 %v1532_v47  ;;  %4787 = vmatprep.subr.bf16.mxu1 %v1548_v7 }
 0x1ab   : > { %4670 = vmatmul.mubr.bf16.gmra.mrb[44].mxu0 %v6196_v51  ;;  %4702 = vmatmul.mubr.bf16.gmra.mrb[28].mxu1 %v6196_v51  ;;  %v1550_v51 = vld [vmem:[%s8381_s17] sm:$0xf] }
 0x1ac   : > { %4671 = vmatprep.mubr.bf16.mxu0 %v6234_v43  ;;  %4703 = vmatprep.mubr.bf16.mxu1 %v6234_v43  ;;  %v6441_v35 = vrot.slane %v1550_v51, %v6047_v3  ;;  %v6450_v41 = vrot.slane %v1550_v51, %v8382_v30  ;;  %v6461_v2 = vrot.slane %v1550_v51, %v6051_v5 }
 0x1ad   : > { %4724 = vmatpush3.bf16.msra.mxu0 %v1524_v48  ;;  %4788 = vmatpush3.bf16.msra.mxu1 %v1540_v49 }
 0x1ae   : > { %4725 = vmatprep.subr.bf16.mxu0 %v1533_v52  ;;  %4789 = vmatprep.subr.bf16.mxu1 %v1549_v54 }
 0x1b1   : > { %4726 = vmatpush3.bf16.msra.mxu0 %v1525_v24  ;;  %4790 = vmatpush3.bf16.msra.mxu1 %v1541_v32 }
 0x1b3   : > { %4672 = vmatmul.mubr.bf16.gmra.mrb[48].mxu0 %v6234_v43  ;;  %4704 = vmatmul.mubr.bf16.gmra.mrb[32].mxu1 %v6234_v43  ;;  %v6443_v43 = vrot.slane %v1550_v51, %v1566_v33 }
 0x1b4   : > { %4673 = vmatprep.mubr.bf16.mxu0 %v6272_v53  ;;  %4705 = vmatprep.mubr.bf16.mxu1 %v6272_v53 }
 0x1bb   : > { %4674 = vmatmul.mubr.bf16.gmra.mrb[52].mxu0 %v6272_v53  ;;  %4706 = vmatmul.mubr.bf16.gmra.mrb[36].mxu1 %v6272_v53 }
 0x1bc   : > { %4675 = vmatprep.mubr.bf16.mxu0 %v6306_v50  ;;  %4707 = vmatprep.mubr.bf16.mxu1 %v6306_v50 }
 0x1c3   : > { %4676 = vmatmul.mubr.bf16.gmra.mrb[56].mxu0 %v6306_v50  ;;  %4708 = vmatmul.mubr.bf16.gmra.mrb[40].mxu1 %v6306_v50 }
 0x1c4   : > { %4677 = vmatprep.mubr.bf16.mxu0 %v6336_v59  ;;  %4709 = vmatprep.mubr.bf16.mxu1 %v6336_v59 }
 0x1cb   : > { %4678 = vmatmul.mubr.bf16.gmra.mrb[60].mxu0 %v6336_v59  ;;  %4710 = vmatmul.mubr.bf16.gmra.mrb[44].mxu1 %v6336_v59 }
 0x266   : > { %v1606_v44 = vpop.f32.mrb[32].mxu0  ;;  %v1719_v46 = vpop.f32.mrb[16].mxu1 }
 0x267   : > { %v6446_v22 = vadd.f32 %v1606_v44, %v6441_v35  ;;  %v1608_v45 = vpop.f32.mrb[33].mxu0  ;;  %v1721_v53 = vpop.f32.mrb[17].mxu1  ;;  %v6458_v28 = vadd.f32 %v1719_v46, %v6450_v41 }
 0x268   : > { %v6453_v55 = vadd.f32 %v1721_v53, %v6443_v43  ;;  %v1610_v57 = vpop.f32.mrb[34].mxu0  ;;  %v1723_v12 = vpop.f32.mrb[18].mxu1  ;;  %v6469_v15 = vadd.f32 %v1608_v45, %v6461_v2 }
 0x269   : > { %v1612_v25 = vpop.f32.mrb[35].mxu0  ;;  %v1725_v27 = vpop.f32.mrb[19].mxu1  ;;  %1798 = vmax.xlane.f32.xlu0 %v6446_v22  ;;  %v6464_v50 = vadd.f32 %v1610_v57, %v6441_v35  ;;  %v6472_v6 = vadd.f32 %v1723_v12, %v6450_v41 }
 0x26a   : > { %2230 = vmax.xlane.f32.xlu1 %v6453_v55  ;;  %v6477_v4 = vadd.f32 %v1612_v25, %v6461_v2  ;;  %v6480_v10 = vadd.f32 %v1725_v27, %v6443_v43 }
 0x26d   : > { %2086 = vmax.xlane.f32.xlu0 %v6458_v28 }
 0x26e   : > { %v1616_v13 = vpop.f32.mrb[36].mxu0  ;;  %v1729_v60 = vpop.f32.mrb[20].mxu1  ;;  %1800 = vmax.xlane.f32.xlu1 %v6464_v50 }
 0x26f   : > { %v1618_v23 = vpop.f32.mrb[37].mxu0  ;;  %v1731_v18 = vpop.f32.mrb[21].mxu1  ;;  %v6485_v16 = vadd.f32 %v1616_v13, %v6441_v35  ;;  %v6497_v20 = vadd.f32 %v1729_v60, %v6450_v41 }
 0x270   : > { %v1620_v56 = vpop.f32.mrb[38].mxu0  ;;  %v1733_v59 = vpop.f32.mrb[22].mxu1  ;;  %v6509_v63 = vadd.f32 %v1618_v23, %v6461_v2  ;;  %v6529_v36 = vadd.f32 %v1731_v18, %v6443_v43 }
 0x271   : > { %v1622_v61 = vpop.f32.mrb[39].mxu0  ;;  %v1735_v8 = vpop.f32.mrb[23].mxu1  ;;  %1942 = vmax.xlane.f32.xlu0 %v6469_v15  ;;  %v6490_v31 = vadd.f32 %v1620_v56, %v6441_v35  ;;  %v6500_v38 = vadd.f32 %v1733_v59, %v6450_v41 }
 0x272   : > { %2088 = vmax.xlane.f32.xlu1 %v6472_v6  ;;  %v6516_v1 = vadd.f32 %v1622_v61, %v6461_v2  ;;  %v6532_v47 = vadd.f32 %v1735_v8, %v6443_v43 }
 0x275   : > { %1944 = vmax.xlane.f32.xlu0 %v6477_v4 }
 0x276   : > { %v1626_v42 = vpop.f32.mrb[40].mxu0  ;;  %v1739_v62 = vpop.f32.mrb[24].mxu1  ;;  %2232 = vmax.xlane.f32.xlu1 %v6480_v10 }
 0x277   : > { %v1628_v14 = vpop.f32.mrb[41].mxu0  ;;  %v6487_v17 = vpop.f32.mrb[25].mxu1  ;;  %v6537_v49 = vadd.f32 %v1626_v42, %v6441_v35  ;;  %v6569_v13 = vadd.f32 %v1739_v62, %v6450_v41 }
 0x278   : > { %v1630_v34 = vpop.f32.mrb[42].mxu0  ;;  %v1743_v21 = vpop.f32.mrb[26].mxu1  ;;  %v6577_v56 = vadd.f32 %v1628_v14, %v6461_v2 }
 0x279   : > { %v1632_v37 = vpop.f32.mrb[43].mxu0  ;;  %v6492_v19 = vpop.f32.mrb[27].mxu1  ;;  %1802 = vmax.xlane.f32.xlu0 %v6485_v16  ;;  %v6546_v51 = vadd.f32 %v1630_v34, %v6441_v35  ;;  %v6572_v60 = vadd.f32 %v1743_v21, %v6450_v41 }
 0x27a   : > { %1804 = vmax.xlane.f32.xlu1 %v6490_v31  ;;  %8384 = vst [vmem:[#allocation27_spill] sm:$0xff] %v6577_v56  ;;  %v6586_v62 = vadd.f32 %v1632_v37, %v6461_v2 }
 0x27b   : > { %8383 = vst [vmem:[#allocation26_spill] sm:$0xff] %v6572_v60 }
 0x27c   : > { %8385 = vst [vmem:[#allocation28_spill] sm:$0xff] %v6586_v62 }
 0x27d   : > { %2090 = vmax.xlane.f32.xlu0 %v6497_v20 }
 0x27e   : > { %v6503_v39 = vpop.f32.mrb[44].mxu0  ;;  %v6505_v58 = vpop.f32.mrb[28].mxu1  ;;  %2092 = vmax.xlane.f32.xlu1 %v6500_v38 }
 0x27f   : > { %v6511_v0 = vpop.f32.mrb[45].mxu0  ;;  %v6513_v40 = vpop.f32.mrb[29].mxu1 }
 0x280   : > { %v6518_v9 = vpop.f32.mrb[46].mxu0  ;;  %v6520_v11 = vpop.f32.mrb[30].mxu1 }
 0x281   : > { %v6522_v26 = vpop.f32.mrb[47].mxu0  ;;  %v6524_v29 = vpop.f32.mrb[31].mxu1  ;;  %1946 = vmax.xlane.f32.xlu0 %v6509_v63 }
 0x282   : > { %1948 = vmax.xlane.f32.xlu1 %v6516_v1 }
 0x285   : > { %2234 = vmax.xlane.f32.xlu0 %v6529_v36 }
 0x286   : > { %v1646_v7 = vpop.f32.mrb[48].mxu0  ;;  %v1759_v48 = vpop.f32.mrb[32].mxu1  ;;  %2236 = vmax.xlane.f32.xlu1 %v6532_v47 }
 0x287   : > { %v6540_v52 = vadd.f32 %v1646_v7, %v6441_v35  ;;  %v6543_v54 = vadd.f32 %v1759_v48, %v6450_v41  ;;  %v1648_v24 = vpop.f32.mrb[49].mxu0  ;;  %v1761_v32 = vpop.f32.mrb[33].mxu1 }
 0x288   : > { %v6549_v33 = vadd.f32 %v1648_v24, %v6461_v2  ;;  %v6552_v44 = vadd.f32 %v1761_v32, %v6443_v43  ;;  %v1650_v46 = vpop.f32.mrb[50].mxu0  ;;  %v1763_v30 = vpop.f32.mrb[34].mxu1 }
 0x289   : > { %v6555_v45 = vadd.f32 %v1650_v46, %v6441_v35  ;;  %v6558_v53 = vadd.f32 %v1763_v30, %v6450_v41  ;;  %v1652_v57 = vpop.f32.mrb[51].mxu0  ;;  %v1765_v12 = vpop.f32.mrb[35].mxu1  ;;  %1806 = vmax.xlane.f32.xlu0 %v6537_v49 }
 0x28a   : > { %v6562_v25 = vadd.f32 %v1652_v57, %v6461_v2  ;;  %v6565_v27 = vadd.f32 %v1765_v12, %v6443_v43  ;;  %1808 = vmax.xlane.f32.xlu1 %v6546_v51  ;;  %v6610_v57 = vadd.f32 %v6487_v17, %v6443_v43  ;;  %v6614_v12 = vadd.f32 %v6492_v19, %v6443_v43 }
 0x28b   : > { %v6630_v19 = vadd.f32 %v6518_v9, %v6441_v35 }
 0x28c   : > { %8386 = vst [vmem:[#allocation29_spill] sm:$0xff] %v6610_v57  ;;  %8387 = vst [vmem:[#allocation30_spill] sm:$0xff] %v6614_v12 }
 0x28d   : > { %2094 = vmax.xlane.f32.xlu0 %v6569_v13  ;;  %8389 = vst [vmem:[#allocation32_spill] sm:$0xff] %v6630_v19 }
 0x28e   : > { %v1656_v23 = vpop.f32.mrb[52].mxu0  ;;  %v1769_v18 = vpop.f32.mrb[36].mxu1  ;;  %2096 = vmax.xlane.f32.xlu1 %v6572_v60 }
 0x28f   : > { %v6580_v59 = vadd.f32 %v1656_v23, %v6441_v35  ;;  %v6583_v61 = vadd.f32 %v1769_v18, %v6450_v41  ;;  %v1658_v8 = vpop.f32.mrb[53].mxu0  ;;  %v1771_v42 = vpop.f32.mrb[37].mxu1 }
 0x290   : > { %v6589_v34 = vadd.f32 %v1658_v8, %v6461_v2  ;;  %v6592_v21 = vadd.f32 %v1771_v42, %v6443_v43  ;;  %v1660_v7 = vpop.f32.mrb[54].mxu0  ;;  %v1773_v14 = vpop.f32.mrb[38].mxu1  ;;  %v6620_v8 = vadd.f32 %v6503_v39, %v6441_v35 }
 0x291   : > { %v6595_v48 = vadd.f32 %v1660_v7, %v6441_v35  ;;  %v6598_v24 = vadd.f32 %v1773_v14, %v6450_v41  ;;  %v1662_v32 = vpop.f32.mrb[55].mxu0  ;;  %v1775_v46 = vpop.f32.mrb[39].mxu1  ;;  %1950 = vmax.xlane.f32.xlu0 %v6577_v56 }
 0x292   : > { %v6602_v37 = vadd.f32 %v1662_v32, %v6461_v2  ;;  %v6605_v30 = vadd.f32 %v1775_v46, %v6443_v43  ;;  %1952 = vmax.xlane.f32.xlu1 %v6586_v62  ;;  %8388 = vst [vmem:[#allocation31_spill] sm:$0xff] %v6620_v8 }
 0x295   : > { %2238 = vmax.xlane.f32.xlu0 %v6610_v57 }
 0x296   : > { %v1666_v23 = vpop.f32.mrb[56].mxu0  ;;  %v1779_v18 = vpop.f32.mrb[40].mxu1  ;;  %2240 = vmax.xlane.f32.xlu1 %v6614_v12 }
 0x297   : > { %v6623_v42 = vadd.f32 %v1666_v23, %v6441_v35  ;;  %v6626_v17 = vadd.f32 %v1779_v18, %v6450_v41  ;;  %v1668_v7 = vpop.f32.mrb[57].mxu0  ;;  %v1781_v14 = vpop.f32.mrb[41].mxu1 }
 0x298   : > { %v6633_v32 = vadd.f32 %v1668_v7, %v6461_v2  ;;  %v6636_v46 = vadd.f32 %v1781_v14, %v6443_v43  ;;  %v1670_v39 = vpop.f32.mrb[58].mxu0  ;;  %v1783_v5 = vpop.f32.mrb[42].mxu1  ;;  %v6654_v14 = vadd.f32 %v6505_v58, %v6450_v41 }
 0x299   : > { %v6639_v23 = vadd.f32 %v1670_v39, %v6441_v35  ;;  %v6642_v18 = vadd.f32 %v1783_v5, %v6450_v41  ;;  %v1672_v3 = vpop.f32.mrb[59].mxu0  ;;  %v1785_v12 = vpop.f32.mrb[43].mxu1  ;;  %1810 = vmax.xlane.f32.xlu0 %v6620_v8  ;;  %v6658_v5 = vadd.f32 %v6520_v11, %v6450_v41  ;;  %v6674_v11 = vadd.f32 %v6522_v26, %v6461_v2 }
 0x29a   : > { %v6646_v9 = vadd.f32 %v1672_v3, %v6461_v2  ;;  %v6649_v7 = vadd.f32 %v1785_v12, %v6443_v43  ;;  %1812 = vmax.xlane.f32.xlu1 %v6630_v19  ;;  %8390 = vst [vmem:[#allocation33_spill] sm:$0xff] %v6654_v14  ;;  %v6664_v3 = vadd.f32 %v6511_v0, %v6461_v2 }
 0x29b   : > { %8391 = vst [vmem:[#allocation34_spill] sm:$0xff] %v6658_v5 }
 0x29d   : > { %2098 = vmax.xlane.f32.xlu0 %v6654_v14 }
 0x29e   : > { %v1676_v39 = vpop.f32.mrb[60].mxu0  ;;  %v1789_v8 = vpop.f32.mrb[44].mxu1  ;;  %2100 = vmax.xlane.f32.xlu1 %v6658_v5 }
 0x29f   : > { %v6667_v12 = vadd.f32 %v1676_v39, %v6441_v35  ;;  %v6670_v58 = vadd.f32 %v1789_v8, %v6450_v41  ;;  %v1678_v19 = vpop.f32.mrb[61].mxu0  ;;  %v1791_v57 = vpop.f32.mrb[45].mxu1 }
 0x2a0   : > { %v6677_v14 = vadd.f32 %v1678_v19, %v6461_v2  ;;  %v6680_v5 = vadd.f32 %v1791_v57, %v6443_v43  ;;  %v1680_v0 = vpop.f32.mrb[62].mxu0  ;;  %v1793_v62 = vpop.f32.mrb[46].mxu1  ;;  %v6698_v57 = vadd.f32 %v6513_v40, %v6443_v43 }
 0x2a1   : > { %8392 = vst [vmem:[#allocation35_spill] sm:$0xff] %v6670_v58  ;;  %v6683_v39 = vadd.f32 %v1680_v0, %v6441_v35  ;;  %v6686_v8 = vadd.f32 %v1793_v62, %v6450_v41  ;;  %v1682_v56 = vpop.f32.mrb[63].mxu0  ;;  %v1795_v60 = vpop.f32.mrb[47].mxu1  ;;  %1954 = vmax.xlane.f32.xlu0 %v6664_v3  ;;  %v6702_v35 = vadd.f32 %v6524_v29, %v6443_v43 }
 0x2a2   : > { %8393 = vst [vmem:[#allocation36_spill] sm:$0xff] %v6677_v14  ;;  %8394 = vst [vmem:[#allocation37_spill] sm:$0xff] %v6680_v5  ;;  %v6690_v26 = vadd.f32 %v1682_v56, %v6461_v2  ;;  %v6693_v19 = vadd.f32 %v1795_v60, %v6443_v43  ;;  %1956 = vmax.xlane.f32.xlu1 %v6674_v11 }
 0x2a3   : > { %8395 = vst [vmem:[#allocation38_spill] sm:$0xff] %v6686_v8 }
 0x2a4   : > { %8396 = vst [vmem:[#allocation39_spill] sm:$0xff] %v6690_v26  ;;  %8397 = vst [vmem:[#allocation40_spill] sm:$0xff] %v6693_v19 }
 0x2a5   : > { %2242 = vmax.xlane.f32.xlu0 %v6698_v57 }
 0x2a6   : > { %2244 = vmax.xlane.f32.xlu1 %v6702_v35 }
 0x2a9   : > { %1814 = vmax.xlane.f32.xlu0 %v6540_v52 }
 0x2aa   : > { %1816 = vmax.xlane.f32.xlu1 %v6555_v45 }
 0x2ad   : > { %2102 = vmax.xlane.f32.xlu0 %v6543_v54 }
 0x2ae   : > { %2104 = vmax.xlane.f32.xlu1 %v6558_v53 }
 0x2b1   : > { %1958 = vmax.xlane.f32.xlu0 %v6549_v33 }
 0x2b2   : > { %1960 = vmax.xlane.f32.xlu1 %v6562_v25 }
 0x2b5   : > { %2246 = vmax.xlane.f32.xlu0 %v6552_v44 }
 0x2b6   : > { %2248 = vmax.xlane.f32.xlu1 %v6565_v27 }
 0x2b9   : > { %1818 = vmax.xlane.f32.xlu0 %v6580_v59 }
 0x2ba   : > { %1820 = vmax.xlane.f32.xlu1 %v6595_v48 }
 0x2bd   : > { %2106 = vmax.xlane.f32.xlu0 %v6583_v61 }
 0x2be   : > { %2108 = vmax.xlane.f32.xlu1 %v6598_v24 }
 0x2c1   : > { %1962 = vmax.xlane.f32.xlu0 %v6589_v34 }
 0x2c2   : > { %1964 = vmax.xlane.f32.xlu1 %v6602_v37 }
 0x2c5   : > { %2250 = vmax.xlane.f32.xlu0 %v6592_v21 }
 0x2c6   : > { %2252 = vmax.xlane.f32.xlu1 %v6605_v30 }
 0x2c9   : > { %1822 = vmax.xlane.f32.xlu0 %v6623_v42 }
 0x2ca   : > { %1824 = vmax.xlane.f32.xlu1 %v6639_v23 }
 0x2cd   : > { %2110 = vmax.xlane.f32.xlu0 %v6626_v17 }
 0x2ce   : > { %2112 = vmax.xlane.f32.xlu1 %v6642_v18 }
 0x2d1   : > { %1966 = vmax.xlane.f32.xlu0 %v6633_v32 }
 0x2d2   : > { %1968 = vmax.xlane.f32.xlu1 %v6646_v9 }
 0x2d5   : > { %2254 = vmax.xlane.f32.xlu0 %v6636_v46 }
 0x2d6   : > { %2256 = vmax.xlane.f32.xlu1 %v6649_v7 }
 0x2d9   : > { %1826 = vmax.xlane.f32.xlu0 %v6667_v12 }
 0x2da   : > { %1828 = vmax.xlane.f32.xlu1 %v6683_v39 }
 0x2dd   : > { %2114 = vmax.xlane.f32.xlu0 %v6670_v58 }
 0x2de   : > { %2116 = vmax.xlane.f32.xlu1 %v6686_v8 }
 0x2e1   : > { %1970 = vmax.xlane.f32.xlu0 %v6677_v14 }
 0x2e2   : > { %1972 = vmax.xlane.f32.xlu1 %v6690_v26 }
 0x2e5   : > { %2258 = vmax.xlane.f32.xlu0 %v6680_v5 }
 0x2e6   : > { %2260 = vmax.xlane.f32.xlu1 %v6693_v19 }
 0x2f6   : > { %v1799_v43 = vpop.xlane.xlu0 %1798 }
 0x2f7   : > { %v1830_v41 = vsub.f32 %v6446_v22, %v1799_v43  ;;  %v2231_v2 = vpop.xlane.xlu1 %2230 }
 0x2f8   : > { %v2262_v8 = vsub.f32 %v6453_v55, %v2231_v2 }
 0x2f9   : > { %v1846_v40 = vmul.f32 1.442695, %v1830_v41 }
 0x2fa   : > { %v2087_v29 = vpop.xlane.xlu0 %2086  ;;  %v2278_v41 = vmul.f32 1.442695, %v2262_v8 }
 0x2fb   : > { %5192 = vpow2.f32 %v1846_v40  ;;  %v2118_v60 = vsub.f32 %v6458_v28, %v2087_v29  ;;  %v1801_v56 = vpop.xlane.xlu1 %1800 }
 0x2fc   : > { %v1831_v62 = vsub.f32 %v6464_v50, %v1801_v56 }
 0x2fd   : > { %v2134_v0 = vmul.f32 1.442695, %v2118_v60 }
 0x2fe   : > { %v1848_v58 = vmul.f32 1.442695, %v1831_v62  ;;  %v1943_v26 = vpop.xlane.xlu0 %1942 }
 0x2ff   : > { %5194 = vpow2.f32 %v2134_v0  ;;  %v1974_v19 = vsub.f32 %v6469_v15, %v1943_v26  ;;  %v2089_v5 = vpop.xlane.xlu1 %2088 }
 0x300   : > { %5196 = vpow2.f32 %v1848_v58  ;;  %v2119_v22 = vsub.f32 %v6472_v6, %v2089_v5 }
 0x301   : > { %v1990_v43 = vmul.f32 1.442695, %v1974_v19 }
 0x302   : > { %v2136_v40 = vmul.f32 1.442695, %v2119_v22  ;;  %v1945_v14 = vpop.xlane.xlu0 %1944 }
 0x303   : > { %5198 = vpow2.f32 %v1990_v43  ;;  %v1975_v28 = vsub.f32 %v6477_v4, %v1945_v14  ;;  %v2233_v50 = vpop.xlane.xlu1 %2232 }
 0x304   : > { %5200 = vpow2.f32 %v2136_v40  ;;  %v2263_v55 = vsub.f32 %v6480_v10, %v2233_v50 }
 0x305   : > { %v6746_v2 = vpop.eup %5192  ;;  %v1992_v29 = vmul.f32 1.442695, %v1975_v28  ;;  %5202 = vpow2.f32 %v2278_v41 }
 0x306   : > { %1878 = vadd.xlane.f32.xlu0 %v6746_v2  ;;  %v1803_v15 = vpop.xlane.xlu0 %1802  ;;  %v2280_v58 = vmul.f32 1.442695, %v2263_v55 }
 0x307   : > { %5204 = vpow2.f32 %v1992_v29  ;;  %v1832_v6 = vsub.f32 %v6485_v16, %v1803_v15  ;;  %v1805_v5 = vpop.xlane.xlu1 %1804 }
 0x308   : > { %v1833_v8 = vsub.f32 %v6490_v31, %v1805_v5 }
 0x309   : > { %v6751_v26 = vpop.eup %5194  ;;  %v1850_v4 = vmul.f32 1.442695, %v1832_v6 }
 0x30a   : > { %v6753_v14 = vpop.eup %5196  ;;  %2166 = vadd.xlane.f32.xlu0 %v6751_v26  ;;  %v2091_v10 = vpop.xlane.xlu0 %2090  ;;  %v1852_v16 = vmul.f32 1.442695, %v1833_v8 }
 0x30b   : > { %5206 = vpow2.f32 %v1850_v4  ;;  %v2120_v19 = vsub.f32 %v6497_v20, %v2091_v10  ;;  %1880 = vadd.xlane.f32.xlu1 %v6753_v14  ;;  %v2093_v60 = vpop.xlane.xlu1 %2092 }
 0x30c   : > { %5208 = vpow2.f32 %v2280_v58  ;;  %v2121_v56 = vsub.f32 %v6500_v38, %v2093_v60 }
 0x30d   : > { %v6759_v62 = vpop.eup %5198  ;;  %v2138_v31 = vmul.f32 1.442695, %v2120_v19 }
 0x30e   : > { %v6761_v0 = vpop.eup %5200  ;;  %2022 = vadd.xlane.f32.xlu0 %v6759_v62  ;;  %v1947_v22 = vpop.xlane.xlu0 %1946  ;;  %v2140_v40 = vmul.f32 1.442695, %v2121_v56 }
 0x30f   : > { %5210 = vpow2.f32 %v2138_v31  ;;  %v1976_v43 = vsub.f32 %v6509_v63, %v1947_v22  ;;  %2168 = vadd.xlane.f32.xlu1 %v6761_v0  ;;  %v1949_v20 = vpop.xlane.xlu1 %1948  ;;  %v6766_v41 = vpop.eup %5202 }
 0x310   : > { %5212 = vpow2.f32 %v1852_v16  ;;  %v1977_v38 = vsub.f32 %v6516_v1, %v1949_v20 }
 0x311   : > { %v6769_v28 = vpop.eup %5204  ;;  %v1994_v50 = vmul.f32 1.442695, %v1976_v43  ;;  %v8398_v43 = vld [vmem:[#allocation26_spill] sm:$0xff] }
 0x312   : > { %2310 = vadd.xlane.f32.xlu0 %v6766_v41  ;;  %v2235_v55 = vpop.xlane.xlu0 %2234  ;;  %v1996_v63 = vmul.f32 1.442695, %v1977_v38 }
 0x313   : > { %5214 = vpow2.f32 %v1994_v50  ;;  %v2264_v29 = vsub.f32 %v6529_v36, %v2235_v55  ;;  %v2237_v15 = vpop.xlane.xlu1 %2236  ;;  %2024 = vadd.xlane.f32.xlu1 %v6769_v28  ;;  %v8399_v55 = vld [vmem:[#allocation27_spill] sm:$0xff] }
 0x314   : > { %5216 = vpow2.f32 %v2140_v40  ;;  %v2265_v6 = vsub.f32 %v6532_v47, %v2237_v15 }
 0x315   : > { %v6775_v5 = vpop.eup %5206  ;;  %v2282_v58 = vmul.f32 1.442695, %v2264_v29 }
 0x316   : > { %v6777_v1 = vpop.eup %5208  ;;  %1882 = vadd.xlane.f32.xlu0 %v6775_v5  ;;  %v1807_v8 = vpop.xlane.xlu0 %1806  ;;  %v2284_v36 = vmul.f32 1.442695, %v2265_v6 }
 0x317   : > { %5218 = vpow2.f32 %v2282_v58  ;;  %v1834_v4 = vsub.f32 %v6537_v49, %v1807_v8  ;;  %v1809_v10 = vpop.xlane.xlu1 %1808  ;;  %2312 = vadd.xlane.f32.xlu1 %v6777_v1 }
 0x318   : > { %5220 = vpow2.f32 %v1996_v63  ;;  %v1835_v19 = vsub.f32 %v6546_v51, %v1809_v10  ;;  %v8400_v63 = vld [vmem:[#allocation28_spill] sm:$0xff] }
 0x319   : > { %v6783_v60 = vpop.eup %5210  ;;  %v1854_v47 = vmul.f32 1.442695, %v1834_v4 }
 0x31a   : > { %v6785_v16 = vpop.eup %5212  ;;  %2170 = vadd.xlane.f32.xlu0 %v6783_v60  ;;  %v2095_v56 = vpop.xlane.xlu0 %2094  ;;  %v1856_v49 = vmul.f32 1.442695, %v1835_v19 }
 0x31b   : > { %5222 = vpow2.f32 %v1854_v47  ;;  %v2122_v31 = vsub.f32 %v6569_v13, %v2095_v56  ;;  %v2097_v22 = vpop.xlane.xlu1 %2096  ;;  %1884 = vadd.xlane.f32.xlu1 %v6785_v16 }
 0x31c   : > { %5224 = vpow2.f32 %v2284_v36  ;;  %v2123_v20 = vsub.f32 %v8398_v43, %v2097_v22  ;;  %v8401_v36 = vld [vmem:[#allocation29_spill] sm:$0xff] }
 0x31d   : > { %v6791_v40 = vpop.eup %5214  ;;  %v2142_v51 = vmul.f32 1.442695, %v2122_v31  ;;  %v8402_v31 = vld [vmem:[#allocation30_spill] sm:$0xff] }
 0x31e   : > { %v6793_v38 = vpop.eup %5216  ;;  %2026 = vadd.xlane.f32.xlu0 %v6791_v40  ;;  %v1951_v50 = vpop.xlane.xlu0 %1950  ;;  %v2144_v13 = vmul.f32 1.442695, %v2123_v20 }
 0x31f   : > { %5226 = vpow2.f32 %v2142_v51  ;;  %v1978_v29 = vsub.f32 %v8399_v55, %v1951_v50  ;;  %v1953_v15 = vpop.xlane.xlu1 %1952  ;;  %2172 = vadd.xlane.f32.xlu1 %v6793_v38  ;;  %v8403_v50 = vld [vmem:[#allocation31_spill] sm:$0xff] }
 0x320   : > { %5228 = vpow2.f32 %v1856_v49  ;;  %v1979_v6 = vsub.f32 %v8400_v63, %v1953_v15 }
 0x321   : > { %v6799_v58 = vpop.eup %5218  ;;  %v1998_v8 = vmul.f32 1.442695, %v1978_v29 }
 0x322   : > { %v6801_v4 = vpop.eup %5220  ;;  %2314 = vadd.xlane.f32.xlu0 %v6799_v58  ;;  %v2239_v10 = vpop.xlane.xlu0 %2238  ;;  %v2000_v56 = vmul.f32 1.442695, %v1979_v6 }
 0x323   : > { %5230 = vpow2.f32 %v1998_v8  ;;  %v2266_v19 = vsub.f32 %v8401_v36, %v2239_v10  ;;  %v2241_v47 = vpop.xlane.xlu1 %2240  ;;  %2028 = vadd.xlane.f32.xlu1 %v6801_v4 }
 0x324   : > { %5232 = vpow2.f32 %v2144_v13  ;;  %v2267_v22 = vsub.f32 %v8402_v31, %v2241_v47  ;;  %v8404_v13 = vld [vmem:[#allocation32_spill] sm:$0xff] }
 0x325   : > { %v6807_v49 = vpop.eup %5222  ;;  %v2286_v43 = vmul.f32 1.442695, %v2266_v19  ;;  %v8405_v19 = vld [vmem:[#allocation33_spill] sm:$0xff] }
 0x326   : > { %v6809_v20 = vpop.eup %5224  ;;  %1886 = vadd.xlane.f32.xlu0 %v6807_v49  ;;  %v1811_v51 = vpop.xlane.xlu0 %1810  ;;  %v2288_v15 = vmul.f32 1.442695, %v2267_v22 }
 0x327   : > { %5234 = vpow2.f32 %v2286_v43  ;;  %v1836_v55 = vsub.f32 %v8403_v50, %v1811_v51  ;;  %v1813_v29 = vpop.xlane.xlu1 %1812  ;;  %2316 = vadd.xlane.f32.xlu1 %v6809_v20 }
 0x328   : > { %5236 = vpow2.f32 %v2000_v56  ;;  %v1837_v63 = vsub.f32 %v8404_v13, %v1813_v29  ;;  %v8406_v56 = vld [vmem:[#allocation34_spill] sm:$0xff] }
 0x329   : > { %v6815_v6 = vpop.eup %5226  ;;  %v1858_v8 = vmul.f32 1.442695, %v1836_v55 }
 0x32a   : > { %v6817_v10 = vpop.eup %5228  ;;  %2174 = vadd.xlane.f32.xlu0 %v6815_v6  ;;  %v2099_v36 = vpop.xlane.xlu0 %2098  ;;  %v1860_v43 = vmul.f32 1.442695, %v1837_v63 }
 0x32b   : > { %5238 = vpow2.f32 %v1858_v8  ;;  %v2124_v47 = vsub.f32 %v8405_v19, %v2099_v36  ;;  %v2101_v31 = vpop.xlane.xlu1 %2100  ;;  %1888 = vadd.xlane.f32.xlu1 %v6817_v10 }
 0x32c   : > { %5240 = vpow2.f32 %v2288_v15  ;;  %v2125_v22 = vsub.f32 %v8406_v56, %v2101_v31 }
 0x32d   : > { %v6823_v51 = vpop.eup %5230  ;;  %v2146_v50 = vmul.f32 1.442695, %v2124_v47 }
 0x32e   : > { %v6825_v29 = vpop.eup %5232  ;;  %2030 = vadd.xlane.f32.xlu0 %v6823_v51  ;;  %v1955_v55 = vpop.xlane.xlu0 %1954  ;;  %v2148_v36 = vmul.f32 1.442695, %v2125_v22 }
 0x32f   : > { %5242 = vpow2.f32 %v2146_v50  ;;  %v1980_v13 = vsub.f32 %v6664_v3, %v1955_v55  ;;  %v1957_v8 = vpop.xlane.xlu1 %1956  ;;  %2176 = vadd.xlane.f32.xlu1 %v6825_v29 }
 0x330   : > { %5244 = vpow2.f32 %v1860_v43  ;;  %v1981_v15 = vsub.f32 %v6674_v11, %v1957_v8 }
 0x331   : > { %v6831_v63 = vpop.eup %5234  ;;  %v2002_v19 = vmul.f32 1.442695, %v1980_v13 }
 0x332   : > { %v6833_v31 = vpop.eup %5236  ;;  %2318 = vadd.xlane.f32.xlu0 %v6831_v63  ;;  %v2243_v47 = vpop.xlane.xlu0 %2242  ;;  %v2004_v3 = vmul.f32 1.442695, %v1981_v15 }
 0x333   : > { %5246 = vpow2.f32 %v2002_v19  ;;  %v2268_v56 = vsub.f32 %v6698_v57, %v2243_v47  ;;  %v2245_v50 = vpop.xlane.xlu1 %2244  ;;  %2032 = vadd.xlane.f32.xlu1 %v6833_v31 }
 0x334   : > { %5248 = vpow2.f32 %v2148_v36  ;;  %v2269_v43 = vsub.f32 %v6702_v35, %v2245_v50 }
 0x335   : > { %v6839_v22 = vpop.eup %5238  ;;  %v2290_v11 = vmul.f32 1.442695, %v2268_v56 }
 0x336   : > { %v6841_v55 = vpop.eup %5240  ;;  %1890 = vadd.xlane.f32.xlu0 %v6839_v22  ;;  %v1815_v13 = vpop.xlane.xlu0 %1814  ;;  %v2292_v57 = vmul.f32 1.442695, %v2269_v43 }
 0x337   : > { %5250 = vpow2.f32 %v2290_v11  ;;  %v1838_v8 = vsub.f32 %v6540_v52, %v1815_v13  ;;  %v1817_v19 = vpop.xlane.xlu1 %1816  ;;  %2320 = vadd.xlane.f32.xlu1 %v6841_v55 }
 0x338   : > { %5252 = vpow2.f32 %v2004_v3  ;;  %v1839_v36 = vsub.f32 %v6555_v45, %v1817_v19 }
 0x339   : > { %v6847_v15 = vpop.eup %5242  ;;  %v1862_v35 = vmul.f32 1.442695, %v1838_v8 }
 0x33a   : > { %v6849_v47 = vpop.eup %5244  ;;  %2178 = vadd.xlane.f32.xlu0 %v6847_v15  ;;  %v2103_v56 = vpop.xlane.xlu0 %2102  ;;  %v1864_v52 = vmul.f32 1.442695, %v1839_v36 }
 0x33b   : > { %5254 = vpow2.f32 %v1862_v35  ;;  %v2126_v50 = vsub.f32 %v6543_v54, %v2103_v56  ;;  %v2105_v11 = vpop.xlane.xlu1 %2104  ;;  %1892 = vadd.xlane.f32.xlu1 %v6849_v47 }
 0x33c   : > { %5256 = vpow2.f32 %v2292_v57  ;;  %v2127_v3 = vsub.f32 %v6558_v53, %v2105_v11 }
 0x33d   : > { %v6855_v43 = vpop.eup %5246  ;;  %v2150_v45 = vmul.f32 1.442695, %v2126_v50 }
 0x33e   : > { %v6857_v13 = vpop.eup %5248  ;;  %2034 = vadd.xlane.f32.xlu0 %v6855_v43  ;;  %v1959_v8 = vpop.xlane.xlu0 %1958  ;;  %v2152_v54 = vmul.f32 1.442695, %v2127_v3 }
 0x33f   : > { %5258 = vpow2.f32 %v2150_v45  ;;  %v1982_v19 = vsub.f32 %v6549_v33, %v1959_v8  ;;  %v1961_v35 = vpop.xlane.xlu1 %1960  ;;  %2180 = vadd.xlane.f32.xlu1 %v6857_v13 }
 0x340   : > { %5260 = vpow2.f32 %v1864_v52  ;;  %v1983_v57 = vsub.f32 %v6562_v25, %v1961_v35 }
 0x341   : > { %v6863_v36 = vpop.eup %5250  ;;  %v2006_v53 = vmul.f32 1.442695, %v1982_v19 }
 0x342   : > { %v6865_v56 = vpop.eup %5252  ;;  %2322 = vadd.xlane.f32.xlu0 %v6863_v36  ;;  %v2247_v50 = vpop.xlane.xlu0 %2246  ;;  %v2008_v33 = vmul.f32 1.442695, %v1983_v57 }
 0x343   : > { %5262 = vpow2.f32 %v2006_v53  ;;  %v2270_v11 = vsub.f32 %v6552_v44, %v2247_v50  ;;  %v2249_v45 = vpop.xlane.xlu1 %2248  ;;  %2036 = vadd.xlane.f32.xlu1 %v6865_v56 }
 0x344   : > { %5264 = vpow2.f32 %v2152_v54  ;;  %v2271_v52 = vsub.f32 %v6565_v27, %v2249_v45 }
 0x345   : > { %v6871_v3 = vpop.eup %5254  ;;  %v2294_v25 = vmul.f32 1.442695, %v2270_v11 }
 0x346   : > { %v6873_v8 = vpop.eup %5256  ;;  %1894 = vadd.xlane.f32.xlu0 %v6871_v3  ;;  %v1819_v19 = vpop.xlane.xlu0 %1818  ;;  %v2296_v44 = vmul.f32 1.442695, %v2271_v52 }
 0x347   : > { %5266 = vpow2.f32 %v2294_v25  ;;  %v1840_v35 = vsub.f32 %v6580_v59, %v1819_v19  ;;  %v1821_v53 = vpop.xlane.xlu1 %1820  ;;  %2324 = vadd.xlane.f32.xlu1 %v6873_v8 }
 0x348   : > { %5268 = vpow2.f32 %v2008_v33  ;;  %v1841_v54 = vsub.f32 %v6595_v48, %v1821_v53 }
 0x349   : > { %v6879_v57 = vpop.eup %5258  ;;  %v1866_v27 = vmul.f32 1.442695, %v1840_v35 }
 0x34a   : > { %v6881_v50 = vpop.eup %5260  ;;  %2182 = vadd.xlane.f32.xlu0 %v6879_v57  ;;  %v2107_v11 = vpop.xlane.xlu0 %2106  ;;  %v1868_v59 = vmul.f32 1.442695, %v1841_v54 }
 0x34b   : > { %5270 = vpow2.f32 %v1866_v27  ;;  %v2128_v45 = vsub.f32 %v6583_v61, %v2107_v11  ;;  %v2109_v25 = vpop.xlane.xlu1 %2108  ;;  %1896 = vadd.xlane.f32.xlu1 %v6881_v50 }
 0x34c   : > { %5272 = vpow2.f32 %v2296_v44  ;;  %v2129_v33 = vsub.f32 %v6598_v24, %v2109_v25 }
 0x34d   : > { %v6887_v52 = vpop.eup %5262  ;;  %v2154_v48 = vmul.f32 1.442695, %v2128_v45 }
 0x34e   : > { %v6889_v19 = vpop.eup %5264  ;;  %2038 = vadd.xlane.f32.xlu0 %v6887_v52  ;;  %v1963_v35 = vpop.xlane.xlu0 %1962  ;;  %v2156_v61 = vmul.f32 1.442695, %v2129_v33 }
 0x34f   : > { %5274 = vpow2.f32 %v2154_v48  ;;  %v1984_v53 = vsub.f32 %v6589_v34, %v1963_v35  ;;  %v1965_v27 = vpop.xlane.xlu1 %1964  ;;  %2184 = vadd.xlane.f32.xlu1 %v6889_v19 }
 0x350   : > { %5276 = vpow2.f32 %v1868_v59  ;;  %v1985_v44 = vsub.f32 %v6602_v37, %v1965_v27 }
 0x351   : > { %v6895_v54 = vpop.eup %5266  ;;  %v2010_v24 = vmul.f32 1.442695, %v1984_v53 }
 0x352   : > { %v6897_v11 = vpop.eup %5268  ;;  %2326 = vadd.xlane.f32.xlu0 %v6895_v54  ;;  %v2251_v45 = vpop.xlane.xlu0 %2250  ;;  %v2012_v34 = vmul.f32 1.442695, %v1985_v44 }
 0x353   : > { %5278 = vpow2.f32 %v2010_v24  ;;  %v2272_v25 = vsub.f32 %v6592_v21, %v2251_v45  ;;  %v2253_v48 = vpop.xlane.xlu1 %2252  ;;  %2040 = vadd.xlane.f32.xlu1 %v6897_v11 }
 0x354   : > { %5280 = vpow2.f32 %v2156_v61  ;;  %v2273_v59 = vsub.f32 %v6605_v30, %v2253_v48 }
 0x355   : > { %v6903_v33 = vpop.eup %5270  ;;  %v2298_v37 = vmul.f32 1.442695, %v2272_v25 }
 0x356   : > { %v6905_v35 = vpop.eup %5272  ;;  %1898 = vadd.xlane.f32.xlu0 %v6903_v33  ;;  %v1823_v53 = vpop.xlane.xlu0 %1822  ;;  %v2300_v21 = vmul.f32 1.442695, %v2273_v59 }
 0x357   : > { %5282 = vpow2.f32 %v2298_v37  ;;  %v1842_v27 = vsub.f32 %v6623_v42, %v1823_v53  ;;  %v1825_v24 = vpop.xlane.xlu1 %1824  ;;  %2328 = vadd.xlane.f32.xlu1 %v6905_v35 }
 0x358   : > { %5284 = vpow2.f32 %v2012_v34  ;;  %v1843_v61 = vsub.f32 %v6639_v23, %v1825_v24 }
 0x359   : > { %v6911_v44 = vpop.eup %5274  ;;  %v1870_v30 = vmul.f32 1.442695, %v1842_v27 }
 0x35a   : > { %8407 = vst [vmem:[#allocation26_spill] sm:$0xff] %v6911_v44  ;;  %v6913_v45 = vpop.eup %5276  ;;  %2186 = vadd.xlane.f32.xlu0 %v6911_v44  ;;  %v2111_v25 = vpop.xlane.xlu0 %2110  ;;  %v1872_v42 = vmul.f32 1.442695, %v1843_v61  ;;  %v8419_v44 = vld [vmem:[#allocation35_spill] sm:$0xff] }
 0x35b   : > { %5286 = vpow2.f32 %v1870_v30  ;;  %v2130_v48 = vsub.f32 %v6626_v17, %v2111_v25  ;;  %v2113_v37 = vpop.xlane.xlu1 %2112  ;;  %1900 = vadd.xlane.f32.xlu1 %v6913_v45 }
 0x35c   : > { %5288 = vpow2.f32 %v2300_v21  ;;  %v2131_v34 = vsub.f32 %v6642_v18, %v2113_v37 }
 0x35d   : > { %v6919_v59 = vpop.eup %5278  ;;  %v2158_v23 = vmul.f32 1.442695, %v2130_v48 }
 0x35e   : > { %v6921_v53 = vpop.eup %5280  ;;  %2042 = vadd.xlane.f32.xlu0 %v6919_v59  ;;  %v1967_v27 = vpop.xlane.xlu0 %1966  ;;  %v2160_v17 = vmul.f32 1.442695, %v2131_v34 }
 0x35f   : > { %5290 = vpow2.f32 %v2158_v23  ;;  %v1986_v24 = vsub.f32 %v6633_v32, %v1967_v27  ;;  %v1969_v30 = vpop.xlane.xlu1 %1968  ;;  %2188 = vadd.xlane.f32.xlu1 %v6921_v53 }
 0x360   : > { %5292 = vpow2.f32 %v1872_v42  ;;  %v1987_v21 = vsub.f32 %v6646_v9, %v1969_v30 }
 0x361   : > { %v6927_v61 = vpop.eup %5282  ;;  %v2014_v18 = vmul.f32 1.442695, %v1986_v24 }
 0x362   : > { %8408 = vst [vmem:[#allocation27_spill] sm:$0xff] %v6927_v61  ;;  %v6929_v25 = vpop.eup %5284  ;;  %2330 = vadd.xlane.f32.xlu0 %v6927_v61  ;;  %v2255_v48 = vpop.xlane.xlu0 %2254  ;;  %v2016_v32 = vmul.f32 1.442695, %v1987_v21 }
 0x363   : > { %5294 = vpow2.f32 %v2014_v18  ;;  %v2274_v37 = vsub.f32 %v6636_v46, %v2255_v48  ;;  %v2257_v23 = vpop.xlane.xlu1 %2256  ;;  %2044 = vadd.xlane.f32.xlu1 %v6929_v25 }
 0x364   : > { %5296 = vpow2.f32 %v2160_v17  ;;  %v2275_v42 = vsub.f32 %v6649_v7, %v2257_v23 }
 0x365   : > { %v6935_v34 = vpop.eup %5286  ;;  %v2302_v9 = vmul.f32 1.442695, %v2274_v37 }
 0x366   : > { %8409 = vst [vmem:[#allocation28_spill] sm:$0xff] %v6935_v34  ;;  %v6937_v27 = vpop.eup %5288  ;;  %1902 = vadd.xlane.f32.xlu0 %v6935_v34  ;;  %v1827_v24 = vpop.xlane.xlu0 %1826  ;;  %v2304_v46 = vmul.f32 1.442695, %v2275_v42  ;;  %v8415_v42 = vld [vmem:[#allocation36_spill] sm:$0xff] }
 0x367   : > { %8410 = vst [vmem:[#allocation29_spill] sm:$0xff] %v6937_v27  ;;  %5298 = vpow2.f32 %v2302_v9  ;;  %v1844_v30 = vsub.f32 %v6667_v12, %v1827_v24  ;;  %v1829_v18 = vpop.xlane.xlu1 %1828  ;;  %2332 = vadd.xlane.f32.xlu1 %v6937_v27  ;;  %v8420_v27 = vld [vmem:[#allocation37_spill] sm:$0xff] }
 0x368   : > { %5300 = vpow2.f32 %v2016_v32  ;;  %v1845_v17 = vsub.f32 %v6683_v39, %v1829_v18  ;;  %v8416_v18 = vld [vmem:[#allocation39_spill] sm:$0xff] }
 0x369   : > { %v6943_v21 = vpop.eup %5290  ;;  %v1874_v7 = vmul.f32 1.442695, %v1844_v30 }
 0x36a   : > { %8411 = vst [vmem:[#allocation30_spill] sm:$0xff] %v6943_v21  ;;  %v6945_v48 = vpop.eup %5292  ;;  %2190 = vadd.xlane.f32.xlu0 %v6943_v21  ;;  %v2115_v37 = vpop.xlane.xlu0 %2114  ;;  %v1876_v12 = vmul.f32 1.442695, %v1845_v17 }
 0x36b   : > { %8412 = vst [vmem:[#allocation31_spill] sm:$0xff] %v6945_v48  ;;  %5302 = vpow2.f32 %v1874_v7  ;;  %v2117_v23 = vpop.xlane.xlu1 %2116  ;;  %1904 = vadd.xlane.f32.xlu1 %v6945_v48 }
 0x36c   : > { %5304 = vpow2.f32 %v2304_v46 }
 0x36d   : > { %v6949_v9 = vpop.eup %5294  ;;  %5306 = vpow2.f32 %v1876_v12  ;;  %v8421_v12 = vld [vmem:[#allocation38_spill] sm:$0xff] }
 0x36e   : > { %8413 = vst [vmem:[#allocation32_spill] sm:$0xff] %v6949_v9  ;;  %v6951_v32 = vpop.eup %5296  ;;  %2046 = vadd.xlane.f32.xlu0 %v6949_v9  ;;  %v1971_v39 = vpop.xlane.xlu0 %1970  ;;  %v2132_v9 = vsub.f32 %v8419_v44, %v2115_v37 }
 0x36f   : > { %8414 = vst [vmem:[#allocation33_spill] sm:$0xff] %v6951_v32  ;;  %v1988_v24 = vsub.f32 %v8415_v42, %v1971_v39  ;;  %v1973_v30 = vpop.xlane.xlu1 %1972  ;;  %2192 = vadd.xlane.f32.xlu1 %v6951_v32  ;;  %v2133_v32 = vsub.f32 %v8421_v12, %v2117_v23 }
 0x370   : > { %v1989_v7 = vsub.f32 %v8416_v18, %v1973_v30  ;;  %v8422_v30 = vld [vmem:[#allocation40_spill] sm:$0xff]  ;;  %v2162_v44 = vmul.f32 1.442695, %v2132_v9 }
 0x371   : > { %v6957_v21 = vpop.eup %5298  ;;  %v2018_v34 = vmul.f32 1.442695, %v1988_v24 }
 0x372   : > { %8417 = vst [vmem:[#allocation34_spill] sm:$0xff] %v6957_v21  ;;  %v6959_v46 = vpop.eup %5300  ;;  %v2020_v17 = vmul.f32 1.442695, %v1989_v7  ;;  %2334 = vadd.xlane.f32.xlu0 %v6957_v21  ;;  %v2259_v48 = vpop.xlane.xlu0 %2258 }
 0x373   : > { %8418 = vst [vmem:[#allocation36_spill] sm:$0xff] %v6959_v46  ;;  %5308 = vpow2.f32 %v2018_v34  ;;  %v2276_v39 = vsub.f32 %v8420_v27, %v2259_v48  ;;  %v2261_v42 = vpop.xlane.xlu1 %2260  ;;  %2048 = vadd.xlane.f32.xlu1 %v6959_v46  ;;  %v2164_v34 = vmul.f32 1.442695, %v2133_v32 }
 0x374   : > { %5310 = vpow2.f32 %v2020_v17  ;;  %v2277_v18 = vsub.f32 %v8422_v30, %v2261_v42 }
 0x375   : > { %v6967_v24 = vpop.eup %5302  ;;  %v2306_v61 = vmul.f32 1.442695, %v2276_v39 }
 0x376   : > { %8423 = vst [vmem:[#allocation39_spill] sm:$0xff] %v6967_v24  ;;  %v6969_v7 = vpop.eup %5304  ;;  %v2308_v21 = vmul.f32 1.442695, %v2277_v18  ;;  %1906 = vadd.xlane.f32.xlu0 %v6967_v24 }
 0x377   : > { %8424 = vst [vmem:[#allocation35_spill] sm:$0xff] %v6969_v7  ;;  %5312 = vpow2.f32 %v2306_v61  ;;  %2336 = vadd.xlane.f32.xlu1 %v6969_v7  ;;  %v6973_v27 = vpop.eup %5306 }
 0x378   : > { %5314 = vpow2.f32 %v2308_v21  ;;  %8425 = vst [vmem:[#allocation37_spill] sm:$0xff] %v6973_v27 }
 0x379   : > { %5316 = vpow2.f32 %v2162_v44 }
 0x37a   : > { %5318 = vpow2.f32 %v2164_v34 }
 0x37b   : > { %1908 = vadd.xlane.f32.xlu1 %v6973_v27 }
 0x37d   : > { %v6976_v48 = vpop.eup %5308 }
 0x37e   : > { %8426 = vst [vmem:[#allocation38_spill] sm:$0xff] %v6976_v48  ;;  %v6978_v37 = vpop.eup %5310  ;;  %2050 = vadd.xlane.f32.xlu0 %v6976_v48 }
 0x37f   : > { %8427 = vst [vmem:[#allocation40_spill] sm:$0xff] %v6978_v37  ;;  %2052 = vadd.xlane.f32.xlu1 %v6978_v37 }
 0x381   : > { %v6982_v23 = vpop.eup %5312 }
 0x382   : > { %8428 = vst [vmem:[#allocation41_spill] sm:$0xff] %v6982_v23  ;;  %v6984_v61 = vpop.eup %5314  ;;  %2338 = vadd.xlane.f32.xlu0 %v6982_v23 }
 0x383   : > { %8429 = vst [vmem:[#allocation42_spill] sm:$0xff] %v6984_v61  ;;  %2340 = vadd.xlane.f32.xlu1 %v6984_v61  ;;  %v6988_v21 = vpop.eup %5316 }
 0x384   : > { %8430 = vst [vmem:[#allocation43_spill] sm:$0xff] %v6988_v21  ;;  %v6990_v9 = vpop.eup %5318 }
 0x385   : > { %8431 = vst [vmem:[#allocation44_spill] sm:$0xff] %v6990_v9 }
 0x386   : > { %2194 = vadd.xlane.f32.xlu0 %v6988_v21  ;;  %v5144_v21 = vld [vmem:[%s5906_s27] sm:$0xff]  }
 0x387   : > { %2196 = vadd.xlane.f32.xlu1 %v6990_v9  ;;  %4951 = vmatprep.subr.bf16.mxu0 %v5144_v21 }
 0x393   : > { %v1879_v32 = vpop.xlane.xlu0 %1878 }
 0x397   : > { %v2167_v17 = vpop.xlane.xlu0 %2166 }
 0x398   : > { %v1881_v39 = vpop.xlane.xlu1 %1880 }
 0x399   : > { %5320 = vrcp.f32 %v1881_v39 }
 0x39b   : > { %v2023_v42 = vpop.xlane.xlu0 %2022 }
 0x39c   : > { %v2169_v12 = vpop.xlane.xlu1 %2168  ;;  %5322 = vrcp.f32 %v2023_v42 }
 0x39d   : > { %5324 = vrcp.f32 %v1879_v32 }
 0x39f   : > { %v2311_v30 = vpop.xlane.xlu0 %2310 }
 0x3a0   : > { %v2025_v18 = vpop.xlane.xlu1 %2024 }
 0x3a1   : > { %5326 = vrcp.f32 %v2025_v18 }
 0x3a2   : > { %5328 = vrcp.f32 %v2169_v12 }
 0x3a3   : > { %5330 = vrcp.f32 %v2311_v30  ;;  %v1883_v44 = vpop.xlane.xlu0 %1882  ;;  %v5321_v61 = vpop.eup %5320 }
 0x3a4   : > { %5332 = vrcp.f32 %v2167_v17  ;;  %v2313_v34 = vpop.xlane.xlu1 %2312  ;;  %v6996_v39 = vmul.f32 %v5321_v61, %v6753_v14 }
 0x3a5   : > { %5334 = vrcp.f32 %v2313_v34 }
 0x3a6   : > { %v5323_v24 = vpop.eup %5322 }
 0x3a7   : > { %v2171_v9 = vpop.xlane.xlu0 %2170  ;;  %v5325_v37 = vpop.eup %5324  ;;  %v6999_v12 = vmul.f32 %v5323_v24, %v6759_v62 }
 0x3a8   : > { %v1885_v23 = vpop.xlane.xlu1 %1884  ;;  %v7005_v34 = vmul.f32 %v5325_v37, %v6746_v2 }
 0x3a9   : > { %5336 = vrcp.f32 %v1885_v23 }
 0x3aa   : > { %v2374_v62 = vpack.c.bf16 %v6996_v39, %v7005_v34 }
 0x3ab   : > { %v5327_v27 = vpop.eup %5326  ;;  %v2027_v32 = vpop.xlane.xlu0 %2026 }
 0x3ac   : > { %v5329_v42 = vpop.eup %5328  ;;  %v2173_v18 = vpop.xlane.xlu1 %2172  ;;  %v7002_v17 = vmul.f32 %v5327_v27, %v6769_v28  ;;  %5338 = vrcp.f32 %v2027_v32 }
 0x3ad   : > { %v5331_v30 = vpop.eup %5330  ;;  %v7010_v61 = vmul.f32 %v5329_v42, %v6761_v0  ;;  %5340 = vrcp.f32 %v1883_v44 }
 0x3ae   : > { %8432 = vst [vmem:[#allocation45_spill] sm:$0xff] %v7002_v17  ;;  %v5333_v48 = vpop.eup %5332  ;;  %v2375_v7 = vpack.c.bf16 %v7002_v17, %v6999_v12  ;;  %v7015_v2 = vmul.f32 %v5331_v30, %v6766_v41 }
 0x3af   : > { %v5335_v14 = vpop.eup %5334  ;;  %8433 = vst [vmem:[#allocation46_spill] sm:$0xff] %v7010_v61  ;;  %v2315_v46 = vpop.xlane.xlu0 %2314  ;;  %v7021_v27 = vmul.f32 %v5333_v48, %v6751_v26 }
 0x3b0   : > { %v2029_v28 = vpop.xlane.xlu1 %2028  ;;  %2438 = vmatprep.mubr.bf16.mxu0 %v2375_v7  ;;  %8434 = vst [vmem:[#allocation47_spill] sm:$0xff] %v7015_v2  ;;  %v7018_v24 = vmul.f32 %v5335_v14, %v6777_v1 }
 0x3b1   : > { %8436 = vst [vmem:[#allocation49_spill] sm:$0xff] %v7021_v27  ;;  %5342 = vrcp.f32 %v2029_v28  ;;  %2439 = vmatmul.mubr.bf16.vlgmr.msra.gmra.mrb[64].mxu0 %v2374_v62  ;;  %v2376_v7 = vpack.c.bf16 %v7010_v61, %v7021_v27 }
 0x3b2   : > { %8435 = vst [vmem:[#allocation48_spill] sm:$0xff] %v7018_v24  ;;  %5344 = vrcp.f32 %v2173_v18  ;;  %v2377_v0 = vpack.c.bf16 %v7018_v24, %v7015_v2  ;;  %4952 = vmatpush3.bf16.msra.mxu0 %v5144_v21 }
 0x3b3   : > { %5346 = vrcp.f32 %v2315_v46  ;;  %v1887_v37 = vpop.xlane.xlu0 %1886  ;;  %v5337_v26 = vpop.eup %5336 }
 0x3b4   : > { %5348 = vrcp.f32 %v2171_v9  ;;  %v2317_v41 = vpop.xlane.xlu1 %2316  ;;  %2535 = vmatprep.mubr.bf16.mxu1 %v2377_v0  ;;  %v7028_v18 = vmul.f32 %v5337_v26, %v6785_v16 }
 0x3b5   : > { %5350 = vrcp.f32 %v2317_v41  ;;  %2536 = vmatmul.mubr.bf16.vlgmr.msra.gmra.mrb[48].mxu1 %v2376_v7 }
 0x3b6   : > { %v5339_v23 = vpop.eup %5338 }
 0x3b7   : > { %v2175_v1 = vpop.xlane.xlu0 %2174  ;;  %v5341_v44 = vpop.eup %5340  ;;  %v7031_v30 = vmul.f32 %v5339_v23, %v6791_v40 }
 0x3b8   : > { %v1889_v48 = vpop.xlane.xlu1 %1888  ;;  %v7037_v62 = vmul.f32 %v5341_v44, %v6775_v5 }
 0x3b9   : > { %8437 = vst [vmem:[#allocation50_spill] sm:$0xff] %v7031_v30  ;;  %5352 = vrcp.f32 %v1889_v48 }
 0x3ba   : > { %v2378_v41 = vpack.c.bf16 %v7028_v18, %v7037_v62 }
 0x3bb   : > { %v5343_v32 = vpop.eup %5342  ;;  %v2031_v42 = vpop.xlane.xlu0 %2030 }
 0x3bc   : > { %v5345_v46 = vpop.eup %5344  ;;  %v2177_v21 = vpop.xlane.xlu1 %2176  ;;  %v7034_v9 = vmul.f32 %v5343_v32, %v6801_v4  ;;  %5354 = vrcp.f32 %v2031_v42 }
 0x3bd   : > { %v5347_v14 = vpop.eup %5346  ;;  %v7044_v40 = vmul.f32 %v5345_v46, %v6793_v38  ;;  %5356 = vrcp.f32 %v1887_v37 }
 0x3be   : > { %8438 = vst [vmem:[#allocation51_spill] sm:$0xff] %v7034_v9  ;;  %v5349_v28 = vpop.eup %5348  ;;  %v2379_v0 = vpack.c.bf16 %v7034_v9, %v7031_v30  ;;  %v7047_v5 = vmul.f32 %v5347_v14, %v6799_v58 }
 0x3bf   : > { %v5351_v7 = vpop.eup %5350  ;;  %v2319_v16 = vpop.xlane.xlu0 %2318  ;;  %8439 = vst [vmem:[#allocation52_spill] sm:$0xff] %v7044_v40  ;;  %v7053_v48 = vmul.f32 %v5349_v28, %v6783_v60 }
 0x3c0   : > { %v2033_v4 = vpop.xlane.xlu1 %2032  ;;  %2446 = vmatprep.mubr.bf16.mxu0 %v2379_v0  ;;  %8440 = vst [vmem:[#allocation53_spill] sm:$0xff] %v7047_v5  ;;  %v7050_v26 = vmul.f32 %v5351_v7, %v6809_v20 }
 0x3c1   : > { %5358 = vrcp.f32 %v2033_v4  ;;  %2447 = vmatmul.mubr.bf16.gmra.mrb[68].mxu0 %v2378_v41  ;;  %8442 = vst [vmem:[#allocation55_spill] sm:$0xff] %v7053_v48  ;;  %v2380_v37 = vpack.c.bf16 %v7044_v40, %v7053_v48 }
 0x3c2   : > { %8441 = vst [vmem:[#allocation54_spill] sm:$0xff] %v7050_v26  ;;  %5360 = vrcp.f32 %v2177_v21  ;;  %v2381_v23 = vpack.c.bf16 %v7050_v26, %v7047_v5 }
 0x3c3   : > { %5362 = vrcp.f32 %v2319_v16  ;;  %v1891_v38 = vpop.xlane.xlu0 %1890  ;;  %v5353_v44 = vpop.eup %5352 }
 0x3c4   : > { %5364 = vrcp.f32 %v2175_v1  ;;  %v2321_v58 = vpop.xlane.xlu1 %2320  ;;  %2543 = vmatprep.mubr.bf16.mxu1 %v2381_v23  ;;  %v7060_v14 = vmul.f32 %v5353_v44, %v6817_v10 }
 0x3c5   : > { %5366 = vrcp.f32 %v2321_v58  ;;  %2544 = vmatmul.mubr.bf16.gmra.mrb[52].mxu1 %v2380_v37 }
 0x3c6   : > { %v5355_v42 = vpop.eup %5354 }
 0x3c7   : > { %v2179_v20 = vpop.xlane.xlu0 %2178  ;;  %v5357_v60 = vpop.eup %5356  ;;  %v7063_v7 = vmul.f32 %v5355_v42, %v6823_v51 }
 0x3c8   : > { %v1893_v32 = vpop.xlane.xlu1 %1892  ;;  %v7069_v41 = vmul.f32 %v5357_v60, %v6807_v49 }
 0x3c9   : > { %8443 = vst [vmem:[#allocation56_spill] sm:$0xff] %v7063_v7  ;;  %5368 = vrcp.f32 %v1893_v32 }
 0x3ca   : > { %v2382_v58 = vpack.c.bf16 %v7060_v14, %v7069_v41 }
 0x3cb   : > { %v5359_v46 = vpop.eup %5358  ;;  %v2035_v21 = vpop.xlane.xlu0 %2034 }
 0x3cc   : > { %v5361_v28 = vpop.eup %5360  ;;  %v2181_v0 = vpop.xlane.xlu1 %2180  ;;  %v7066_v1 = vmul.f32 %v5359_v46, %v6833_v31  ;;  %5370 = vrcp.f32 %v2035_v21 }
 0x3cd   : > { %v5363_v16 = vpop.eup %5362  ;;  %v7076_v51 = vmul.f32 %v5361_v28, %v6825_v29  ;;  %5372 = vrcp.f32 %v1891_v38 }
 0x3ce   : > { %8444 = vst [vmem:[#allocation57_spill] sm:$0xff] %v7066_v1  ;;  %v5365_v4 = vpop.eup %5364  ;;  %v2383_v23 = vpack.c.bf16 %v7066_v1, %v7063_v7  ;;  %v7079_v49 = vmul.f32 %v5363_v16, %v6831_v63 }
 0x3cf   : > { %v5367_v37 = vpop.eup %5366  ;;  %v2323_v10 = vpop.xlane.xlu0 %2322  ;;  %8445 = vst [vmem:[#allocation58_spill] sm:$0xff] %v7076_v51  ;;  %v7085_v32 = vmul.f32 %v5365_v4, %v6815_v6 }
 0x3d0   : > { %v2037_v31 = vpop.xlane.xlu1 %2036  ;;  %2454 = vmatprep.mubr.bf16.mxu0 %v2383_v23  ;;  %8446 = vst [vmem:[#allocation59_spill] sm:$0xff] %v7079_v49  ;;  %v7082_v44 = vmul.f32 %v5367_v37, %v6841_v55 }
 0x3d1   : > { %5374 = vrcp.f32 %v2037_v31  ;;  %2455 = vmatmul.mubr.bf16.gmra.mrb[72].mxu0 %v2382_v58  ;;  %8448 = vst [vmem:[#allocation61_spill] sm:$0xff] %v7085_v32  ;;  %v2384_v38 = vpack.c.bf16 %v7076_v51, %v7085_v32 }
 0x3d2   : > { %8447 = vst [vmem:[#allocation60_spill] sm:$0xff] %v7082_v44  ;;  %5376 = vrcp.f32 %v2181_v0  ;;  %v2385_v42 = vpack.c.bf16 %v7082_v44, %v7079_v49  ;;  %v8494_v49 = vld [vmem:[#allocation43_spill] sm:$0xff] }
 0x3d3   : > { %5378 = vrcp.f32 %v2323_v10  ;;  %v1895_v29 = vpop.xlane.xlu0 %1894  ;;  %v5369_v60 = vpop.eup %5368 }
 0x3d4   : > { %5380 = vrcp.f32 %v2179_v20  ;;  %v2325_v63 = vpop.xlane.xlu1 %2324  ;;  %2551 = vmatprep.mubr.bf16.mxu1 %v2385_v42  ;;  %v7092_v16 = vmul.f32 %v5369_v60, %v6849_v47 }
 0x3d5   : > { %5382 = vrcp.f32 %v2325_v63  ;;  %2552 = vmatmul.mubr.bf16.gmra.mrb[56].mxu1 %v2384_v38 }
 0x3d6   : > { %v5371_v21 = vpop.eup %5370 }
 0x3d7   : > { %v2183_v55 = vpop.xlane.xlu0 %2182  ;;  %v5373_v6 = vpop.eup %5372  ;;  %v7095_v37 = vmul.f32 %v5371_v21, %v6855_v43 }
 0x3d8   : > { %v1897_v46 = vpop.xlane.xlu1 %1896  ;;  %v7101_v58 = vmul.f32 %v5373_v6, %v6839_v22 }
 0x3d9   : > { %8449 = vst [vmem:[#allocation62_spill] sm:$0xff] %v7095_v37  ;;  %5384 = vrcp.f32 %v1897_v46 }
 0x3da   : > { %v2386_v63 = vpack.c.bf16 %v7092_v16, %v7101_v58 }
 0x3db   : > { %v5375_v28 = vpop.eup %5374  ;;  %v2039_v0 = vpop.xlane.xlu0 %2038 }
 0x3dc   : > { %v5377_v4 = vpop.eup %5376  ;;  %v2185_v23 = vpop.xlane.xlu1 %2184  ;;  %v7098_v20 = vmul.f32 %v5375_v28, %v6865_v56  ;;  %5386 = vrcp.f32 %v2039_v0 }
 0x3dd   : > { %v5379_v10 = vpop.eup %5378  ;;  %v7108_v43 = vmul.f32 %v5377_v4, %v6857_v13  ;;  %5388 = vrcp.f32 %v1895_v29 }
 0x3de   : > { %8450 = vst [vmem:[#allocation63_spill] sm:$0xff] %v7098_v20  ;;  %v5381_v31 = vpop.eup %5380  ;;  %v2387_v42 = vpack.c.bf16 %v7098_v20, %v7095_v37  ;;  %v7111_v22 = vmul.f32 %v5379_v10, %v6863_v36 }
 0x3df   : > { %v5383_v38 = vpop.eup %5382  ;;  %v2327_v47 = vpop.xlane.xlu0 %2326  ;;  %8451 = vst [vmem:[#allocation64_spill] sm:$0xff] %v7108_v43  ;;  %v7117_v46 = vmul.f32 %v5381_v31, %v6847_v15 }
 0x3e0   : > { %v2041_v56 = vpop.xlane.xlu1 %2040  ;;  %2462 = vmatprep.mubr.bf16.mxu0 %v2387_v42  ;;  %8452 = vst [vmem:[#allocation65_spill] sm:$0xff] %v7111_v22  ;;  %v7114_v60 = vmul.f32 %v5383_v38, %v6873_v8 }
 0x3e1   : > { %5390 = vrcp.f32 %v2041_v56  ;;  %2463 = vmatmul.mubr.bf16.gmra.mrb[76].mxu0 %v2386_v63  ;;  %8454 = vst [vmem:[#allocation67_spill] sm:$0xff] %v7117_v46  ;;  %v2388_v29 = vpack.c.bf16 %v7108_v43, %v7117_v46 }
 0x3e2   : > { %8453 = vst [vmem:[#allocation66_spill] sm:$0xff] %v7114_v60  ;;  %5392 = vrcp.f32 %v2185_v23  ;;  %v2389_v21 = vpack.c.bf16 %v7114_v60, %v7111_v22  ;;  %v8482_v60 = vld [vmem:[#allocation30_spill] sm:$0xff] }
 0x3e3   : > { %5394 = vrcp.f32 %v2327_v47  ;;  %v1899_v13 = vpop.xlane.xlu0 %1898  ;;  %v5385_v6 = vpop.eup %5384 }
 0x3e4   : > { %5396 = vrcp.f32 %v2183_v55  ;;  %v2329_v36 = vpop.xlane.xlu1 %2328  ;;  %2559 = vmatprep.mubr.bf16.mxu1 %v2389_v21  ;;  %v7124_v10 = vmul.f32 %v5385_v6, %v6881_v50 }
 0x3e5   : > { %5398 = vrcp.f32 %v2329_v36  ;;  %2560 = vmatmul.mubr.bf16.gmra.mrb[60].mxu1 %v2388_v29 }
 0x3e6   : > { %v5387_v0 = vpop.eup %5386 }
 0x3e7   : > { %v2187_v8 = vpop.xlane.xlu0 %2186  ;;  %v5389_v15 = vpop.eup %5388  ;;  %v7127_v38 = vmul.f32 %v5387_v0, %v6887_v52 }
 0x3e8   : > { %v1901_v28 = vpop.xlane.xlu1 %1900  ;;  %v7133_v63 = vmul.f32 %v5389_v15, %v6871_v3 }
 0x3e9   : > { %8455 = vst [vmem:[#allocation68_spill] sm:$0xff] %v7127_v38  ;;  %5400 = vrcp.f32 %v1901_v28 }
 0x3ea   : > { %v2390_v36 = vpack.c.bf16 %v7124_v10, %v7133_v63 }
 0x3eb   : > { %v5391_v4 = vpop.eup %5390  ;;  %v2043_v23 = vpop.xlane.xlu0 %2042 }
 0x3ec   : > { %v5393_v31 = vpop.eup %5392  ;;  %v2189_v42 = vpop.xlane.xlu1 %2188  ;;  %v7130_v55 = vmul.f32 %v5391_v4, %v6897_v11  ;;  %5402 = vrcp.f32 %v2043_v23 }
 0x3ed   : > { %v5395_v47 = vpop.eup %5394  ;;  %v7140_v52 = vmul.f32 %v5393_v31, %v6889_v19  ;;  %5404 = vrcp.f32 %v1899_v13 }
 0x3ee   : > { %8456 = vst [vmem:[#allocation69_spill] sm:$0xff] %v7130_v55  ;;  %v5397_v56 = vpop.eup %5396  ;;  %v2391_v21 = vpack.c.bf16 %v7130_v55, %v7127_v38  ;;  %v7143_v3 = vmul.f32 %v5395_v47, %v6895_v54 }
 0x3ef   : > { %v5399_v29 = vpop.eup %5398  ;;  %v2331_v50 = vpop.xlane.xlu0 %2330  ;;  %8457 = vst [vmem:[#allocation70_spill] sm:$0xff] %v7140_v52  ;;  %v7149_v28 = vmul.f32 %v5397_v56, %v6879_v57 }
 0x3f0   : > { %v2045_v11 = vpop.xlane.xlu1 %2044  ;;  %2470 = vmatprep.mubr.bf16.mxu0 %v2391_v21  ;;  %8458 = vst [vmem:[#allocation71_spill] sm:$0xff] %v7143_v3  ;;  %v7146_v6 = vmul.f32 %v5399_v29, %v6905_v35 }
 0x3f1   : > { %5406 = vrcp.f32 %v2045_v11  ;;  %2471 = vmatmul.mubr.bf16.gmra.mrb[80].mxu0 %v2390_v36  ;;  %8460 = vst [vmem:[#allocation73_spill] sm:$0xff] %v7149_v28  ;;  %v2392_v13 = vpack.c.bf16 %v7140_v52, %v7149_v28 }
 0x3f2   : > { %8459 = vst [vmem:[#allocation72_spill] sm:$0xff] %v7146_v6  ;;  %5408 = vrcp.f32 %v2189_v42  ;;  %v2393_v0 = vpack.c.bf16 %v7146_v6, %v7143_v3 }
 0x3f3   : > { %5410 = vrcp.f32 %v2331_v50  ;;  %v1903_v19 = vpop.xlane.xlu0 %1902  ;;  %v5401_v15 = vpop.eup %5400 }
 0x3f4   : > { %5412 = vrcp.f32 %v2187_v8  ;;  %v2333_v54 = vpop.xlane.xlu1 %2332  ;;  %2567 = vmatprep.mubr.bf16.mxu1 %v2393_v0  ;;  %v7156_v47 = vmul.f32 %v5401_v15, %v6913_v45 }
 0x3f5   : > { %5414 = vrcp.f32 %v2333_v54  ;;  %2568 = vmatmul.mubr.bf16.gmra.mrb[64].mxu1 %v2392_v13 }
 0x3f6   : > { %v5403_v23 = vpop.eup %5402 }
 0x3f7   : > { %v2191_v35 = vpop.xlane.xlu0 %2190  ;;  %v5405_v57 = vpop.eup %5404  ;;  %v7159_v29 = vmul.f32 %v5403_v23, %v6919_v59 }
 0x3f8   : > { %v1905_v4 = vpop.xlane.xlu1 %1904  ;;  %v7165_v36 = vmul.f32 %v5405_v57, %v6903_v33  ;;  %v8464_v33 = vld [vmem:[#allocation27_spill] sm:$0xff]  ;;  %v8468_v57 = vld [vmem:[#allocation26_spill] sm:$0xff] }
 0x3f9   : > { %8461 = vst [vmem:[#allocation74_spill] sm:$0xff] %v7159_v29  ;;  %5416 = vrcp.f32 %v1905_v4  ;;  %v8466_v4 = vld [vmem:[#allocation29_spill] sm:$0xff] }
 0x3fa   : > { %v2394_v45 = vpack.c.bf16 %v7156_v47, %v7165_v36 }
 0x3fb   : > { %v5407_v31 = vpop.eup %5406  ;;  %v2047_v42 = vpop.xlane.xlu0 %2046 }
 0x3fc   : > { %v5409_v56 = vpop.eup %5408  ;;  %v2193_v21 = vpop.xlane.xlu1 %2192  ;;  %v7162_v8 = vmul.f32 %v5407_v31, %v6929_v25  ;;  %5418 = vrcp.f32 %v2047_v42 }
 0x3fd   : > { %v5411_v50 = vpop.eup %5410  ;;  %v7172_v59 = vmul.f32 %v5409_v56, %v6921_v53  ;;  %5420 = vrcp.f32 %v1903_v19  ;;  %v5145_v56 = vld [vmem:[%s5906_s27 + $0x8] sm:$0xff]  }
 0x3fe   : > { %8462 = vst [vmem:[#allocation75_spill] sm:$0xff] %v7162_v8  ;;  %v5413_v11 = vpop.eup %5412  ;;  %v2395_v0 = vpack.c.bf16 %v7162_v8, %v7159_v29  ;;  %v7175_v15 = vmul.f32 %v5411_v50, %v8464_v33  ;;  %4953 = vmatprep.subr.bf16.mxu0 %v5145_v56 }
 0x3ff   : > { %v5415_v13 = vpop.eup %5414  ;;  %8463 = vst [vmem:[#allocation76_spill] sm:$0xff] %v7172_v59  ;;  %v2335_v25 = vpop.xlane.xlu0 %2334  ;;  %v7181_v31 = vmul.f32 %v5413_v11, %v8468_v57  ;;  %4954 = vmatpush3.bf16.msra.mxu0 %v5145_v56 }
 0x400   : > { %v2049_v54 = vpop.xlane.xlu1 %2048  ;;  %2478 = vmatprep.mubr.bf16.mxu0 %v2395_v0  ;;  %8465 = vst [vmem:[#allocation27_spill] sm:$0xff] %v7175_v15  ;;  %v7178_v23 = vmul.f32 %v5415_v13, %v8466_v4 }
 0x401   : > { %5422 = vrcp.f32 %v2049_v54  ;;  %2479 = vmatmul.mubr.bf16.gmra.mrb[84].mxu0 %v2394_v45  ;;  %8469 = vst [vmem:[#allocation26_spill] sm:$0xff] %v7181_v31  ;;  %v2396_v19 = vpack.c.bf16 %v7172_v59, %v7181_v31  ;;  %v8470_v54 = vld [vmem:[#allocation31_spill] sm:$0xff] }
 0x402   : > { %8467 = vst [vmem:[#allocation29_spill] sm:$0xff] %v7178_v23  ;;  %5424 = vrcp.f32 %v2193_v21  ;;  %v2397_v53 = vpack.c.bf16 %v7178_v23, %v7175_v15  ;;  %v5146_v21 = vld [vmem:[%s5906_s27 + $0x10] sm:$0xff]   ;;  %v5147_v23 = vld [vmem:[%s5906_s27 + $0x18] sm:$0xff]   ;;  %v8475_v15 = vld [vmem:[#allocation28_spill] sm:$0xff] }
 0x403   : > { %5426 = vrcp.f32 %v2335_v25  ;;  %v1907_v50 = vpop.xlane.xlu0 %1906  ;;  %v5417_v11 = vpop.eup %5416  ;;  %4955 = vmatprep.subr.bf16.mxu0 %v5146_v21 }
 0x404   : > { %5428 = vrcp.f32 %v2191_v35  ;;  %v2337_v42 = vpop.xlane.xlu1 %2336  ;;  %2575 = vmatprep.mubr.bf16.mxu1 %v2397_v53  ;;  %v7190_v33 = vmul.f32 %v5417_v11, %v8470_v54  ;;  %4956 = vmatpush3.bf16.msra.mxu0 %v5146_v21  ;;  %v8471_v53 = vld [vmem:[#allocation32_spill] sm:$0xff] }
 0x405   : > { %5430 = vrcp.f32 %v2337_v42  ;;  %2576 = vmatmul.mubr.bf16.gmra.mrb[68].mxu1 %v2396_v19  ;;  %v8473_v42 = vld [vmem:[#allocation36_spill] sm:$0xff]  ;;  %4957 = vmatprep.subr.bf16.mxu0 %v5147_v23 }
 0x406   : > { %v5419_v13 = vpop.eup %5418  ;;  %v5148_v21 = vld [vmem:[%s5906_s27 + $0x20] sm:$0xff]  }
 0x407   : > { %v5421_v45 = vpop.eup %5420  ;;  %v7193_v19 = vmul.f32 %v5419_v13, %v8471_v53  ;;  %v8476_v53 = vld [vmem:[#allocation33_spill] sm:$0xff] }
 0x408   : > { %v1909_v0 = vpop.xlane.xlu1 %1908  ;;  %4958 = vmatpush3.bf16.msra.mxu0 %v5147_v23 }
 0x409   : > { %5432 = vrcp.f32 %v1909_v0  ;;  %8472 = vst [vmem:[#allocation31_spill] sm:$0xff] %v7193_v19  ;;  %4959 = vmatprep.subr.bf16.mxu0 %v5148_v21 }
 0x40a   : > { %5434 = vrcp.f32 %v1907_v50  ;;  %v7200_v50 = vmul.f32 %v5421_v45, %v8475_v15  ;;  %v8478_v15 = vld [vmem:[#allocation34_spill] sm:$0xff] }
 0x40b   : > { %v5423_v25 = vpop.eup %5422  ;;  %v2051_v35 = vpop.xlane.xlu0 %2050 }
 0x40c   : > { %v5425_v4 = vpop.eup %5424  ;;  %5436 = vrcp.f32 %v2051_v35  ;;  %v2053_v57 = vpop.xlane.xlu1 %2052  ;;  %v7196_v56 = vmul.f32 %v5423_v25, %v8473_v42  ;;  %v2398_v13 = vpack.c.bf16 %v7190_v33, %v7200_v50  ;;  %v8480_v42 = vld [vmem:[#allocation35_spill] sm:$0xff]  ;;  %4960 = vmatpush3.bf16.msra.mxu0 %v5148_v21  ;;  %v8487_v21 = vld [vmem:[#allocation40_spill] sm:$0xff] }
 0x40d   : > { %v5427_v0 = vpop.eup %5426  ;;  %5438 = vrcp.f32 %v2053_v57  ;;  %v7208_v25 = vmul.f32 %v5425_v4, %v8476_v53 }
 0x40e   : > { %8474 = vst [vmem:[#allocation32_spill] sm:$0xff] %v7196_v56  ;;  %v5429_v6 = vpop.eup %5428  ;;  %v2399_v11 = vpack.c.bf16 %v7196_v56, %v7193_v19  ;;  %v7211_v45 = vmul.f32 %v5427_v0, %v8478_v15  ;;  %v8486_v15 = vld [vmem:[#allocation37_spill] sm:$0xff] }
 0x40f   : > { %v5431_v35 = vpop.eup %5430  ;;  %v2339_v54 = vpop.xlane.xlu0 %2338  ;;  %8477 = vst [vmem:[#allocation36_spill] sm:$0xff] %v7208_v25  ;;  %v7217_v22 = vmul.f32 %v5429_v6, %v8482_v60  ;;  %v8484_v6 = vld [vmem:[#allocation38_spill] sm:$0xff] }
 0x410   : > { %5440 = vrcp.f32 %v2339_v54  ;;  %v2341_v57 = vpop.xlane.xlu1 %2340  ;;  %2486 = vmatprep.mubr.bf16.mxu0 %v2399_v11  ;;  %8479 = vst [vmem:[#allocation28_spill] sm:$0xff] %v7211_v45  ;;  %v7214_v3 = vmul.f32 %v5431_v35, %v8480_v42  ;;  %v5149_v35 = vld [vmem:[%s5906_s27 + $0x28] sm:$0xff]  }
 0x411   : > { %5442 = vrcp.f32 %v2341_v57  ;;  %2487 = vmatmul.mubr.bf16.gmra.mrb[88].mxu0 %v2398_v13  ;;  %8483 = vst [vmem:[#allocation34_spill] sm:$0xff] %v7217_v22  ;;  %v2400_v54 = vpack.c.bf16 %v7208_v25, %v7217_v22  ;;  %4961 = vmatprep.subr.bf16.mxu0 %v5149_v35 }
 0x412   : > { %8481 = vst [vmem:[#allocation33_spill] sm:$0xff] %v7214_v3  ;;  %v2401_v4 = vpack.c.bf16 %v7214_v3, %v7211_v45  ;;  %4962 = vmatpush3.bf16.msra.mxu0 %v5149_v35  ;;  %v8492_v35 = vld [vmem:[#allocation42_spill] sm:$0xff] }
 0x413   : > { %v2195_v23 = vpop.xlane.xlu0 %2194  ;;  %v5433_v0 = vpop.eup %5432 }
 0x414   : > { %5444 = vrcp.f32 %v2195_v23  ;;  %v2197_v11 = vpop.xlane.xlu1 %2196  ;;  %2583 = vmatprep.mubr.bf16.mxu1 %v2401_v4  ;;  %v5435_v53 = vpop.eup %5434  ;;  %v7228_v42 = vmul.f32 %v5433_v0, %v8486_v15  ;;  %v5150_v23 = vld [vmem:[%s5906_s27 + $0x30] sm:$0xff]   ;;  %v8489_v4 = vld [vmem:[#allocation39_spill] sm:$0xff] }
 0x415   : > { %5446 = vrcp.f32 %v2197_v11  ;;  %2584 = vmatmul.mubr.bf16.gmra.mrb[72].mxu1 %v2400_v54  ;;  %v7235_v45 = vmul.f32 %v5435_v53, %v8489_v4  ;;  %4963 = vmatprep.subr.bf16.mxu0 %v5150_v23  ;;  %v5151_v15 = vld [vmem:[%s5906_s27 + $0x38] sm:$0xff]  }
 0x416   : > { %v5437_v13 = vpop.eup %5436  ;;  %4964 = vmatpush3.bf16.msra.mxu0 %v5150_v23  ;;  %v8498_v23 = vmov 0  }
 0x417   : > { %v5439_v60 = vpop.eup %5438  ;;  %v7225_v57 = vmul.f32 %v5437_v13, %v8484_v6  ;;  %v2402_v13 = vpack.c.bf16 %v7228_v42, %v7235_v45  ;;  %v8490_v6 = vld [vmem:[#allocation41_spill] sm:$0xff]  ;;  %4965 = vmatprep.subr.bf16.mxu0 %v5151_v15 }
 0x418   : > { %v7231_v3 = vmul.f32 %v5439_v60, %v8487_v21 }
 0x419   : > { %8485 = vst [vmem:[#allocation35_spill] sm:$0xff] %v7225_v57 }
 0x41a   : > { %8488 = vst [vmem:[#allocation30_spill] sm:$0xff] %v7231_v3  ;;  %v5441_v11 = vpop.eup %5440  ;;  %v2403_v54 = vpack.c.bf16 %v7231_v3, %v7225_v57  ;;  %4966 = vmatpush3.bf16.msra.mxu0 %v5151_v15 }
 0x41b   : > { %v5443_v44 = vpop.eup %5442  ;;  %v7242_v0 = vmul.f32 %v5441_v11, %v8490_v6  ;;  %v8496_v11 = vld [vmem:[#allocation44_spill] sm:$0xff] }
 0x41c   : > { %2494 = vmatprep.mubr.bf16.mxu0 %v2403_v54  ;;  %v7245_v60 = vmul.f32 %v5443_v44, %v8492_v35 }
 0x41d   : > { %8491 = vst [vmem:[#allocation38_spill] sm:$0xff] %v7242_v0  ;;  %2495 = vmatmul.mubr.bf16.gmra.mrb[92].mxu0 %v2402_v13 }
 0x41e   : > { %8493 = vst [vmem:[#allocation37_spill] sm:$0xff] %v7245_v60  ;;  %v5445_v53 = vpop.eup %5444  ;;  %v2405_v21 = vpack.c.bf16 %v7245_v60, %v7242_v0 }
 0x41f   : > { %v5447_v4 = vpop.eup %5446  ;;  %v7251_v26 = vmul.f32 %v5445_v53, %v8494_v49 }
 0x420   : > { %2591 = vmatprep.mubr.bf16.mxu1 %v2405_v21  ;;  %v7254_v6 = vmul.f32 %v5447_v4, %v8496_v11 }
 0x421   : > { %8495 = vst [vmem:[#allocation40_spill] sm:$0xff] %v7251_v26 }
 0x422   : > { %8497 = vst [vmem:[#allocation39_spill] sm:$0xff] %v7254_v6  ;;  %v2404_v44 = vpack.c.bf16 %v7254_v6, %v7251_v26 }
 0x424   : > { %2592 = vmatmul.mubr.bf16.gmra.mrb[76].mxu1 %v2404_v44 }
 0x425   : > { %3195 = vmatprep.mubr.bf16.mxu1 %v8498_v23 }
 0x484   : > { %v4727_v54 = vpop.f32.mrb[64].mxu0 }
 0x485   : > { %v4728_v13 = vpop.f32.mrb[65].mxu0 }
 0x486   : > { %v4729_v35 = vadd.f32 %v4728_v13, %v4727_v54  ;;  %v4730_v60 = vpop.f32.mrb[66].mxu0 }
 0x487   : > { %v4731_v0 = vpop.f32.mrb[67].mxu0 }
 0x488   : > { %v4732_v5 = vadd.f32 %v4731_v0, %v4730_v60  ;;  %v4791_v24 = vpop.f32.mrb[48].mxu1 }
 0x489   : > { %v4792_v49 = vpop.f32.mrb[49].mxu1 }
 0x48a   : > { %v4793_v53 = vadd.f32 %v4792_v49, %v4791_v24  ;;  %v4794_v15 = vpop.f32.mrb[50].mxu1 }
 0x48b   : > { %v4795_v21 = vpop.f32.mrb[51].mxu1 }
 0x48c   : > { %v2538_v2 = vadd.f32 %v4793_v53, %v4729_v35  ;;  %v4796_v4 = vadd.f32 %v4795_v21, %v4794_v15 }
 0x48e   : > { %v2541_v11 = vadd.f32 %v4796_v4, %v4732_v5 }
 0x490   : > { %v2600_v25 = vpack.c.bf16 %v2541_v11, %v2538_v2 }
 0x492   : > { %4967 = vmatprep.mubr.bf16.mxu0 %v2600_v25 }
 0x494   : > { %v4733_v6 = vpop.f32.mrb[68].mxu0 }
 0x495   : > { %v4734_v44 = vpop.f32.mrb[69].mxu0 }
 0x496   : > { %v4735_v26 = vadd.f32 %v4734_v44, %v4733_v6  ;;  %v4736_v22 = vpop.f32.mrb[70].mxu0 }
 0x497   : > { %v4737_v59 = vpop.f32.mrb[71].mxu0 }
 0x498   : > { %v4738_v31 = vadd.f32 %v4737_v59, %v4736_v22  ;;  %v4797_v54 = vpop.f32.mrb[52].mxu1 }
 0x499   : > { %v4798_v13 = vpop.f32.mrb[53].mxu1 }
 0x49a   : > { %v4799_v52 = vadd.f32 %v4798_v13, %v4797_v54  ;;  %v4800_v0 = vpop.f32.mrb[54].mxu1 }
 0x49b   : > { %v4801_v60 = vpop.f32.mrb[55].mxu1 }
 0x49c   : > { %v2546_v28 = vadd.f32 %v4799_v52, %v4735_v26  ;;  %v4802_v24 = vadd.f32 %v4801_v60, %v4800_v0 }
 0x49e   : > { %v2549_v49 = vadd.f32 %v4802_v24, %v4738_v31 }
 0x4a0   : > { %v2601_v43 = vpack.c.bf16 %v2549_v49, %v2546_v28 }
 0x4a2   : > { %4968 = vmatmul.mubr.bf16.vlgmr.msra.gmra.mrb[96].mxu0 %v2601_v43 }
 0x4a4   : > { %v4739_v35 = vpop.f32.mrb[72].mxu0 }
 0x4a5   : > { %v4740_v5 = vpop.f32.mrb[73].mxu0 }
 0x4a6   : > { %v4741_v2 = vadd.f32 %v4740_v5, %v4739_v35  ;;  %v4742_v25 = vpop.f32.mrb[74].mxu0 }
 0x4a7   : > { %v4743_v53 = vpop.f32.mrb[75].mxu0 }
 0x4a8   : > { %v4744_v15 = vadd.f32 %v4743_v53, %v4742_v25  ;;  %v4803_v6 = vpop.f32.mrb[56].mxu1 }
 0x4a9   : > { %v4804_v21 = vpop.f32.mrb[57].mxu1 }
 0x4aa   : > { %v4805_v4 = vadd.f32 %v4804_v21, %v4803_v6  ;;  %v4806_v22 = vpop.f32.mrb[58].mxu1 }
 0x4ab   : > { %v4807_v59 = vpop.f32.mrb[59].mxu1 }
 0x4ac   : > { %v2554_v11 = vadd.f32 %v4805_v4, %v4741_v2  ;;  %v4808_v44 = vadd.f32 %v4807_v59, %v4806_v22 }
 0x4ae   : > { %v2557_v54 = vadd.f32 %v4808_v44, %v4744_v15 }
 0x4b0   : > { %v2602_v13 = vpack.c.bf16 %v2557_v54, %v2554_v11 }
 0x4b2   : > { %4971 = vmatprep.mubr.bf16.mxu0 %v2602_v13 }
 0x4b4   : > { %v4745_v26 = vpop.f32.mrb[76].mxu0 }
 0x4b5   : > { %v4746_v52 = vpop.f32.mrb[77].mxu0 }
 0x4b6   : > { %v4747_v28 = vadd.f32 %v4746_v52, %v4745_v26  ;;  %v4748_v43 = vpop.f32.mrb[78].mxu0 }
 0x4b7   : > { %v4749_v31 = vpop.f32.mrb[79].mxu0 }
 0x4b8   : > { %v4750_v0 = vadd.f32 %v4749_v31, %v4748_v43  ;;  %v4809_v60 = vpop.f32.mrb[60].mxu1 }
 0x4b9   : > { %v4810_v24 = vpop.f32.mrb[61].mxu1 }
 0x4ba   : > { %v4811_v49 = vadd.f32 %v4810_v24, %v4809_v60  ;;  %v4812_v35 = vpop.f32.mrb[62].mxu1 }
 0x4bb   : > { %v4813_v5 = vpop.f32.mrb[63].mxu1 }
 0x4bc   : > { %v2562_v25 = vadd.f32 %v4811_v49, %v4747_v28  ;;  %v4814_v53 = vadd.f32 %v4813_v5, %v4812_v35 }
 0x4be   : > { %v2565_v6 = vadd.f32 %v4814_v53, %v4750_v0 }
 0x4c0   : > { %v2603_v21 = vpack.c.bf16 %v2565_v6, %v2562_v25 }
 0x4c2   : > { %4972 = vmatmul.mubr.bf16.gmra.mrb[100].mxu0 %v2603_v21 }
 0x4c4   : > { %v4751_v2 = vpop.f32.mrb[80].mxu0 }
 0x4c5   : > { %v4752_v15 = vpop.f32.mrb[81].mxu0 }
 0x4c6   : > { %v4753_v4 = vadd.f32 %v4752_v15, %v4751_v2  ;;  %v4754_v22 = vpop.f32.mrb[82].mxu0 }
 0x4c7   : > { %v4755_v59 = vpop.f32.mrb[83].mxu0 }
 0x4c8   : > { %v4756_v11 = vadd.f32 %v4755_v59, %v4754_v22  ;;  %v4815_v44 = vpop.f32.mrb[64].mxu1 }
 0x4c9   : > { %v4816_v54 = vpop.f32.mrb[65].mxu1 }
 0x4ca   : > { %v4817_v13 = vadd.f32 %v4816_v54, %v4815_v44  ;;  %v4818_v26 = vpop.f32.mrb[66].mxu1 }
 0x4cb   : > { %v4819_v52 = vpop.f32.mrb[67].mxu1 }
 0x4cc   : > { %v2570_v43 = vadd.f32 %v4817_v13, %v4753_v4  ;;  %v4820_v31 = vadd.f32 %v4819_v52, %v4818_v26 }
 0x4ce   : > { %v2573_v60 = vadd.f32 %v4820_v31, %v4756_v11 }
 0x4d0   : > { %v2604_v24 = vpack.c.bf16 %v2573_v60, %v2570_v43 }
 0x4d2   : > { %4975 = vmatprep.mubr.bf16.mxu0 %v2604_v24 }
 0x4d4   : > { %v4757_v28 = vpop.f32.mrb[84].mxu0 }
 0x4d5   : > { %v4758_v0 = vpop.f32.mrb[85].mxu0 }
 0x4d6   : > { %v4759_v49 = vadd.f32 %v4758_v0, %v4757_v28  ;;  %v4760_v35 = vpop.f32.mrb[86].mxu0 }
 0x4d7   : > { %v4761_v5 = vpop.f32.mrb[87].mxu0 }
 0x4d8   : > { %v4762_v25 = vadd.f32 %v4761_v5, %v4760_v35  ;;  %v4821_v53 = vpop.f32.mrb[68].mxu1 }
 0x4d9   : > { %v4822_v6 = vpop.f32.mrb[69].mxu1 }
 0x4da   : > { %v4823_v21 = vadd.f32 %v4822_v6, %v4821_v53  ;;  %v4824_v2 = vpop.f32.mrb[70].mxu1 }
 0x4db   : > { %v4825_v15 = vpop.f32.mrb[71].mxu1 }
 0x4dc   : > { %v2578_v22 = vadd.f32 %v4823_v21, %v4759_v49  ;;  %v4826_v59 = vadd.f32 %v4825_v15, %v4824_v2 }
 0x4de   : > { %v2581_v44 = vadd.f32 %v4826_v59, %v4762_v25 }
 0x4e0   : > { %v2605_v54 = vpack.c.bf16 %v2581_v44, %v2578_v22 }
 0x4e2   : > { %4976 = vmatmul.mubr.bf16.gmra.mrb[104].mxu0 %v2605_v54 }
 0x4e4   : > { %v4763_v4 = vpop.f32.mrb[88].mxu0 }
 0x4e5   : > { %v4764_v11 = vpop.f32.mrb[89].mxu0 }
 0x4e6   : > { %v4765_v13 = vadd.f32 %v4764_v11, %v4763_v4  ;;  %v4766_v26 = vpop.f32.mrb[90].mxu0 }
 0x4e7   : > { %v4767_v52 = vpop.f32.mrb[91].mxu0 }
 0x4e8   : > { %v4768_v43 = vadd.f32 %v4767_v52, %v4766_v26  ;;  %v4827_v31 = vpop.f32.mrb[72].mxu1 }
 0x4e9   : > { %v4828_v60 = vpop.f32.mrb[73].mxu1 }
 0x4ea   : > { %v4829_v24 = vadd.f32 %v4828_v60, %v4827_v31  ;;  %v4830_v28 = vpop.f32.mrb[74].mxu1  ;;  %v5152_v31 = vld [vmem:[%s5934_s3] ss:$8 sps:$4 sm:$0xff]   ;;  %v5154_v60 = vld [vmem:[%s5934_s3 + $0x4] ss:$8 sps:$4 sm:$0xff]  }
 0x4eb   : > { %v4831_v0 = vpop.f32.mrb[75].mxu1  ;;  %3163 = vmatprep.subr.bf16.mxu1 %v5154_v60  ;;  %v5160_v60 = vld [vmem:[%s5934_s3 + $0x24] ss:$8 sps:$4 sm:$0xff]  }
 0x4ec   : > { %v2586_v35 = vadd.f32 %v4829_v24, %v4765_v13  ;;  %v4832_v5 = vadd.f32 %v4831_v0, %v4830_v28  ;;  %3164 = vmatpush1.bf16.msra.mxu1 %v5152_v31  ;;  %v7266_v24 = vld [vmem:[%s8499_s0] ss:$0 sm:$0xff]  ;;  %v5155_v31 = vld [vmem:[%s5934_s3 + $0x10] ss:$8 sps:$4 sm:$0xff]  }
 0x4ee   : > { %v2589_v53 = vadd.f32 %v4832_v5, %v4768_v43 }
 0x4f0   : > { %v4769_v6 = vpop.f32.mrb[92].mxu0  ;;  %v2606_v49 = vpack.c.bf16 %v2589_v53, %v2586_v35 }
 0x4f1   : > { %v4770_v21 = vpop.f32.mrb[93].mxu0 }
 0x4f2   : > { %v4771_v25 = vadd.f32 %v4770_v21, %v4769_v6  ;;  %v4772_v2 = vpop.f32.mrb[94].mxu0  ;;  %4979 = vmatprep.mubr.bf16.mxu0 %v2606_v49  ;;  %v5576_v6 = vld [vmem:[%s5959_s25] sm:$0xff] }
 0x4f3   : > { %v4773_v15 = vpop.f32.mrb[95].mxu0 }
 0x4f4   : > { %v4774_v22 = vadd.f32 %v4773_v15, %v4772_v2 }
 0x4f7   : > { %v4833_v59 = vpop.f32.mrb[76].mxu1 }
 0x4f8   : > { %v4834_v44 = vpop.f32.mrb[77].mxu1 }
 0x4f9   : > { %v4835_v54 = vadd.f32 %v4834_v44, %v4833_v59  ;;  %v4836_v4 = vpop.f32.mrb[78].mxu1 }
 0x4fa   : > { %v4837_v11 = vpop.f32.mrb[79].mxu1 }
 0x4fb   : > { %v2594_v13 = vadd.f32 %v4835_v54, %v4771_v25  ;;  %v4838_v26 = vadd.f32 %v4837_v11, %v4836_v4  ;;  %v5577_v25 = vld [vmem:[%s5959_s25 + $0x8] sm:$0xff]  ;;  %v5578_v54 = vld [vmem:[%s5959_s25 + $0x10] sm:$0xff]  ;;  %v5579_v11 = vld [vmem:[%s5959_s25 + $0x18] sm:$0xff] }
 0x4fd   : > { %v2597_v52 = vadd.f32 %v4838_v26, %v4774_v22 }
 0x4ff   : > { %v2607_v43 = vpack.c.bf16 %v2597_v52, %v2594_v13 }
 0x501   : > { %4980 = vmatmul.mubr.bf16.gmra.mrb[108].mxu0 %v2607_v43  ;;  %v5157_v43 = vld [vmem:[%s5934_s3 + $0x14] ss:$8 sps:$4 sm:$0xff]  }
 0x502   : > { %3165 = vmatprep.subr.bf16.mxu1 %v5157_v43  ;;  %v5167_v43 = vld [vmem:[%s5934_s3 + $0x50] ss:$8 sps:$4 sm:$0xff]  }
 0x503   : > { %3166 = vmatpush1.bf16.msra.mxu1 %v5155_v31 }
 0x504   : > { %3167 = vmatprep.subr.bf16.mxu1 %v5160_v60 }
 0x575   : > { %v4969_v28 = vpop.f32.mrb[96].mxu0 }
 0x576   : > { %v2713_v0 = vpop.f32.mrb[97].mxu0  ;;  %v2722_v15 = vadd.f32 %v4969_v28, %v7266_v24  ;;  %v5158_v28 = vld [vmem:[%s5934_s3 + $0x20] ss:$8 sps:$4 sm:$0xff]  }
 0x577   : > { %v2714_v35 = vadd.f32 %v7266_v24, %v2713_v0  ;;  %v4970_v5 = vpop.f32.mrb[98].mxu0  ;;  %3168 = vmatpush1.bf16.msra.mxu1 %v5158_v28  ;;  %v5163_v0 = vld [vmem:[%s5934_s3 + $0x34] ss:$8 sps:$4 sm:$0xff]  }
 0x578   : > { %v2716_v53 = vpop.f32.mrb[99].mxu0  ;;  %v2725_v59 = vadd.f32 %v4970_v5, %v7266_v24  ;;  %v7285_v4 = vadd.f32 %v5578_v54, %v2722_v15  ;;  %3169 = vmatprep.subr.bf16.mxu1 %v5163_v0 }
 0x579   : > { %v7270_v49 = vadd.f32 %v5576_v6, %v2714_v35  ;;  %v2717_v21 = vadd.f32 %v7266_v24, %v2716_v53  ;;  %v5161_v35 = vld [vmem:[%s5934_s3 + $0x30] ss:$8 sps:$4 sm:$0xff]  }
 0x57a   : > { %v7288_v13 = vadd.f32 %v5579_v11, %v2725_v59  ;;  %v2845_v26 = vmul.f32 %v7285_v4, %v7285_v4  ;;  %v5580_v59 = vld [vmem:[%s5959_s25 + $0x20] sm:$0xff]  ;;  %v5581_v11 = vld [vmem:[%s5959_s25 + $0x28] sm:$0xff] }
 0x57b   : > { %v7274_v2 = vadd.f32 %v5577_v25, %v2717_v21  ;;  %2794 = vadd.xlane.f32.xlu0 %v7270_v49  ;;  %v2843_v22 = vmul.f32 %v7270_v49, %v7270_v49  ;;  %3170 = vmatpush1.bf16.msra.mxu1 %v5161_v35  ;;  %v5166_v25 = vld [vmem:[%s5934_s3 + $0x44] ss:$8 sps:$4 sm:$0xff]  }
 0x57c   : > { %v2846_v52 = vmul.f32 %v7288_v13, %v7288_v13  ;;  %3171 = vmatprep.subr.bf16.mxu1 %v5166_v25  ;;  %v5172_v35 = vld [vmem:[%s5934_s3 + $0x64] ss:$8 sps:$4 sm:$0xff]   ;;  %v5582_v25 = vld [vmem:[%s5959_s25 + $0x30] sm:$0xff] }
 0x57d   : > { %2796 = vadd.xlane.f32.xlu1 %v7274_v2  ;;  %v2844_v44 = vmul.f32 %v7274_v2, %v7274_v2 }
 0x57f   : > { %2859 = vadd.xlane.f32.xlu0 %v2843_v22  ;;  %v5164_v22 = vld [vmem:[%s5934_s3 + $0x40] ss:$8 sps:$4 sm:$0xff]  }
 0x580   : > { %3172 = vmatpush1.bf16.msra.mxu1 %v5164_v22  ;;  %v5583_v22 = vld [vmem:[%s5959_s25 + $0x38] sm:$0xff] }
 0x581   : > { %2861 = vadd.xlane.f32.xlu1 %v2844_v44 }
 0x583   : > { %2798 = vadd.xlane.f32.xlu0 %v7285_v4 }
 0x585   : > { %2800 = vadd.xlane.f32.xlu1 %v7288_v13 }
 0x587   : > { %2863 = vadd.xlane.f32.xlu0 %v2845_v26 }
 0x589   : > { %2865 = vadd.xlane.f32.xlu1 %v2846_v52  ;;  %v5169_v52 = vld [vmem:[%s5934_s3 + $0x54] ss:$8 sps:$4 sm:$0xff]  }
 0x58a   : > { %3173 = vmatprep.subr.bf16.mxu1 %v5169_v52 }
 0x58b   : > { %3174 = vmatpush1.bf16.msra.mxu1 %v5167_v43 }
 0x58c   : > { %3175 = vmatprep.subr.bf16.mxu1 %v5172_v35 }
 0x595   : > { %v4973_v5 = vpop.f32.mrb[100].mxu0 }
 0x596   : > { %v2729_v53 = vpop.f32.mrb[101].mxu0  ;;  %v2738_v31 = vadd.f32 %v4973_v5, %v7266_v24 }
 0x597   : > { %v2730_v6 = vadd.f32 %v7266_v24, %v2729_v53  ;;  %v4974_v21 = vpop.f32.mrb[102].mxu0  ;;  %v5170_v53 = vld [vmem:[%s5934_s3 + $0x60] ss:$8 sps:$4 sm:$0xff]  }
 0x598   : > { %v2732_v15 = vpop.f32.mrb[103].mxu0  ;;  %v2741_v28 = vadd.f32 %v4974_v21, %v7266_v24  ;;  %v7326_v5 = vadd.f32 %v5582_v25, %v2738_v31  ;;  %3176 = vmatpush1.bf16.msra.mxu1 %v5170_v53  ;;  %v5585_v53 = vld [vmem:[%s5959_s25 + $0x48] sm:$0xff] }
 0x599   : > { %v7306_v44 = vadd.f32 %v5580_v59, %v2730_v6  ;;  %v2733_v54 = vadd.f32 %v7266_v24, %v2732_v15  ;;  %v5175_v6 = vld [vmem:[%s5934_s3 + $0x74] ss:$8 sps:$4 sm:$0xff]   ;;  %v5173_v15 = vld [vmem:[%s5934_s3 + $0x70] ss:$8 sps:$4 sm:$0xff]  }
 0x59a   : > { %v7330_v59 = vadd.f32 %v5583_v22, %v2741_v28  ;;  %3177 = vmatprep.subr.bf16.mxu1 %v5175_v6  ;;  %v2849_v21 = vmul.f32 %v7326_v5, %v7326_v5  ;;  %v5584_v28 = vld [vmem:[%s5959_s25 + $0x40] sm:$0xff] }
 0x59b   : > { %v7310_v26 = vadd.f32 %v5581_v11, %v2733_v54  ;;  %2802 = vadd.xlane.f32.xlu0 %v7306_v44  ;;  %v2847_v60 = vmul.f32 %v7306_v44, %v7306_v44 }
 0x59c   : > { %3178 = vmatpush1.bf16.msra.mxu1 %v5173_v15  ;;  %v2850_v54 = vmul.f32 %v7330_v59, %v7330_v59 }
 0x59d   : > { %2804 = vadd.xlane.f32.xlu1 %v7310_v26  ;;  %v2848_v0 = vmul.f32 %v7310_v26, %v7310_v26 }
 0x59f   : > { %2867 = vadd.xlane.f32.xlu0 %v2847_v60 }
 0x5a1   : > { %2869 = vadd.xlane.f32.xlu1 %v2848_v0 }
 0x5a3   : > { %2806 = vadd.xlane.f32.xlu0 %v7326_v5 }
 0x5a5   : > { %2808 = vadd.xlane.f32.xlu1 %v7330_v59 }
 0x5a7   : > { %2871 = vadd.xlane.f32.xlu0 %v2849_v21 }
 0x5a9   : > { %2873 = vadd.xlane.f32.xlu1 %v2850_v54  ;;  %v5586_v54 = vld [vmem:[%s5959_s25 + $0x50] sm:$0xff] }
 0x5b5   : > { %v4977_v11 = vpop.f32.mrb[104].mxu0 }
 0x5b6   : > { %v2745_v52 = vpop.f32.mrb[105].mxu0  ;;  %v2754_v25 = vadd.f32 %v4977_v11, %v7266_v24 }
 0x5b7   : > { %v2746_v43 = vadd.f32 %v7266_v24, %v2745_v52  ;;  %v4978_v31 = vpop.f32.mrb[106].mxu0 }
 0x5b8   : > { %v2748_v60 = vpop.f32.mrb[107].mxu0  ;;  %v2757_v22 = vadd.f32 %v4978_v31, %v7266_v24  ;;  %v7355_v52 = vadd.f32 %v5586_v54, %v2754_v25 }
 0x5b9   : > { %v7340_v0 = vadd.f32 %v5584_v28, %v2746_v43  ;;  %v2749_v35 = vadd.f32 %v7266_v24, %v2748_v60  ;;  %v5587_v43 = vld [vmem:[%s5959_s25 + $0x58] sm:$0xff] }
 0x5ba   : > { %v7358_v60 = vadd.f32 %v5587_v43, %v2757_v22  ;;  %v2853_v11 = vmul.f32 %v7355_v52, %v7355_v52  ;;  %v5588_v22 = vld [vmem:[%s5959_s25 + $0x60] sm:$0xff]  ;;  %v5589_v43 = vld [vmem:[%s5959_s25 + $0x68] sm:$0xff] }
 0x5bb   : > { %v7344_v6 = vadd.f32 %v5585_v53, %v2749_v35  ;;  %2810 = vadd.xlane.f32.xlu0 %v7340_v0  ;;  %v2851_v15 = vmul.f32 %v7340_v0, %v7340_v0 }
 0x5bc   : > { %v2854_v31 = vmul.f32 %v7358_v60, %v7358_v60 }
 0x5bd   : > { %2812 = vadd.xlane.f32.xlu1 %v7344_v6  ;;  %v2852_v21 = vmul.f32 %v7344_v6, %v7344_v6 }
 0x5bf   : > { %2875 = vadd.xlane.f32.xlu0 %v2851_v15 }
 0x5c1   : > { %2877 = vadd.xlane.f32.xlu1 %v2852_v21 }
 0x5c3   : > { %2814 = vadd.xlane.f32.xlu0 %v7355_v52 }
 0x5c5   : > { %2816 = vadd.xlane.f32.xlu1 %v7358_v60 }
 0x5c7   : > { %2879 = vadd.xlane.f32.xlu0 %v2853_v11 }
 0x5c9   : > { %2881 = vadd.xlane.f32.xlu1 %v2854_v31 }
 0x5d4   : > { %v4981_v28 = vpop.f32.mrb[108].mxu0 }
 0x5d5   : > { %v2761_v35 = vpop.f32.mrb[109].mxu0  ;;  %v2770_v11 = vadd.f32 %v4981_v28, %v7266_v24 }
 0x5d6   : > { %v2762_v53 = vadd.f32 %v7266_v24, %v2761_v35  ;;  %v4982_v25 = vpop.f32.mrb[110].mxu0 }
 0x5d7   : > { %v2764_v15 = vpop.f32.mrb[111].mxu0  ;;  %v2773_v35 = vadd.f32 %v4982_v25, %v7266_v24 }
 0x5d8   : > { %v7368_v21 = vadd.f32 %v5588_v22, %v2762_v53  ;;  %v2765_v54 = vadd.f32 %v7266_v24, %v2764_v15  ;;  %v5590_v22 = vld [vmem:[%s5959_s25 + $0x70] sm:$0xff] }
 0x5d9   : > { %v7383_v15 = vadd.f32 %v5590_v22, %v2770_v11 }
 0x5da   : > { %v7372_v46 = vadd.f32 %v5589_v43, %v2765_v54  ;;  %2818 = vadd.xlane.f32.xlu0 %v7368_v21  ;;  %v2855_v31 = vmul.f32 %v7368_v21, %v7368_v21  ;;  %v5591_v54 = vld [vmem:[%s5959_s25 + $0x78] sm:$0xff] }
 0x5db   : > { %v7386_v43 = vadd.f32 %v5591_v54, %v2773_v35  ;;  %v2857_v28 = vmul.f32 %v7383_v15, %v7383_v15 }
 0x5dc   : > { %2820 = vadd.xlane.f32.xlu1 %v7372_v46  ;;  %v2856_v53 = vmul.f32 %v7372_v46, %v7372_v46 }
 0x5dd   : > { %v2858_v24 = vmul.f32 %v7386_v43, %v7386_v43 }
 0x5de   : > { %2883 = vadd.xlane.f32.xlu0 %v2855_v31 }
 0x5e0   : > { %2885 = vadd.xlane.f32.xlu1 %v2856_v53 }
 0x5e2   : > { %2822 = vadd.xlane.f32.xlu0 %v7383_v15 }
 0x5e4   : > { %2824 = vadd.xlane.f32.xlu1 %v7386_v43 }
 0x5e6   : > { %2887 = vadd.xlane.f32.xlu0 %v2857_v28 }
 0x5e8   : > { %2889 = vadd.xlane.f32.xlu1 %v2858_v24 }
 0x608   : > { %v2795_v25 = vpop.xlane.xlu0 %2794 }
 0x609   : > { %v2827_v31 = vmul.f32 0.0078125, %v2795_v25 }
 0x60a   : > { %v2797_v11 = vpop.xlane.xlu1 %2796 }
 0x60b   : > { %v2828_v22 = vmul.f32 0.0078125, %v2797_v11  ;;  %v2907_v51 = vmul.f32 %v2827_v31, %v2827_v31 }
 0x60c   : > { %v2860_v53 = vpop.xlane.xlu0 %2859 }
 0x60d   : > { %v2891_v35 = vmul.f32 0.0078125, %v2860_v53  ;;  %v2908_v32 = vmul.f32 %v2828_v22, %v2828_v22 }
 0x60e   : > { %v2862_v54 = vpop.xlane.xlu1 %2861 }
 0x60f   : > { %v2923_v40 = vsub.f32 %v2891_v35, %v2907_v51  ;;  %v2892_v48 = vmul.f32 0.0078125, %v2862_v54 }
 0x610   : > { %v2799_v61 = vpop.xlane.xlu0 %2798 }
 0x611   : > { %v2955_v27 = vadd.f32 1e-12, %v2923_v40  ;;  %v2924_v3 = vsub.f32 %v2892_v48, %v2908_v32  ;;  %v2829_v57 = vmul.f32 0.0078125, %v2799_v61  ;;  %v2939_v61 = vsub.f32 %v7270_v49, %v2827_v31 }
 0x612   : > { %v2801_v28 = vpop.xlane.xlu1 %2800  ;;  %v2940_v32 = vsub.f32 %v7274_v2, %v2828_v22 }
 0x613   : > { %5448 = vrsqrt.f32 %v2955_v27  ;;  %v2956_v56 = vadd.f32 1e-12, %v2924_v3  ;;  %v2830_v19 = vmul.f32 0.0078125, %v2801_v28  ;;  %v2909_v25 = vmul.f32 %v2829_v57, %v2829_v57  ;;  %v7400_v27 = vld [vmem:[%s8500_s30] ss:$0 sm:$0xff] }
 0x614   : > { %v2864_v24 = vpop.xlane.xlu0 %2863  ;;  %v2941_v49 = vsub.f32 %v7285_v4, %v2829_v57 }
 0x615   : > { %5450 = vrsqrt.f32 %v2956_v56  ;;  %v2893_v11 = vmul.f32 0.0078125, %v2864_v24  ;;  %v2910_v29 = vmul.f32 %v2830_v19, %v2830_v19  ;;  %v2942_v28 = vsub.f32 %v7288_v13, %v2830_v19 }
 0x616   : > { %v2866_v8 = vpop.xlane.xlu1 %2865 }
 0x617   : > { %v2925_v53 = vsub.f32 %v2893_v11, %v2909_v25  ;;  %v2894_v55 = vmul.f32 0.0078125, %v2866_v8 }
 0x619   : > { %v2957_v51 = vadd.f32 1e-12, %v2925_v53  ;;  %v2926_v35 = vsub.f32 %v2894_v55, %v2910_v29  ;;  %v7409_v55 = vld [vmem:[%s8502_s9] ss:$0 sm:$0xff] }
 0x61b   : > { %5452 = vrsqrt.f32 %v2957_v51  ;;  %v2958_v40 = vadd.f32 1e-12, %v2926_v35 }
 0x61d   : > { %v5449_v48 = vpop.eup %5448  ;;  %5454 = vrsqrt.f32 %v2958_v40 }
 0x61e   : > { %v2987_v3 = vmul.f32 %v5449_v48, %v2939_v61 }
 0x61f   : > { %v5451_v56 = vpop.eup %5450 }
 0x620   : > { %v2988_v54 = vmul.f32 %v5451_v56, %v2940_v32  ;;  %v3009_v8 = vmul.f32 %v7400_v27, %v2987_v3 }
 0x622   : > { %v3010_v29 = vmul.f32 %v7400_v27, %v2988_v54  ;;  %v7414_v31 = vadd.f32 %v7409_v55, %v3009_v8 }
 0x624   : > { %v7417_v2 = vadd.f32 %v7409_v55, %v3010_v29 }
 0x625   : > { %v5453_v22 = vpop.eup %5452 }
 0x626   : > { %v3047_v24 = vpack.c.bf16 %v7417_v2, %v7414_v31  ;;  %v2989_v25 = vmul.f32 %v5453_v22, %v2941_v49 }
 0x627   : > { %v5455_v11 = vpop.eup %5454 }
 0x628   : > { %3196 = vmatmul.mubr.bf16.vlgmr.msra.gmra.mrb[80].mxu1 %v3047_v24  ;;  %v2803_v53 = vpop.xlane.xlu0 %2802  ;;  %v2990_v51 = vmul.f32 %v5455_v11, %v2942_v28  ;;  %v3011_v35 = vmul.f32 %v7400_v27, %v2989_v25 }
 0x629   : > { %v2831_v57 = vmul.f32 0.0078125, %v2803_v53  ;;  %3205 = vmatprep.mubr.bf16.mxu1 %v8498_v23 }
 0x62a   : > { %v2805_v4 = vpop.xlane.xlu1 %2804  ;;  %v3012_v40 = vmul.f32 %v7400_v27, %v2990_v51  ;;  %v7426_v19 = vadd.f32 %v7409_v55, %v3011_v35 }
 0x62b   : > { %v2832_v61 = vmul.f32 0.0078125, %v2805_v4  ;;  %v2911_v32 = vmul.f32 %v2831_v57, %v2831_v57 }
 0x62c   : > { %v2868_v48 = vpop.xlane.xlu0 %2867  ;;  %v7429_v13 = vadd.f32 %v7409_v55, %v3012_v40 }
 0x62d   : > { %v2895_v3 = vmul.f32 0.0078125, %v2868_v48  ;;  %v2912_v8 = vmul.f32 %v2832_v61, %v2832_v61 }
 0x62e   : > { %v2870_v56 = vpop.xlane.xlu1 %2869  ;;  %v3048_v54 = vpack.c.bf16 %v7429_v13, %v7426_v19 }
 0x62f   : > { %v2927_v29 = vsub.f32 %v2895_v3, %v2911_v32  ;;  %v2896_v49 = vmul.f32 0.0078125, %v2870_v56 }
 0x630   : > { %3206 = vmatmul.mubr.bf16.gmra.mrb[84].mxu1 %v3048_v54  ;;  %v2807_v22 = vpop.xlane.xlu0 %2806 }
 0x631   : > { %v2959_v28 = vadd.f32 1e-12, %v2927_v29  ;;  %v2928_v24 = vsub.f32 %v2896_v49, %v2912_v8  ;;  %v2833_v25 = vmul.f32 0.0078125, %v2807_v22  ;;  %3215 = vmatprep.mubr.bf16.mxu1 %v8498_v23  ;;  %v2943_v8 = vsub.f32 %v7306_v44, %v2831_v57 }
 0x632   : > { %v2809_v11 = vpop.xlane.xlu1 %2808  ;;  %v2944_v49 = vsub.f32 %v7310_v26, %v2832_v61 }
 0x633   : > { %5456 = vrsqrt.f32 %v2959_v28  ;;  %v2960_v53 = vadd.f32 1e-12, %v2928_v24  ;;  %v2834_v51 = vmul.f32 0.0078125, %v2809_v11  ;;  %v2913_v4 = vmul.f32 %v2833_v25, %v2833_v25 }
 0x634   : > { %v2872_v35 = vpop.xlane.xlu0 %2871 }
 0x635   : > { %5458 = vrsqrt.f32 %v2960_v53  ;;  %v2897_v40 = vmul.f32 0.0078125, %v2872_v35  ;;  %v2914_v38 = vmul.f32 %v2834_v51, %v2834_v51  ;;  %v2945_v35 = vsub.f32 %v7326_v5, %v2833_v25 }
 0x636   : > { %v2874_v48 = vpop.xlane.xlu1 %2873  ;;  %v2946_v57 = vsub.f32 %v7330_v59, %v2834_v51 }
 0x637   : > { %v2929_v20 = vsub.f32 %v2897_v40, %v2913_v4  ;;  %v2898_v32 = vmul.f32 0.0078125, %v2874_v48 }
 0x639   : > { %v2961_v3 = vadd.f32 1e-12, %v2929_v20  ;;  %v2930_v56 = vsub.f32 %v2898_v32, %v2914_v38 }
 0x63b   : > { %5460 = vrsqrt.f32 %v2961_v3  ;;  %v2962_v54 = vadd.f32 1e-12, %v2930_v56 }
 0x63d   : > { %v5457_v29 = vpop.eup %5456  ;;  %5462 = vrsqrt.f32 %v2962_v54 }
 0x63e   : > { %v2991_v22 = vmul.f32 %v5457_v29, %v2943_v8 }
 0x63f   : > { %v5459_v28 = vpop.eup %5458 }
 0x640   : > { %v2992_v24 = vmul.f32 %v5459_v28, %v2944_v49  ;;  %v3013_v11 = vmul.f32 %v7400_v27, %v2991_v22 }
 0x642   : > { %v3014_v53 = vmul.f32 %v7400_v27, %v2992_v24  ;;  %v7440_v20 = vadd.f32 %v7409_v55, %v3013_v11 }
 0x644   : > { %v7443_v38 = vadd.f32 %v7409_v55, %v3014_v53 }
 0x645   : > { %v5461_v44 = vpop.eup %5460 }
 0x646   : > { %v3049_v26 = vpack.c.bf16 %v7443_v38, %v7440_v20  ;;  %v2993_v61 = vmul.f32 %v5461_v44, %v2945_v35 }
 0x647   : > { %v5463_v4 = vpop.eup %5462 }
 0x648   : > { %3216 = vmatmul.mubr.bf16.gmra.mrb[88].mxu1 %v3049_v26  ;;  %v2811_v40 = vpop.xlane.xlu0 %2810  ;;  %v2994_v48 = vmul.f32 %v5463_v4, %v2946_v57  ;;  %v3015_v32 = vmul.f32 %v7400_v27, %v2993_v61 }
 0x649   : > { %v2835_v5 = vmul.f32 0.0078125, %v2811_v40  ;;  %3225 = vmatprep.mubr.bf16.mxu1 %v8498_v23 }
 0x64a   : > { %v2813_v25 = vpop.xlane.xlu1 %2812  ;;  %v3016_v3 = vmul.f32 %v7400_v27, %v2994_v48  ;;  %v7452_v59 = vadd.f32 %v7409_v55, %v3015_v32 }
 0x64b   : > { %v2836_v56 = vmul.f32 0.0078125, %v2813_v25  ;;  %v2915_v8 = vmul.f32 %v2835_v5, %v2835_v5 }
 0x64c   : > { %v2876_v54 = vpop.xlane.xlu0 %2875  ;;  %v7455_v51 = vadd.f32 %v7409_v55, %v3016_v3 }
 0x64d   : > { %v2899_v29 = vmul.f32 0.0078125, %v2876_v54  ;;  %v2916_v28 = vmul.f32 %v2836_v56, %v2836_v56 }
 0x64e   : > { %v2878_v49 = vpop.xlane.xlu1 %2877  ;;  %v3050_v22 = vpack.c.bf16 %v7455_v51, %v7452_v59 }
 0x64f   : > { %v2931_v24 = vsub.f32 %v2899_v29, %v2915_v8  ;;  %v2900_v11 = vmul.f32 0.0078125, %v2878_v49 }
 0x650   : > { %3226 = vmatmul.mubr.bf16.gmra.mrb[92].mxu1 %v3050_v22  ;;  %v2815_v53 = vpop.xlane.xlu0 %2814 }
 0x651   : > { %v2963_v35 = vadd.f32 1e-12, %v2931_v24  ;;  %v2932_v44 = vsub.f32 %v2900_v11, %v2916_v28  ;;  %v2837_v57 = vmul.f32 0.0078125, %v2815_v53  ;;  %3235 = vmatprep.mubr.bf16.mxu1 %v8498_v23  ;;  %v2947_v28 = vsub.f32 %v7340_v0, %v2835_v5 }
 0x652   : > { %v2817_v26 = vpop.xlane.xlu1 %2816  ;;  %v2948_v11 = vsub.f32 %v7344_v6, %v2836_v56 }
 0x653   : > { %5464 = vrsqrt.f32 %v2963_v35  ;;  %v2964_v61 = vadd.f32 1e-12, %v2932_v44  ;;  %v2838_v4 = vmul.f32 0.0078125, %v2817_v26  ;;  %v2917_v48 = vmul.f32 %v2837_v57, %v2837_v57 }
 0x654   : > { %v2880_v40 = vpop.xlane.xlu0 %2879 }
 0x655   : > { %5466 = vrsqrt.f32 %v2964_v61  ;;  %v2901_v32 = vmul.f32 0.0078125, %v2880_v40  ;;  %v2918_v3 = vmul.f32 %v2838_v4, %v2838_v4  ;;  %v2949_v40 = vsub.f32 %v7355_v52, %v2837_v57 }
 0x656   : > { %v2882_v25 = vpop.xlane.xlu1 %2881  ;;  %v2950_v5 = vsub.f32 %v7358_v60, %v2838_v4 }
 0x657   : > { %v2933_v54 = vsub.f32 %v2901_v32, %v2917_v48  ;;  %v2902_v8 = vmul.f32 0.0078125, %v2882_v25 }
 0x659   : > { %v2965_v29 = vadd.f32 1e-12, %v2933_v54  ;;  %v2934_v49 = vsub.f32 %v2902_v8, %v2918_v3 }
 0x65b   : > { %5468 = vrsqrt.f32 %v2965_v29  ;;  %v2966_v22 = vadd.f32 1e-12, %v2934_v49 }
 0x65d   : > { %v5465_v24 = vpop.eup %5464  ;;  %5470 = vrsqrt.f32 %v2966_v22 }
 0x65e   : > { %v2995_v53 = vmul.f32 %v5465_v24, %v2947_v28 }
 0x65f   : > { %v5467_v35 = vpop.eup %5466 }
 0x660   : > { %v2996_v44 = vmul.f32 %v5467_v35, %v2948_v11  ;;  %v3017_v26 = vmul.f32 %v7400_v27, %v2995_v53 }
 0x662   : > { %v3018_v61 = vmul.f32 %v7400_v27, %v2996_v44  ;;  %v7466_v48 = vadd.f32 %v7409_v55, %v3017_v26 }
 0x664   : > { %v7469_v32 = vadd.f32 %v7409_v55, %v3018_v61 }
 0x665   : > { %v5469_v0 = vpop.eup %5468 }
 0x666   : > { %v3051_v6 = vpack.c.bf16 %v7469_v32, %v7466_v48  ;;  %v2997_v56 = vmul.f32 %v5469_v0, %v2949_v40 }
 0x667   : > { %v5471_v25 = vpop.eup %5470  ;;  %v2819_v3 = vpop.xlane.xlu0 %2818 }
 0x668   : > { %v2839_v54 = vmul.f32 0.0078125, %v2819_v3  ;;  %3236 = vmatmul.mubr.bf16.gmra.mrb[96].mxu1 %v3051_v6  ;;  %v2998_v8 = vmul.f32 %v5471_v25, %v2950_v5  ;;  %v3019_v52 = vmul.f32 %v7400_v27, %v2997_v56 }
 0x669   : > { %v2821_v57 = vpop.xlane.xlu1 %2820  ;;  %3245 = vmatprep.mubr.bf16.mxu1 %v8498_v23 }
 0x66a   : > { %v2840_v29 = vmul.f32 0.0078125, %v2821_v57  ;;  %v3020_v49 = vmul.f32 %v7400_v27, %v2998_v8  ;;  %v2919_v28 = vmul.f32 %v2839_v54, %v2839_v54  ;;  %v7478_v4 = vadd.f32 %v7409_v55, %v3019_v52 }
 0x66b   : > { %v2884_v22 = vpop.xlane.xlu0 %2883 }
 0x66c   : > { %v2903_v60 = vmul.f32 0.0078125, %v2884_v22  ;;  %v7481_v24 = vadd.f32 %v7409_v55, %v3020_v49  ;;  %v2920_v53 = vmul.f32 %v2840_v29, %v2840_v29 }
 0x66d   : > { %v2886_v11 = vpop.xlane.xlu1 %2885 }
 0x66e   : > { %v2935_v35 = vsub.f32 %v2903_v60, %v2919_v28  ;;  %v2904_v44 = vmul.f32 0.0078125, %v2886_v11  ;;  %v3052_v26 = vpack.c.bf16 %v7481_v24, %v7478_v4 }
 0x66f   : > { %v2823_v61 = vpop.xlane.xlu0 %2822 }
 0x670   : > { %v2967_v40 = vadd.f32 1e-12, %v2935_v35  ;;  %v2936_v0 = vsub.f32 %v2904_v44, %v2920_v53  ;;  %v2841_v5 = vmul.f32 0.0078125, %v2823_v61  ;;  %3246 = vmatmul.mubr.bf16.gmra.mrb[100].mxu1 %v3052_v26  ;;  %v2951_v35 = vsub.f32 %v7368_v21, %v2839_v54  ;;  %v5178_v21 = vld [vmem:[%s5945_s14 + $0x48] sm:$0xff]  }
 0x671   : > { %v2825_v6 = vpop.xlane.xlu1 %2824  ;;  %3255 = vmatprep.mubr.bf16.mxu1 %v8498_v23  ;;  %v2952_v26 = vsub.f32 %v7372_v46, %v2840_v29 }
 0x672   : > { %5472 = vrsqrt.f32 %v2967_v40  ;;  %v2968_v56 = vadd.f32 1e-12, %v2936_v0  ;;  %v2842_v25 = vmul.f32 0.0078125, %v2825_v6  ;;  %v2921_v8 = vmul.f32 %v2841_v5, %v2841_v5  ;;  %v5176_v0 = vld [vmem:[%s5945_s14 + $0x40] sm:$0xff]  }
 0x673   : > { %v2888_v3 = vpop.xlane.xlu0 %2887  ;;  %4855 = vmatprep.subr.bf16.mxu0 %v5176_v0  ;;  %4983 = vmatprep.subr.bf16.mxu1 %v5176_v0  ;;  %v2953_v54 = vsub.f32 %v7383_v15, %v2841_v5  ;;  %v5180_v5 = vld [vmem:[%s5945_s14 + $0x50] sm:$0xff]  }
 0x674   : > { %5474 = vrsqrt.f32 %v2968_v56  ;;  %v2905_v52 = vmul.f32 0.0078125, %v2888_v3  ;;  %v2922_v49 = vmul.f32 %v2842_v25, %v2842_v25  ;;  %v5177_v3 = vld [vmem:[%s5945_s14] sm:$0xff]   ;;  %v5188_v0 = vld [vmem:[%s5945_s14 + $0x70] sm:$0xff]  }
 0x675   : > { %v2890_v57 = vpop.xlane.xlu1 %2889  ;;  %4856 = vmatpush3.bf16.msra.mxu0 %v5177_v3  ;;  %4991 = vmatpush3.bf16.msra.mxu1 %v5177_v3  ;;  %v5191_v3 = vld [vmem:[%s5945_s14 + $0x38] sm:$0xff]  }
 0x676   : > { %v2937_v22 = vsub.f32 %v2905_v52, %v2921_v8  ;;  %v2906_v28 = vmul.f32 0.0078125, %v2890_v57  ;;  %v5179_v52 = vld [vmem:[%s5945_s14 + $0x8] sm:$0xff]   ;;  %4857 = vmatprep.subr.bf16.mxu0 %v5178_v21  ;;  %4984 = vmatprep.subr.bf16.mxu1 %v5178_v21  ;;  %v8503_v21 = vld [vmem:[#allocation24_spill] sm:$0xff] }
 0x678   : > { %v2969_v60 = vadd.f32 1e-12, %v2937_v22  ;;  %v2938_v11 = vsub.f32 %v2906_v28, %v2922_v49  ;;  %v2954_v49 = vsub.f32 %v7386_v43, %v2842_v25  ;;  %v5182_v25 = vld [vmem:[%s5945_s14 + $0x58] sm:$0xff]  }
 0x679   : > { %4858 = vmatpush3.bf16.msra.mxu0 %v5179_v52  ;;  %4992 = vmatpush3.bf16.msra.mxu1 %v5179_v52  ;;  %v8504_v52 = vld [vmem:[#allocation25_spill] sm:$0xff] }
 0x67a   : > { %5476 = vrsqrt.f32 %v2969_v60  ;;  %v2970_v53 = vadd.f32 1e-12, %v2938_v11  ;;  %4859 = vmatprep.subr.bf16.mxu0 %v5180_v5  ;;  %4985 = vmatprep.subr.bf16.mxu1 %v5180_v5 }
 0x67c   : > { %v5473_v44 = vpop.eup %5472  ;;  %5478 = vrsqrt.f32 %v2970_v53  ;;  %v5181_v53 = vld [vmem:[%s5945_s14 + $0x10] sm:$0xff]  }
 0x67d   : > { %v2999_v61 = vmul.f32 %v5473_v44, %v2951_v35  ;;  %4860 = vmatpush3.bf16.msra.mxu0 %v5181_v53  ;;  %4993 = vmatpush3.bf16.msra.mxu1 %v5181_v53 }
 0x67e   : > { %v5475_v40 = vpop.eup %5474  ;;  %4861 = vmatprep.subr.bf16.mxu0 %v5182_v25  ;;  %4986 = vmatprep.subr.bf16.mxu1 %v5182_v25 }
 0x67f   : > { %v3000_v6 = vmul.f32 %v5475_v40, %v2952_v26  ;;  %v3021_v56 = vmul.f32 %v7400_v27, %v2999_v61  ;;  %v5183_v26 = vld [vmem:[%s5945_s14 + $0x18] sm:$0xff]   ;;  %v5185_v61 = vld [vmem:[%s5945_s14 + $0x20] sm:$0xff]   ;;  %v5187_v40 = vld [vmem:[%s5945_s14 + $0x28] sm:$0xff]  }
 0x681   : > { %v3022_v8 = vmul.f32 %v7400_v27, %v3000_v6  ;;  %v7495_v46 = vadd.f32 %v7409_v55, %v3021_v56  ;;  %4862 = vmatpush3.bf16.msra.mxu0 %v5183_v26  ;;  %4994 = vmatpush3.bf16.msra.mxu1 %v5183_v26  ;;  %v5189_v6 = vld [vmem:[%s5945_s14 + $0x30] sm:$0xff]   ;;  %v5190_v56 = vld [vmem:[%s5945_s14 + $0x78] sm:$0xff]  }
 0x683   : > { %v7498_v29 = vadd.f32 %v7409_v55, %v3022_v8  ;;  %v3071_v8 = vld [vmem:[%s5940_s2] sm:$0x3] }
 0x684   : > { %v5477_v57 = vpop.eup %5476 }
 0x685   : > { %v3053_v22 = vpack.c.bf16 %v7498_v29, %v7495_v46  ;;  %v3001_v28 = vmul.f32 %v5477_v57, %v2953_v54  ;;  %v7529_v54 = vrot.slane %v3071_v8, %v8503_v21  ;;  %v7532_v57 = vrot.slane %v3071_v8, %v8504_v52 }
 0x686   : > { %v5479_v15 = vpop.eup %5478 }
 0x687   : > { %3256 = vmatmul.mubr.bf16.gmra.mrb[104].mxu1 %v3053_v22  ;;  %v3002_v60 = vmul.f32 %v5479_v15, %v2954_v49  ;;  %v3023_v11 = vmul.f32 %v7400_v27, %v3001_v28 }
 0x688   : > { %3265 = vmatprep.mubr.bf16.mxu1 %v8498_v23 }
 0x689   : > { %v3024_v43 = vmul.f32 %v7400_v27, %v3002_v60  ;;  %v7511_v35 = vadd.f32 %v7409_v55, %v3023_v11  ;;  %v5184_v27 = vld [vmem:[%s5945_s14 + $0x60] sm:$0xff]  }
 0x68a   : > { %4863 = vmatprep.subr.bf16.mxu0 %v5184_v27  ;;  %4987 = vmatprep.subr.bf16.mxu1 %v5184_v27 }
 0x68b   : > { %v7514_v44 = vadd.f32 %v7409_v55, %v3024_v43  ;;  %4864 = vmatpush3.bf16.msra.mxu0 %v5185_v61  ;;  %v5186_v55 = vld [vmem:[%s5945_s14 + $0x68] sm:$0xff]   ;;  %4995 = vmatpush3.bf16.msra.mxu1 %v5185_v61 }
 0x68c   : > { %4865 = vmatprep.subr.bf16.mxu0 %v5186_v55  ;;  %4988 = vmatprep.subr.bf16.mxu1 %v5186_v55 }
 0x68d   : > { %v3054_v23 = vpack.c.bf16 %v7514_v44, %v7511_v35 }
 0x68f   : > { %3266 = vmatmul.mubr.bf16.gmra.mrb[108].mxu1 %v3054_v23  ;;  %4866 = vmatpush3.bf16.msra.mxu0 %v5187_v40 }
 0x690   : > { %4996 = vmatpush3.bf16.msra.mxu1 %v5187_v40  ;;  %4867 = vmatprep.subr.bf16.mxu0 %v5188_v0 }
 0x691   : > { %4989 = vmatprep.subr.bf16.mxu1 %v5188_v0 }
 0x693   : > { %4868 = vmatpush3.bf16.msra.mxu0 %v5189_v6 }
 0x694   : > { %4997 = vmatpush3.bf16.msra.mxu1 %v5189_v6  ;;  %4869 = vmatprep.subr.bf16.mxu0 %v5190_v56 }
 0x695   : > { %4990 = vmatprep.subr.bf16.mxu1 %v5190_v56 }
 0x697   : > { %4870 = vmatpush3.bf16.msra.mxu0 %v5191_v3 }
 0x698   : > { %4998 = vmatpush3.bf16.msra.mxu1 %v5191_v3 }
 0x6fb   : > { %v3197_v49 = vpop.f32.mrb[80].mxu1 }
 0x6fc   : > { %v7535_v22 = vadd.f32 %v3197_v49, %v7529_v54  ;;  %v3199_v28 = vpop.f32.mrb[81].mxu1 }
 0x6fd   : > { %v7538_v15 = vadd.f32 %v3199_v28, %v7532_v57  ;;  %v3201_v5 = vpop.f32.mrb[82].mxu1 }
 0x6fe   : > { %v3276_v60 = vmul.f32 %v7535_v22, %v7535_v22  ;;  %v7543_v11 = vadd.f32 %v3201_v5, %v7529_v54  ;;  %v3203_v53 = vpop.f32.mrb[83].mxu1 }
 0x6ff   : > { %v3277_v43 = vmul.f32 %v7538_v15, %v7538_v15  ;;  %v7548_v25 = vadd.f32 %v3203_v53, %v7532_v57 }
 0x700   : > { %v3308_v26 = vmul.f32 %v3276_v60, %v7535_v22  ;;  %v3278_v23 = vmul.f32 %v7543_v11, %v7543_v11 }
 0x701   : > { %v3309_v27 = vmul.f32 %v3277_v43, %v7538_v15  ;;  %v3279_v61 = vmul.f32 %v7548_v25, %v7548_v25 }
 0x702   : > { %v3340_v55 = vmul.f32 0.044715, %v3308_v26  ;;  %v3310_v40 = vmul.f32 %v3278_v23, %v7543_v11 }
 0x703   : > { %v3341_v0 = vmul.f32 0.044715, %v3309_v27  ;;  %v3311_v6 = vmul.f32 %v3279_v61, %v7548_v25  ;;  %v3207_v56 = vpop.f32.mrb[84].mxu1 }
 0x704   : > { %v3372_v3 = vadd.f32 %v3340_v55, %v7535_v22  ;;  %v3342_v8 = vmul.f32 0.044715, %v3310_v40  ;;  %v7560_v21 = vadd.f32 %v3207_v56, %v7529_v54  ;;  %v3209_v52 = vpop.f32.mrb[85].mxu1 }
 0x705   : > { %v3373_v49 = vadd.f32 %v3341_v0, %v7538_v15  ;;  %v3343_v28 = vmul.f32 0.044715, %v3311_v6  ;;  %v7564_v5 = vadd.f32 %v3209_v52, %v7532_v57  ;;  %v3211_v60 = vpop.f32.mrb[86].mxu1 }
 0x706   : > { %v3404_v53 = vmul.f32 0.7978846, %v3372_v3  ;;  %v3374_v43 = vadd.f32 %v3342_v8, %v7543_v11  ;;  %v3280_v26 = vmul.f32 %v7560_v21, %v7560_v21  ;;  %v7570_v23 = vadd.f32 %v3211_v60, %v7529_v54  ;;  %v3213_v27 = vpop.f32.mrb[87].mxu1 }
 0x707   : > { %v3405_v61 = vmul.f32 0.7978846, %v3373_v49  ;;  %v3375_v55 = vadd.f32 %v3343_v28, %v7548_v25  ;;  %v3281_v40 = vmul.f32 %v7564_v5, %v7564_v5  ;;  %v7576_v0 = vadd.f32 %v3213_v27, %v7532_v57 }
 0x708   : > { %5480 = vtanh.f32 %v3404_v53  ;;  %v3406_v6 = vmul.f32 0.7978846, %v3374_v43  ;;  %v3312_v56 = vmul.f32 %v3280_v26, %v7560_v21  ;;  %v3282_v3 = vmul.f32 %v7570_v23, %v7570_v23 }
 0x709   : > { %5482 = vtanh.f32 %v3405_v61  ;;  %v3407_v8 = vmul.f32 0.7978846, %v3375_v55  ;;  %v3313_v52 = vmul.f32 %v3281_v40, %v7564_v5  ;;  %v3283_v49 = vmul.f32 %v7576_v0, %v7576_v0 }
 0x70a   : > { %5484 = vtanh.f32 %v3406_v6  ;;  %v3344_v28 = vmul.f32 0.044715, %v3312_v56  ;;  %v3314_v60 = vmul.f32 %v3282_v3, %v7570_v23 }
 0x70b   : > { %5486 = vtanh.f32 %v3407_v8  ;;  %v3345_v27 = vmul.f32 0.044715, %v3313_v52  ;;  %v3315_v53 = vmul.f32 %v3283_v49, %v7576_v0 }
 0x70c   : > { %v3376_v43 = vadd.f32 %v3344_v28, %v7560_v21  ;;  %v3346_v26 = vmul.f32 0.044715, %v3314_v60 }
 0x70d   : > { %v3377_v37 = vadd.f32 %v3345_v27, %v7564_v5  ;;  %v3347_v61 = vmul.f32 0.044715, %v3315_v53 }
 0x70e   : > { %v3408_v55 = vmul.f32 0.7978846, %v3376_v43  ;;  %v3378_v40 = vadd.f32 %v3346_v26, %v7570_v23 }
 0x70f   : > { %v3409_v1 = vmul.f32 0.7978846, %v3377_v37  ;;  %v3379_v7 = vadd.f32 %v3347_v61, %v7576_v0 }
 0x710   : > { %5488 = vtanh.f32 %v3408_v55  ;;  %v3410_v6 = vmul.f32 0.7978846, %v3378_v40 }
 0x711   : > { %5490 = vtanh.f32 %v3409_v1  ;;  %v3411_v56 = vmul.f32 0.7978846, %v3379_v7 }
 0x712   : > { %v5481_v3 = vpop.eup %5480  ;;  %5492 = vtanh.f32 %v3410_v6 }
 0x713   : > { %v5483_v8 = vpop.eup %5482  ;;  %v3468_v52 = vadd.f32 1.0, %v5481_v3  ;;  %5494 = vtanh.f32 %v3411_v56 }
 0x714   : > { %v5485_v49 = vpop.eup %5484  ;;  %v3469_v28 = vadd.f32 1.0, %v5483_v8 }
 0x715   : > { %v5487_v60 = vpop.eup %5486  ;;  %v3500_v27 = vmul.f32 0.5, %v3468_v52  ;;  %v3470_v53 = vadd.f32 1.0, %v5485_v49 }
 0x716   : > { %v3471_v43 = vadd.f32 1.0, %v5487_v60  ;;  %v3501_v9 = vmul.f32 0.5, %v3469_v28 }
 0x717   : > { %v3502_v26 = vmul.f32 0.5, %v3470_v53  ;;  %v3532_v61 = vmul.f32 %v3500_v27, %v7535_v22 }
 0x718   : > { %v3503_v37 = vmul.f32 0.5, %v3471_v43  ;;  %v3533_v7 = vmul.f32 %v3501_v9, %v7538_v15 }
 0x719   : > { %v3534_v55 = vmul.f32 %v3502_v26, %v7543_v11 }
 0x71a   : > { %v5489_v1 = vpop.eup %5488  ;;  %v3535_v40 = vmul.f32 %v3503_v37, %v7548_v25 }
 0x71b   : > { %v5491_v6 = vpop.eup %5490  ;;  %v3564_v56 = vpack.c.bf16 %v3534_v55, %v3532_v61  ;;  %v3217_v3 = vpop.f32.mrb[88].mxu1  ;;  %v3472_v8 = vadd.f32 1.0, %v5489_v1 }
 0x71c   : > { %v5493_v30 = vpop.eup %5492  ;;  %v7595_v52 = vadd.f32 %v3217_v3, %v7529_v54  ;;  %v3219_v49 = vpop.f32.mrb[89].mxu1  ;;  %v3565_v28 = vpack.c.bf16 %v3535_v40, %v3533_v7  ;;  %v3473_v60 = vadd.f32 1.0, %v5491_v6 }
 0x71d   : > { %v5495_v53 = vpop.eup %5494  ;;  %v7598_v22 = vadd.f32 %v3219_v49, %v7532_v57  ;;  %v3221_v11 = vpop.f32.mrb[90].mxu1  ;;  %v3474_v27 = vadd.f32 1.0, %v5493_v30  ;;  %v3504_v9 = vmul.f32 0.5, %v3472_v8 }
 0x71e   : > { %v3284_v15 = vmul.f32 %v7595_v52, %v7595_v52  ;;  %v7603_v25 = vadd.f32 %v3221_v11, %v7529_v54  ;;  %v3223_v43 = vpop.f32.mrb[91].mxu1  ;;  %3747 = vmatprep.mubr.bf16.mxu0 %v3565_v28  ;;  %v3475_v26 = vadd.f32 1.0, %v5495_v53  ;;  %v3505_v37 = vmul.f32 0.5, %v3473_v60 }
 0x71f   : > { %v3285_v61 = vmul.f32 %v7598_v22, %v7598_v22  ;;  %v7608_v55 = vadd.f32 %v3223_v43, %v7532_v57  ;;  %3748 = vmatmul.mubr.bf16.vlgmr.msra.gmra.mrb[112].mxu0 %v3564_v56  ;;  %v3506_v1 = vmul.f32 0.5, %v3474_v27  ;;  %v3536_v8 = vmul.f32 %v3504_v9, %v7560_v21 }
 0x720   : > { %v3316_v30 = vmul.f32 %v3284_v15, %v7595_v52  ;;  %v3286_v7 = vmul.f32 %v7603_v25, %v7603_v25  ;;  %v3507_v40 = vmul.f32 0.5, %v3475_v26  ;;  %v3537_v56 = vmul.f32 %v3505_v37, %v7564_v5 }
 0x721   : > { %v3317_v6 = vmul.f32 %v3285_v61, %v7598_v22  ;;  %v3287_v3 = vmul.f32 %v7608_v55, %v7608_v55  ;;  %v3538_v49 = vmul.f32 %v3506_v1, %v7570_v23 }
 0x722   : > { %v3348_v28 = vmul.f32 0.044715, %v3316_v30  ;;  %v3318_v60 = vmul.f32 %v3286_v7, %v7603_v25  ;;  %v3539_v53 = vmul.f32 %v3507_v40, %v7576_v0 }
 0x723   : > { %v3349_v11 = vmul.f32 0.044715, %v3317_v6  ;;  %v3319_v27 = vmul.f32 %v3287_v3, %v7608_v55  ;;  %v3227_v15 = vpop.f32.mrb[92].mxu1  ;;  %v3566_v43 = vpack.c.bf16 %v3538_v49, %v3536_v8 }
 0x724   : > { %v3380_v26 = vadd.f32 %v3348_v28, %v7595_v52  ;;  %v3350_v61 = vmul.f32 0.044715, %v3318_v60  ;;  %v7624_v17 = vadd.f32 %v3227_v15, %v7529_v54  ;;  %v3229_v21 = vpop.f32.mrb[93].mxu1  ;;  %v3567_v23 = vpack.c.bf16 %v3539_v53, %v3537_v56 }
 0x725   : > { %v3381_v9 = vadd.f32 %v3349_v11, %v7598_v22  ;;  %v3351_v1 = vmul.f32 0.044715, %v3319_v27  ;;  %v7628_v5 = vadd.f32 %v3229_v21, %v7532_v57  ;;  %v3231_v0 = vpop.f32.mrb[94].mxu1 }
 0x726   : > { %v3412_v37 = vmul.f32 0.7978846, %v3380_v26  ;;  %v3382_v30 = vadd.f32 %v3350_v61, %v7603_v25  ;;  %v3288_v7 = vmul.f32 %v7624_v17, %v7624_v17  ;;  %v7634_v40 = vadd.f32 %v3231_v0, %v7529_v54  ;;  %v3233_v6 = vpop.f32.mrb[95].mxu1  ;;  %3755 = vmatprep.mubr.bf16.mxu0 %v3567_v23 }
 0x727   : > { %v3413_v3 = vmul.f32 0.7978846, %v3381_v9  ;;  %v3383_v8 = vadd.f32 %v3351_v1, %v7608_v55  ;;  %v3289_v49 = vmul.f32 %v7628_v5, %v7628_v5  ;;  %v7640_v28 = vadd.f32 %v3233_v6, %v7532_v57  ;;  %3756 = vmatmul.mubr.bf16.gmra.mrb[116].mxu0 %v3566_v43 }
 0x728   : > { %5496 = vtanh.f32 %v3412_v37  ;;  %v3414_v60 = vmul.f32 0.7978846, %v3382_v30  ;;  %v3320_v56 = vmul.f32 %v3288_v7, %v7624_v17  ;;  %v3290_v53 = vmul.f32 %v7634_v40, %v7634_v40 }
 0x729   : > { %5498 = vtanh.f32 %v3413_v3  ;;  %v3415_v11 = vmul.f32 0.7978846, %v3383_v8  ;;  %v3321_v27 = vmul.f32 %v3289_v49, %v7628_v5  ;;  %v3291_v15 = vmul.f32 %v7640_v28, %v7640_v28 }
 0x72a   : > { %5500 = vtanh.f32 %v3414_v60  ;;  %v3352_v26 = vmul.f32 0.044715, %v3320_v56  ;;  %v3322_v61 = vmul.f32 %v3290_v53, %v7634_v40 }
 0x72b   : > { %5502 = vtanh.f32 %v3415_v11  ;;  %v3353_v43 = vmul.f32 0.044715, %v3321_v27  ;;  %v3323_v21 = vmul.f32 %v3291_v15, %v7640_v28 }
 0x72c   : > { %v3384_v23 = vadd.f32 %v3352_v26, %v7624_v17  ;;  %v3354_v9 = vmul.f32 0.044715, %v3322_v61 }
 0x72d   : > { %v3385_v1 = vadd.f32 %v3353_v43, %v7628_v5  ;;  %v3355_v0 = vmul.f32 0.044715, %v3323_v21 }
 0x72e   : > { %v3416_v37 = vmul.f32 0.7978846, %v3384_v23  ;;  %v3386_v30 = vadd.f32 %v3354_v9, %v7634_v40 }
 0x72f   : > { %v3417_v7 = vmul.f32 0.7978846, %v3385_v1  ;;  %v3387_v6 = vadd.f32 %v3355_v0, %v7640_v28 }
 0x730   : > { %5504 = vtanh.f32 %v3416_v37  ;;  %v3418_v3 = vmul.f32 0.7978846, %v3386_v30 }
 0x731   : > { %5506 = vtanh.f32 %v3417_v7  ;;  %v3419_v8 = vmul.f32 0.7978846, %v3387_v6 }
 0x732   : > { %v5497_v49 = vpop.eup %5496  ;;  %5508 = vtanh.f32 %v3418_v3 }
 0x733   : > { %v5499_v60 = vpop.eup %5498  ;;  %5510 = vtanh.f32 %v3419_v8  ;;  %v3476_v56 = vadd.f32 1.0, %v5497_v49 }
 0x734   : > { %v5501_v53 = vpop.eup %5500  ;;  %v3477_v11 = vadd.f32 1.0, %v5499_v60 }
 0x735   : > { %v5503_v27 = vpop.eup %5502  ;;  %v3478_v15 = vadd.f32 1.0, %v5501_v53  ;;  %v3508_v26 = vmul.f32 0.5, %v3476_v56 }
 0x736   : > { %v3479_v61 = vadd.f32 1.0, %v5503_v27  ;;  %v3509_v43 = vmul.f32 0.5, %v3477_v11 }
 0x737   : > { %v3510_v21 = vmul.f32 0.5, %v3478_v15  ;;  %v3540_v9 = vmul.f32 %v3508_v26, %v7595_v52 }
 0x738   : > { %v3511_v23 = vmul.f32 0.5, %v3479_v61  ;;  %v3541_v37 = vmul.f32 %v3509_v43, %v7598_v22 }
 0x739   : > { %v3542_v1 = vmul.f32 %v3510_v21, %v7603_v25 }
 0x73a   : > { %v5505_v0 = vpop.eup %5504  ;;  %v3543_v30 = vmul.f32 %v3511_v23, %v7608_v55 }
 0x73b   : > { %v5507_v7 = vpop.eup %5506  ;;  %v3237_v6 = vpop.f32.mrb[96].mxu1  ;;  %v3568_v3 = vpack.c.bf16 %v3542_v1, %v3540_v9  ;;  %v3480_v8 = vadd.f32 1.0, %v5505_v0 }
 0x73c   : > { %v5509_v49 = vpop.eup %5508  ;;  %v7659_v60 = vadd.f32 %v3237_v6, %v7529_v54  ;;  %v3239_v56 = vpop.f32.mrb[97].mxu1  ;;  %v3569_v53 = vpack.c.bf16 %v3543_v30, %v3541_v37  ;;  %v3481_v11 = vadd.f32 1.0, %v5507_v7 }
 0x73d   : > { %v5511_v27 = vpop.eup %5510  ;;  %v7662_v52 = vadd.f32 %v3239_v56, %v7532_v57  ;;  %v3241_v25 = vpop.f32.mrb[98].mxu1  ;;  %v3482_v15 = vadd.f32 1.0, %v5509_v49  ;;  %v3512_v22 = vmul.f32 0.5, %v3480_v8 }
 0x73e   : > { %v3292_v55 = vmul.f32 %v7659_v60, %v7659_v60  ;;  %v7667_v26 = vadd.f32 %v3241_v25, %v7529_v54  ;;  %v3243_v61 = vpop.f32.mrb[99].mxu1  ;;  %3763 = vmatprep.mubr.bf16.mxu0 %v3569_v53  ;;  %v3483_v43 = vadd.f32 1.0, %v5511_v27  ;;  %v3513_v21 = vmul.f32 0.5, %v3481_v11 }
 0x73f   : > { %v3293_v23 = vmul.f32 %v7662_v52, %v7662_v52  ;;  %v7672_v9 = vadd.f32 %v3243_v61, %v7532_v57  ;;  %3764 = vmatmul.mubr.bf16.gmra.mrb[120].mxu0 %v3568_v3  ;;  %v3514_v1 = vmul.f32 0.5, %v3482_v15  ;;  %v3544_v8 = vmul.f32 %v3512_v22, %v7624_v17 }
 0x740   : > { %v3324_v0 = vmul.f32 %v3292_v55, %v7659_v60  ;;  %v3294_v37 = vmul.f32 %v7667_v26, %v7667_v26  ;;  %v3515_v30 = vmul.f32 0.5, %v3483_v43  ;;  %v3545_v3 = vmul.f32 %v3513_v21, %v7628_v5 }
 0x741   : > { %v3325_v7 = vmul.f32 %v3293_v23, %v7662_v52  ;;  %v3295_v6 = vmul.f32 %v7672_v9, %v7672_v9  ;;  %v3546_v49 = vmul.f32 %v3514_v1, %v7634_v40 }
 0x742   : > { %v3356_v56 = vmul.f32 0.044715, %v3324_v0  ;;  %v3326_v53 = vmul.f32 %v3294_v37, %v7667_v26  ;;  %v3547_v11 = vmul.f32 %v3515_v30, %v7640_v28 }
 0x743   : > { %v3357_v27 = vmul.f32 0.044715, %v3325_v7  ;;  %v3327_v25 = vmul.f32 %v3295_v6, %v7672_v9  ;;  %v3247_v15 = vpop.f32.mrb[100].mxu1  ;;  %v3570_v55 = vpack.c.bf16 %v3546_v49, %v3544_v8 }
 0x744   : > { %v3388_v61 = vadd.f32 %v3356_v56, %v7659_v60  ;;  %v3358_v43 = vmul.f32 0.044715, %v3326_v53  ;;  %v7688_v23 = vadd.f32 %v3247_v15, %v7529_v54  ;;  %v3249_v17 = vpop.f32.mrb[101].mxu1  ;;  %v3571_v40 = vpack.c.bf16 %v3547_v11, %v3545_v3 }
 0x745   : > { %v3389_v22 = vadd.f32 %v3357_v27, %v7662_v52  ;;  %v3359_v1 = vmul.f32 0.044715, %v3327_v25  ;;  %v7692_v5 = vadd.f32 %v3249_v17, %v7532_v57  ;;  %v3251_v28 = vpop.f32.mrb[102].mxu1 }
 0x746   : > { %v3420_v21 = vmul.f32 0.7978846, %v3388_v61  ;;  %v3390_v0 = vadd.f32 %v3358_v43, %v7667_v26  ;;  %v3296_v37 = vmul.f32 %v7688_v23, %v7688_v23  ;;  %v7698_v30 = vadd.f32 %v3251_v28, %v7529_v54  ;;  %v3253_v7 = vpop.f32.mrb[103].mxu1  ;;  %3771 = vmatprep.mubr.bf16.mxu0 %v3571_v40 }
 0x747   : > { %v3421_v6 = vmul.f32 0.7978846, %v3389_v22  ;;  %v3391_v8 = vadd.f32 %v3359_v1, %v7672_v9  ;;  %v3297_v49 = vmul.f32 %v7692_v5, %v7692_v5  ;;  %v7704_v56 = vadd.f32 %v3253_v7, %v7532_v57  ;;  %3772 = vmatmul.mubr.bf16.gmra.mrb[124].mxu0 %v3570_v55 }
 0x748   : > { %5512 = vtanh.f32 %v3420_v21  ;;  %v3422_v53 = vmul.f32 0.7978846, %v3390_v0  ;;  %v3328_v3 = vmul.f32 %v3296_v37, %v7688_v23  ;;  %v3298_v11 = vmul.f32 %v7698_v30, %v7698_v30 }
 0x749   : > { %5514 = vtanh.f32 %v3421_v6  ;;  %v3423_v27 = vmul.f32 0.7978846, %v3391_v8  ;;  %v3329_v25 = vmul.f32 %v3297_v49, %v7692_v5  ;;  %v3299_v15 = vmul.f32 %v7704_v56, %v7704_v56 }
 0x74a   : > { %5516 = vtanh.f32 %v3422_v53  ;;  %v3360_v61 = vmul.f32 0.044715, %v3328_v3  ;;  %v3330_v43 = vmul.f32 %v3298_v11, %v7698_v30 }
 0x74b   : > { %5518 = vtanh.f32 %v3423_v27  ;;  %v3361_v55 = vmul.f32 0.044715, %v3329_v25  ;;  %v3331_v17 = vmul.f32 %v3299_v15, %v7704_v56 }
 0x74c   : > { %v3392_v40 = vadd.f32 %v3360_v61, %v7688_v23  ;;  %v3362_v22 = vmul.f32 0.044715, %v3330_v43 }
 0x74d   : > { %v3393_v1 = vadd.f32 %v3361_v55, %v7692_v5  ;;  %v3363_v28 = vmul.f32 0.044715, %v3331_v17 }
 0x74e   : > { %v3424_v21 = vmul.f32 0.7978846, %v3392_v40  ;;  %v3394_v0 = vadd.f32 %v3362_v22, %v7698_v30 }
 0x74f   : > { %v3425_v37 = vmul.f32 0.7978846, %v3393_v1  ;;  %v3395_v7 = vadd.f32 %v3363_v28, %v7704_v56 }
 0x750   : > { %5520 = vtanh.f32 %v3424_v21  ;;  %v3426_v6 = vmul.f32 0.7978846, %v3394_v0 }
 0x751   : > { %5522 = vtanh.f32 %v3425_v37  ;;  %v3427_v8 = vmul.f32 0.7978846, %v3395_v7 }
 0x752   : > { %v5513_v49 = vpop.eup %5512  ;;  %5524 = vtanh.f32 %v3426_v6 }
 0x753   : > { %v5515_v53 = vpop.eup %5514  ;;  %5526 = vtanh.f32 %v3427_v8  ;;  %v3484_v3 = vadd.f32 1.0, %v5513_v49 }
 0x754   : > { %v5517_v11 = vpop.eup %5516  ;;  %v3485_v27 = vadd.f32 1.0, %v5515_v53 }
 0x755   : > { %v5519_v25 = vpop.eup %5518  ;;  %v3486_v15 = vadd.f32 1.0, %v5517_v11  ;;  %v3516_v61 = vmul.f32 0.5, %v3484_v3 }
 0x756   : > { %v3487_v43 = vadd.f32 1.0, %v5519_v25  ;;  %v3517_v55 = vmul.f32 0.5, %v3485_v27 }
 0x757   : > { %v3518_v17 = vmul.f32 0.5, %v3486_v15  ;;  %v3548_v22 = vmul.f32 %v3516_v61, %v7659_v60 }
 0x758   : > { %v3519_v40 = vmul.f32 0.5, %v3487_v43  ;;  %v3549_v0 = vmul.f32 %v3517_v55, %v7662_v52 }
 0x759   : > { %v3550_v1 = vmul.f32 %v3518_v17, %v7667_v26 }
 0x75a   : > { %v5521_v28 = vpop.eup %5520  ;;  %v3257_v21 = vpop.f32.mrb[104].mxu1  ;;  %v3551_v37 = vmul.f32 %v3519_v40, %v7672_v9 }
 0x75b   : > { %v5523_v7 = vpop.eup %5522  ;;  %v7723_v6 = vadd.f32 %v3257_v21, %v7529_v54  ;;  %v3259_v8 = vpop.f32.mrb[105].mxu1  ;;  %v3572_v49 = vpack.c.bf16 %v3550_v1, %v3548_v22  ;;  %v3488_v53 = vadd.f32 1.0, %v5521_v28 }
 0x75c   : > { %v5525_v3 = vpop.eup %5524  ;;  %v7726_v11 = vadd.f32 %v3259_v8, %v7532_v57  ;;  %v3261_v60 = vpop.f32.mrb[106].mxu1  ;;  %v3573_v27 = vpack.c.bf16 %v3551_v37, %v3549_v0  ;;  %v3489_v26 = vadd.f32 1.0, %v5523_v7 }
 0x75d   : > { %v5527_v25 = vpop.eup %5526  ;;  %v3300_v52 = vmul.f32 %v7723_v6, %v7723_v6  ;;  %v7731_v9 = vadd.f32 %v3261_v60, %v7529_v54  ;;  %v3263_v15 = vpop.f32.mrb[107].mxu1  ;;  %v3490_v61 = vadd.f32 1.0, %v5525_v3  ;;  %v3520_v43 = vmul.f32 0.5, %v3488_v53 }
 0x75e   : > { %v3301_v55 = vmul.f32 %v7726_v11, %v7726_v11  ;;  %v7736_v17 = vadd.f32 %v3263_v15, %v7532_v57  ;;  %3779 = vmatprep.mubr.bf16.mxu0 %v3573_v27  ;;  %v3491_v40 = vadd.f32 1.0, %v5527_v25  ;;  %v3521_v22 = vmul.f32 0.5, %v3489_v26 }
 0x75f   : > { %v3332_v1 = vmul.f32 %v3300_v52, %v7723_v6  ;;  %v3302_v28 = vmul.f32 %v7731_v9, %v7731_v9  ;;  %3780 = vmatmul.mubr.bf16.gmra.mrb[128].mxu0 %v3572_v49  ;;  %v3522_v21 = vmul.f32 0.5, %v3490_v61  ;;  %v3552_v3 = vmul.f32 %v3520_v43, %v7688_v23 }
 0x760   : > { %v3333_v0 = vmul.f32 %v3301_v55, %v7726_v11  ;;  %v3303_v37 = vmul.f32 %v7736_v17, %v7736_v17  ;;  %v3523_v7 = vmul.f32 0.5, %v3491_v40  ;;  %v3553_v49 = vmul.f32 %v3521_v22, %v7692_v5 }
 0x761   : > { %v3364_v8 = vmul.f32 0.044715, %v3332_v1  ;;  %v3334_v53 = vmul.f32 %v3302_v28, %v7731_v9  ;;  %v3554_v60 = vmul.f32 %v3522_v21, %v7698_v30 }
 0x762   : > { %v3365_v27 = vmul.f32 0.044715, %v3333_v0  ;;  %v3335_v26 = vmul.f32 %v3303_v37, %v7736_v17  ;;  %v3267_v25 = vpop.f32.mrb[108].mxu1  ;;  %v3555_v52 = vmul.f32 %v3523_v7, %v7704_v56 }
 0x763   : > { %v3396_v15 = vadd.f32 %v3364_v8, %v7723_v6  ;;  %v3366_v61 = vmul.f32 0.044715, %v3334_v53  ;;  %v7752_v55 = vadd.f32 %v3267_v25, %v7529_v54  ;;  %v3269_v40 = vpop.f32.mrb[109].mxu1  ;;  %v3574_v1 = vpack.c.bf16 %v3554_v60, %v3552_v3 }
 0x764   : > { %v3397_v23 = vadd.f32 %v3365_v27, %v7726_v11  ;;  %v3367_v43 = vmul.f32 0.044715, %v3335_v26  ;;  %v7756_v30 = vadd.f32 %v3269_v40, %v7532_v57  ;;  %v3271_v28 = vpop.f32.mrb[110].mxu1  ;;  %v3575_v21 = vpack.c.bf16 %v3555_v52, %v3553_v49 }
 0x765   : > { %v3428_v0 = vmul.f32 0.7978846, %v3396_v15  ;;  %v3398_v5 = vadd.f32 %v3366_v61, %v7731_v9  ;;  %v3304_v56 = vmul.f32 %v7752_v55, %v7752_v55  ;;  %v7762_v22 = vadd.f32 %v3271_v28, %v7529_v54  ;;  %v3273_v37 = vpop.f32.mrb[111].mxu1 }
 0x766   : > { %v3429_v7 = vmul.f32 0.7978846, %v3397_v23  ;;  %v3399_v8 = vadd.f32 %v3367_v43, %v7736_v17  ;;  %v3305_v53 = vmul.f32 %v7756_v30, %v7756_v30  ;;  %v7768_v3 = vadd.f32 %v3273_v37, %v7532_v57  ;;  %3787 = vmatprep.mubr.bf16.mxu0 %v3575_v21 }
 0x767   : > { %5528 = vtanh.f32 %v3428_v0  ;;  %v3430_v60 = vmul.f32 0.7978846, %v3398_v5  ;;  %v3336_v27 = vmul.f32 %v3304_v56, %v7752_v55  ;;  %v3306_v26 = vmul.f32 %v7762_v22, %v7762_v22  ;;  %3788 = vmatmul.mubr.bf16.gmra.mrb[132].mxu0 %v3574_v1 }
 0x768   : > { %5530 = vtanh.f32 %v3429_v7  ;;  %v3431_v54 = vmul.f32 0.7978846, %v3399_v8  ;;  %v3337_v25 = vmul.f32 %v3305_v53, %v7756_v30  ;;  %v3307_v49 = vmul.f32 %v7768_v3, %v7768_v3 }
 0x769   : > { %5532 = vtanh.f32 %v3430_v60  ;;  %v3368_v52 = vmul.f32 0.044715, %v3336_v27  ;;  %v3338_v57 = vmul.f32 %v3306_v26, %v7762_v22 }
 0x76a   : > { %5534 = vtanh.f32 %v3431_v54  ;;  %v3369_v15 = vmul.f32 0.044715, %v3337_v25  ;;  %v3339_v61 = vmul.f32 %v3307_v49, %v7768_v3 }
 0x76b   : > { %v3400_v40 = vadd.f32 %v3368_v52, %v7752_v55  ;;  %v3370_v23 = vmul.f32 0.044715, %v3338_v57 }
 0x76c   : > { %v3401_v1 = vadd.f32 %v3369_v15, %v7756_v30  ;;  %v3371_v43 = vmul.f32 0.044715, %v3339_v61 }
 0x76d   : > { %v3432_v28 = vmul.f32 0.7978846, %v3400_v40  ;;  %v3402_v21 = vadd.f32 %v3370_v23, %v7762_v22 }
 0x76e   : > { %v3433_v0 = vmul.f32 0.7978846, %v3401_v1  ;;  %v3403_v5 = vadd.f32 %v3371_v43, %v7768_v3 }
 0x76f   : > { %5536 = vtanh.f32 %v3432_v28  ;;  %v3434_v56 = vmul.f32 0.7978846, %v3402_v21 }
 0x770   : > { %5538 = vtanh.f32 %v3433_v0  ;;  %v3435_v37 = vmul.f32 0.7978846, %v3403_v5 }
 0x771   : > { %v5529_v7 = vpop.eup %5528  ;;  %5540 = vtanh.f32 %v3434_v56 }
 0x772   : > { %v5531_v8 = vpop.eup %5530  ;;  %v3492_v53 = vadd.f32 1.0, %v5529_v7  ;;  %5542 = vtanh.f32 %v3435_v37 }
 0x773   : > { %v5533_v60 = vpop.eup %5532  ;;  %v3493_v27 = vadd.f32 1.0, %v5531_v8 }
 0x774   : > { %v5535_v26 = vpop.eup %5534  ;;  %v3524_v54 = vmul.f32 0.5, %v3492_v53  ;;  %v3494_v25 = vadd.f32 1.0, %v5533_v60 }
 0x775   : > { %v3495_v49 = vadd.f32 1.0, %v5535_v26  ;;  %v3525_v52 = vmul.f32 0.5, %v3493_v27 }
 0x776   : > { %v3526_v57 = vmul.f32 0.5, %v3494_v25  ;;  %v3556_v61 = vmul.f32 %v3524_v54, %v7723_v6 }
 0x777   : > { %v3527_v15 = vmul.f32 0.5, %v3495_v49  ;;  %v3557_v1 = vmul.f32 %v3525_v52, %v7726_v11 }
 0x778   : > { %v3558_v40 = vmul.f32 %v3526_v57, %v7731_v9  ;;  %v7795_v57 = vld [vmem:[%s751_s16] ss:$0 sm:$0xff] }
 0x779   : > { %v5537_v23 = vpop.eup %5536  ;;  %v3559_v43 = vmul.f32 %v3527_v15, %v7736_v17 }
 0x77a   : > { %v5539_v28 = vpop.eup %5538  ;;  %v3576_v21 = vpack.c.bf16 %v3558_v40, %v3556_v61  ;;  %v3496_v0 = vadd.f32 1.0, %v5537_v23 }
 0x77b   : > { %v5541_v5 = vpop.eup %5540  ;;  %v3577_v56 = vpack.c.bf16 %v3559_v43, %v3557_v1  ;;  %v3497_v37 = vadd.f32 1.0, %v5539_v28 }
 0x77c   : > { %v5543_v7 = vpop.eup %5542  ;;  %v3498_v8 = vadd.f32 1.0, %v5541_v5  ;;  %v3528_v53 = vmul.f32 0.5, %v3496_v0 }
 0x77d   : > { %3795 = vmatprep.mubr.bf16.mxu1 %v3577_v56  ;;  %v3499_v60 = vadd.f32 1.0, %v5543_v7  ;;  %v3529_v6 = vmul.f32 0.5, %v3497_v37 }
 0x77e   : > { %3796 = vmatmul.mubr.bf16.vlgmr.msra.gmra.mrb[112].mxu1 %v3576_v21  ;;  %v3530_v9 = vmul.f32 0.5, %v3498_v8  ;;  %v3560_v11 = vmul.f32 %v3528_v53, %v7752_v55 }
 0x77f   : > { %v3531_v27 = vmul.f32 0.5, %v3499_v60  ;;  %v3561_v26 = vmul.f32 %v3529_v6, %v7756_v30 }
 0x780   : > { %v3562_v17 = vmul.f32 %v3530_v9, %v7762_v22 }
 0x781   : > { %v3563_v54 = vmul.f32 %v3531_v27, %v7768_v3 }
 0x782   : > { %v3578_v25 = vpack.c.bf16 %v3562_v17, %v3560_v11 }
 0x783   : > { %v3579_v49 = vpack.c.bf16 %v3563_v54, %v3561_v26 }
 0x785   : > { %3803 = vmatprep.mubr.bf16.mxu1 %v3579_v49 }
 0x786   : > { %3804 = vmatmul.mubr.bf16.gmra.mrb[116].mxu1 %v3578_v25 }
 0x7f2   : > { %v4871_v52 = vpop.f32.mrb[112].mxu0 }
 0x7f3   : > { %v4872_v15 = vpop.f32.mrb[113].mxu0 }
 0x7f4   : > { %v4873_v61 = vadd.f32 %v4872_v15, %v4871_v52  ;;  %v4874_v55 = vpop.f32.mrb[114].mxu0 }
 0x7f5   : > { %v4875_v40 = vpop.f32.mrb[115].mxu0 }
 0x7f6   : > { %v3750_v22 = vadd.f32 %v4873_v61, %v7795_v57  ;;  %v4876_v30 = vadd.f32 %v4875_v40, %v4874_v55 }
 0x7f8   : > { %v3753_v3 = vadd.f32 %v4876_v30, %v7795_v57  ;;  %v7800_v23 = vadd.f32 %v3750_v22, %v7414_v31 }
 0x7fa   : > { %3830 = vadd.xlane.f32.xlu0 %v7800_v23  ;;  %v4877_v1 = vpop.f32.mrb[116].mxu0  ;;  %v7804_v43 = vadd.f32 %v3753_v3, %v7417_v2  ;;  %v3878_v5 = vmul.f32 %v7800_v23, %v7800_v23 }
 0x7fb   : > { %v4878_v28 = vpop.f32.mrb[117].mxu0 }
 0x7fc   : > { %v4879_v21 = vadd.f32 %v4878_v28, %v4877_v1  ;;  %3832 = vadd.xlane.f32.xlu1 %v7804_v43  ;;  %v4880_v0 = vpop.f32.mrb[118].mxu0  ;;  %v3879_v31 = vmul.f32 %v7804_v43, %v7804_v43 }
 0x7fd   : > { %v4881_v56 = vpop.f32.mrb[119].mxu0 }
 0x7fe   : > { %v3758_v37 = vadd.f32 %v4879_v21, %v7795_v57  ;;  %v4882_v7 = vadd.f32 %v4881_v56, %v4880_v0  ;;  %3894 = vadd.xlane.f32.xlu0 %v3878_v5 }
 0x800   : > { %v3761_v8 = vadd.f32 %v4882_v7, %v7795_v57  ;;  %3896 = vadd.xlane.f32.xlu1 %v3879_v31  ;;  %v7814_v2 = vadd.f32 %v3758_v37, %v7426_v19 }
 0x802   : > { %3834 = vadd.xlane.f32.xlu0 %v7814_v2  ;;  %v7818_v53 = vadd.f32 %v3761_v8, %v7429_v13  ;;  %v3880_v60 = vmul.f32 %v7814_v2, %v7814_v2 }
 0x804   : > { %3836 = vadd.xlane.f32.xlu1 %v7818_v53  ;;  %v3881_v6 = vmul.f32 %v7818_v53, %v7818_v53 }
 0x806   : > { %3898 = vadd.xlane.f32.xlu0 %v3880_v60 }
 0x808   : > { %3900 = vadd.xlane.f32.xlu1 %v3881_v6 }
 0x812   : > { %v4883_v9 = vpop.f32.mrb[120].mxu0 }
 0x813   : > { %v4884_v27 = vpop.f32.mrb[121].mxu0 }
 0x814   : > { %v4885_v11 = vadd.f32 %v4884_v27, %v4883_v9  ;;  %v4886_v19 = vpop.f32.mrb[122].mxu0 }
 0x815   : > { %v4887_v17 = vpop.f32.mrb[123].mxu0 }
 0x816   : > { %v3766_v26 = vadd.f32 %v4885_v11, %v7795_v57  ;;  %v4888_v54 = vadd.f32 %v4887_v17, %v4886_v19 }
 0x818   : > { %v3769_v13 = vadd.f32 %v4888_v54, %v7795_v57  ;;  %v7828_v25 = vadd.f32 %v3766_v26, %v7440_v20 }
 0x81a   : > { %3838 = vadd.xlane.f32.xlu0 %v7828_v25  ;;  %v4889_v49 = vpop.f32.mrb[124].mxu0  ;;  %v7832_v52 = vadd.f32 %v3769_v13, %v7443_v38  ;;  %v3882_v40 = vmul.f32 %v7828_v25, %v7828_v25 }
 0x81b   : > { %v4890_v15 = vpop.f32.mrb[125].mxu0 }
 0x81c   : > { %v4891_v61 = vadd.f32 %v4890_v15, %v4889_v49  ;;  %3840 = vadd.xlane.f32.xlu1 %v7832_v52  ;;  %v4892_v55 = vpop.f32.mrb[126].mxu0  ;;  %v3883_v20 = vmul.f32 %v7832_v52, %v7832_v52 }
 0x81d   : > { %v4893_v22 = vpop.f32.mrb[127].mxu0 }
 0x81e   : > { %v3774_v30 = vadd.f32 %v4891_v61, %v7795_v57  ;;  %v4894_v3 = vadd.f32 %v4893_v22, %v4892_v55  ;;  %3902 = vadd.xlane.f32.xlu0 %v3882_v40 }
 0x820   : > { %v3777_v1 = vadd.f32 %v4894_v3, %v7795_v57  ;;  %3904 = vadd.xlane.f32.xlu1 %v3883_v20  ;;  %v7842_v38 = vadd.f32 %v3774_v30, %v7452_v59 }
 0x822   : > { %3842 = vadd.xlane.f32.xlu0 %v7842_v38  ;;  %v7846_v28 = vadd.f32 %v3777_v1, %v7455_v51  ;;  %v3884_v21 = vmul.f32 %v7842_v38, %v7842_v38 }
 0x824   : > { %3844 = vadd.xlane.f32.xlu1 %v7846_v28  ;;  %v3885_v0 = vmul.f32 %v7846_v28, %v7846_v28 }
 0x826   : > { %3906 = vadd.xlane.f32.xlu0 %v3884_v21 }
 0x828   : > { %3908 = vadd.xlane.f32.xlu1 %v3885_v0 }
 0x832   : > { %v4895_v5 = vpop.f32.mrb[128].mxu0 }
 0x833   : > { %v4896_v56 = vpop.f32.mrb[129].mxu0 }
 0x834   : > { %v4897_v37 = vadd.f32 %v4896_v56, %v4895_v5  ;;  %v4898_v59 = vpop.f32.mrb[130].mxu0 }
 0x835   : > { %v4899_v7 = vpop.f32.mrb[131].mxu0 }
 0x836   : > { %v3782_v31 = vadd.f32 %v4897_v37, %v7795_v57  ;;  %v4900_v8 = vadd.f32 %v4899_v7, %v4898_v59 }
 0x838   : > { %v3785_v51 = vadd.f32 %v4900_v8, %v7795_v57  ;;  %v7856_v60 = vadd.f32 %v3782_v31, %v7466_v48 }
 0x83a   : > { %3846 = vadd.xlane.f32.xlu0 %v7856_v60  ;;  %v4901_v6 = vpop.f32.mrb[132].mxu0  ;;  %v7860_v9 = vadd.f32 %v3785_v51, %v7469_v32  ;;  %v3886_v17 = vmul.f32 %v7856_v60, %v7856_v60 }
 0x83b   : > { %v4902_v27 = vpop.f32.mrb[133].mxu0 }
 0x83c   : > { %v4903_v11 = vadd.f32 %v4902_v27, %v4901_v6  ;;  %3848 = vadd.xlane.f32.xlu1 %v7860_v9  ;;  %v4904_v19 = vpop.f32.mrb[134].mxu0  ;;  %v3887_v48 = vmul.f32 %v7860_v9, %v7860_v9 }
 0x83d   : > { %v4905_v26 = vpop.f32.mrb[135].mxu0 }
 0x83e   : > { %v3790_v54 = vadd.f32 %v4903_v11, %v7795_v57  ;;  %v4906_v13 = vadd.f32 %v4905_v26, %v4904_v19  ;;  %3910 = vadd.xlane.f32.xlu0 %v3886_v17 }
 0x840   : > { %v3793_v49 = vadd.f32 %v4906_v13, %v7795_v57  ;;  %3912 = vadd.xlane.f32.xlu1 %v3887_v48  ;;  %v7870_v32 = vadd.f32 %v3790_v54, %v7478_v4 }
 0x842   : > { %3850 = vadd.xlane.f32.xlu0 %v7870_v32  ;;  %v7874_v15 = vadd.f32 %v3793_v49, %v7481_v24  ;;  %v3888_v61 = vmul.f32 %v7870_v32, %v7870_v32 }
 0x844   : > { %3852 = vadd.xlane.f32.xlu1 %v7874_v15  ;;  %v3889_v55 = vmul.f32 %v7874_v15, %v7874_v15 }
 0x846   : > { %3914 = vadd.xlane.f32.xlu0 %v3888_v61 }
 0x848   : > { %3916 = vadd.xlane.f32.xlu1 %v3889_v55 }
 0x851   : > { %v4907_v40 = vpop.f32.mrb[112].mxu1 }
 0x852   : > { %v4908_v22 = vpop.f32.mrb[113].mxu1 }
 0x853   : > { %v4909_v30 = vadd.f32 %v4908_v22, %v4907_v40  ;;  %v4910_v4 = vpop.f32.mrb[114].mxu1 }
 0x854   : > { %v4911_v3 = vpop.f32.mrb[115].mxu1 }
 0x855   : > { %v3798_v20 = vadd.f32 %v4909_v30, %v7795_v57  ;;  %v4912_v1 = vadd.f32 %v4911_v3, %v4910_v4 }
 0x857   : > { %v3801_v24 = vadd.f32 %v4912_v1, %v7795_v57  ;;  %v7884_v21 = vadd.f32 %v3798_v20, %v7495_v46 }
 0x859   : > { %3854 = vadd.xlane.f32.xlu0 %v7884_v21  ;;  %v4913_v0 = vpop.f32.mrb[116].mxu1  ;;  %v7888_v5 = vadd.f32 %v3801_v24, %v7498_v29  ;;  %v3890_v7 = vmul.f32 %v7884_v21, %v7884_v21 }
 0x85a   : > { %v4914_v56 = vpop.f32.mrb[117].mxu1 }
 0x85b   : > { %v4915_v37 = vadd.f32 %v4914_v56, %v4913_v0  ;;  %3856 = vadd.xlane.f32.xlu1 %v7888_v5  ;;  %v4916_v59 = vpop.f32.mrb[118].mxu1  ;;  %v3891_v46 = vmul.f32 %v7888_v5, %v7888_v5 }
 0x85c   : > { %v4917_v31 = vpop.f32.mrb[119].mxu1 }
 0x85d   : > { %v3806_v8 = vadd.f32 %v4915_v37, %v7795_v57  ;;  %v4918_v51 = vadd.f32 %v4917_v31, %v4916_v59  ;;  %3918 = vadd.xlane.f32.xlu0 %v3890_v7 }
 0x85f   : > { %v3809_v6 = vadd.f32 %v4918_v51, %v7795_v57  ;;  %3920 = vadd.xlane.f32.xlu1 %v3891_v46  ;;  %v7898_v29 = vadd.f32 %v3806_v8, %v7511_v35 }
 0x861   : > { %3858 = vadd.xlane.f32.xlu0 %v7898_v29  ;;  %v7902_v27 = vadd.f32 %v3809_v6, %v7514_v44  ;;  %v3892_v11 = vmul.f32 %v7898_v29, %v7898_v29 }
 0x863   : > { %3860 = vadd.xlane.f32.xlu1 %v7902_v27  ;;  %v3893_v19 = vmul.f32 %v7902_v27, %v7902_v27 }
 0x865   : > { %3922 = vadd.xlane.f32.xlu0 %v3892_v11 }
 0x867   : > { %3924 = vadd.xlane.f32.xlu1 %v3893_v19  ;;  %v7915_v19 = vld [vmem:[%s754_s19] ss:$0 sm:$0xff] }
 0x887   : > { %v3831_v57 = vpop.xlane.xlu0 %3830 }
 0x888   : > { %v3862_v17 = vmul.f32 0.0078125, %v3831_v57 }
 0x889   : > { %v3833_v26 = vpop.xlane.xlu1 %3832 }
 0x88a   : > { %v3863_v35 = vmul.f32 0.0078125, %v3833_v26  ;;  %v3942_v13 = vmul.f32 %v3862_v17, %v3862_v17  ;;  %v3974_v6 = vsub.f32 %v7800_v23, %v3862_v17 }
 0x88b   : > { %v3895_v54 = vpop.xlane.xlu0 %3894 }
 0x88c   : > { %v3926_v48 = vmul.f32 0.0078125, %v3895_v54  ;;  %v3943_v44 = vmul.f32 %v3863_v35, %v3863_v35  ;;  %v3975_v57 = vsub.f32 %v7804_v43, %v3863_v35 }
 0x88d   : > { %v3897_v49 = vpop.xlane.xlu1 %3896 }
 0x88e   : > { %v3958_v61 = vsub.f32 %v3926_v48, %v3942_v13  ;;  %v3927_v55 = vmul.f32 0.0078125, %v3897_v49  ;;  %v7923_v13 = vld [vmem:[%s757_s8] ss:$0 sm:$0xff]  ;;  %s8506_s8 = sld [smem:[#allocation11_spill]] }
 0x88f   : > { %v3835_v40 = vpop.xlane.xlu0 %3834 }
 0x890   : > { %v3990_v22 = vadd.f32 1e-12, %v3958_v61  ;;  %v3959_v30 = vsub.f32 %v3927_v55, %v3943_v44  ;;  %v3864_v4 = vmul.f32 0.0078125, %v3835_v40 }
 0x891   : > { %v3837_v3 = vpop.xlane.xlu1 %3836 }
 0x892   : > { %5544 = vrsqrt.f32 %v3990_v22  ;;  %v3991_v20 = vadd.f32 1e-12, %v3959_v30  ;;  %v3865_v1 = vmul.f32 0.0078125, %v3837_v3  ;;  %v3944_v0 = vmul.f32 %v3864_v4, %v3864_v4 }
 0x893   : > { %v3899_v24 = vpop.xlane.xlu0 %3898  ;;  %v3976_v43 = vsub.f32 %v7814_v2, %v3864_v4 }
 0x894   : > { %5546 = vrsqrt.f32 %v3991_v20  ;;  %v3928_v56 = vmul.f32 0.0078125, %v3899_v24  ;;  %v3945_v59 = vmul.f32 %v3865_v1, %v3865_v1  ;;  %v3977_v61 = vsub.f32 %v7818_v53, %v3865_v1  ;;  %p4568_p1 = scmp.ne.s32.totalorder %s8506_s8, 1 }
 0x895   : > { %v3901_v37 = vpop.xlane.xlu1 %3900  ;;  %4102 = vst [vmem:[%s5961_s18] sm:$0xff] (!%p4568_p1), %v7005_v34  ;;  %4103 = vst [vmem:[%s5961_s18 + $0x8] sm:$0xff] (!%p4568_p1), %v6996_v39  ;;  %v8507_v39 = vld [vmem:[#allocation45_spill] sm:$0xff] (!%p4568_p1)  ;;  %v8508_v34 = vld [vmem:[#allocation50_spill] sm:$0xff] (!%p4568_p1) }
 0x896   : > { %v3960_v7 = vsub.f32 %v3928_v56, %v3944_v0  ;;  %v3929_v31 = vmul.f32 0.0078125, %v3901_v37  ;;  %4104 = vst [vmem:[%s5961_s18 + $0x10] sm:$0xff] (!%p4568_p1), %v7037_v62  ;;  %4105 = vst [vmem:[%s5961_s18 + $0x18] sm:$0xff] (!%p4568_p1), %v7028_v18  ;;  %v8509_v18 = vld [vmem:[#allocation51_spill] sm:$0xff] (!%p4568_p1)  ;;  %v8510_v62 = vld [vmem:[#allocation56_spill] sm:$0xff] (!%p4568_p1) }
 0x897   : > { %4106 = vst [vmem:[%s5961_s18 + $0x20] sm:$0xff] (!%p4568_p1), %v7069_v41  ;;  %4107 = vst [vmem:[%s5961_s18 + $0x28] sm:$0xff] (!%p4568_p1), %v7060_v14  ;;  %v8511_v14 = vld [vmem:[#allocation57_spill] sm:$0xff] (!%p4568_p1)  ;;  %v8512_v41 = vld [vmem:[#allocation62_spill] sm:$0xff] (!%p4568_p1) }
 0x898   : > { %v3992_v8 = vadd.f32 1e-12, %v3960_v7  ;;  %v3961_v51 = vsub.f32 %v3929_v31, %v3945_v59  ;;  %4108 = vst [vmem:[%s5961_s18 + $0x30] sm:$0xff] (!%p4568_p1), %v7101_v58  ;;  %4109 = vst [vmem:[%s5961_s18 + $0x38] sm:$0xff] (!%p4568_p1), %v7092_v16  ;;  %v8513_v16 = vld [vmem:[#allocation63_spill] sm:$0xff] (!%p4568_p1)  ;;  %v8515_v58 = vld [vmem:[#allocation69_spill] sm:$0xff] (!%p4568_p1) }
 0x899   : > { %4110 = vst [vmem:[%s5961_s18 + $0x40] sm:$0xff] (!%p4568_p1), %v7133_v63  ;;  %4111 = vst [vmem:[%s5961_s18 + $0x48] sm:$0xff] (!%p4568_p1), %v7124_v10  ;;  %v8516_v10 = vld [vmem:[#allocation74_spill] sm:$0xff] (!%p4568_p1)  ;;  %v8517_v63 = vld [vmem:[#allocation75_spill] sm:$0xff] (!%p4568_p1) }
 0x89a   : > { %5548 = vrsqrt.f32 %v3992_v8  ;;  %v3993_v46 = vadd.f32 1e-12, %v3961_v51  ;;  %4112 = vst [vmem:[%s5961_s18 + $0x50] sm:$0xff] (!%p4568_p1), %v7165_v36  ;;  %4113 = vst [vmem:[%s5961_s18 + $0x58] sm:$0xff] (!%p4568_p1), %v7156_v47  ;;  %v8518_v47 = vld [vmem:[#allocation31_spill] sm:$0xff] (!%p4568_p1)  ;;  %v8519_v36 = vld [vmem:[#allocation32_spill] sm:$0xff] (!%p4568_p1) }
 0x89b   : > { %4114 = vst [vmem:[%s5961_s18 + $0x60] sm:$0xff] (!%p4568_p1), %v7200_v50  ;;  %4115 = vst [vmem:[%s5961_s18 + $0x68] sm:$0xff] (!%p4568_p1), %v7190_v33  ;;  %v8520_v33 = vld [vmem:[#allocation35_spill] sm:$0xff] (!%p4568_p1)  ;;  %v8521_v50 = vld [vmem:[#allocation30_spill] sm:$0xff] (!%p4568_p1) }
 0x89c   : > { %v5545_v11 = vpop.eup %5544  ;;  %5550 = vrsqrt.f32 %v3993_v46  ;;  %4116 = vst [vmem:[%s5961_s18 + $0x70] sm:$0xff] (!%p4568_p1), %v7235_v45  ;;  %4117 = vst [vmem:[%s5961_s18 + $0x78] sm:$0xff] (!%p4568_p1), %v7228_v42  ;;  %v8522_v45 = vld [vmem:[#allocation49_spill] sm:$0xff] (!%p4568_p1)  ;;  %v8523_v42 = vld [vmem:[#allocation46_spill] sm:$0xff] (!%p4568_p1) }
 0x89d   : > { %v4022_v26 = vmul.f32 %v5545_v11, %v3974_v6  ;;  %4569 = vst [vmem:[%s5961_s18 + $0x80] sm:$0xff] (!%p4568_p1), %v6999_v12  ;;  %4570 = vst [vmem:[%s5961_s18 + $0x88] sm:$0xff] (!%p4568_p1), %v8507_v39  ;;  %v8514_v12 = vld [vmem:[#allocation68_spill] sm:$0xff] (!%p4568_p1) }
 0x89e   : > { %v5547_v54 = vpop.eup %5546  ;;  %4571 = vst [vmem:[%s5961_s18 + $0x90] sm:$0xff] (!%p4568_p1), %v8508_v34  ;;  %4572 = vst [vmem:[%s5961_s18 + $0x98] sm:$0xff] (!%p4568_p1), %v8509_v18 }
 0x89f   : > { %v4044_v23 = vmul.f32 %v7915_v19, %v4022_v26  ;;  %v4023_v17 = vmul.f32 %v5547_v54, %v3975_v57  ;;  %4573 = vst [vmem:[%s5961_s18 + $0xa0] sm:$0xff] (!%p4568_p1), %v8510_v62  ;;  %4574 = vst [vmem:[%s5961_s18 + $0xa8] sm:$0xff] (!%p4568_p1), %v8511_v14 }
 0x8a0   : > { %4575 = vst [vmem:[%s5961_s18 + $0xb0] sm:$0xff] (!%p4568_p1), %v8512_v41  ;;  %4576 = vst [vmem:[%s5961_s18 + $0xb8] sm:$0xff] (!%p4568_p1), %v8513_v16 }
 0x8a1   : > { %v4066_v48 = vadd.f32 %v7923_v13, %v4044_v23  ;;  %v4045_v49 = vmul.f32 %v7915_v19, %v4023_v17  ;;  %4577 = vst [vmem:[%s5961_s18 + $0xc0] sm:$0xff] (!%p4568_p1), %v8514_v12  ;;  %4578 = vst [vmem:[%s5961_s18 + $0xc8] sm:$0xff] (!%p4568_p1), %v8515_v58 }
 0x8a2   : > { %4579 = vst [vmem:[%s5961_s18 + $0xd0] sm:$0xff] (!%p4568_p1), %v8516_v10  ;;  %4580 = vst [vmem:[%s5961_s18 + $0xd8] sm:$0xff] (!%p4568_p1), %v8517_v63 }
 0x8a3   : > { %4082 = vst [vmem:[%s5959_s25] sm:$0xff] %v4066_v48  ;;  %v4067_v44 = vadd.f32 %v7923_v13, %v4045_v49  ;;  %4581 = vst [vmem:[%s5961_s18 + $0xe0] sm:$0xff] (!%p4568_p1), %v8518_v47 }
 0x8a4   : > { %v5549_v35 = vpop.eup %5548  ;;  %4582 = vst [vmem:[%s5961_s18 + $0xe8] sm:$0xff] (!%p4568_p1), %v8519_v36  ;;  %4583 = vst [vmem:[%s5961_s18 + $0xf0] sm:$0xff] (!%p4568_p1), %v8520_v33 }
 0x8a5   : > { %4083 = vst [vmem:[%s5959_s25 + $0x8] sm:$0xff] %v4067_v44  ;;  %v4024_v55 = vmul.f32 %v5549_v35, %v3976_v43  ;;  %4584 = vst [vmem:[%s5961_s18 + $0xf8] sm:$0xff] (!%p4568_p1), %v8521_v50 }
 0x8a6   : > { %v5551_v40 = vpop.eup %5550  ;;  %4585 = vst [vmem:[%s5961_s18 + $0x100] sm:$0xff] (!%p4568_p1), %v8522_v45  ;;  %4586 = vst [vmem:[%s5961_s18 + $0x108] sm:$0xff] (!%p4568_p1), %v8523_v42 }
 0x8a7   : > { %v4046_v22 = vmul.f32 %v7915_v19, %v4024_v55  ;;  %v4025_v30 = vmul.f32 %v5551_v40, %v3977_v61  ;;  %v3839_v3 = vpop.xlane.xlu0 %3838 }
 0x8a8   : > { %v3866_v20 = vmul.f32 0.0078125, %v3839_v3 }
 0x8a9   : > { %v4068_v24 = vadd.f32 %v7923_v13, %v4046_v22  ;;  %v4047_v0 = vmul.f32 %v7915_v19, %v4025_v30  ;;  %v3841_v56 = vpop.xlane.xlu1 %3840 }
 0x8aa   : > { %v3867_v37 = vmul.f32 0.0078125, %v3841_v56  ;;  %v3946_v59 = vmul.f32 %v3866_v20, %v3866_v20  ;;  %v3978_v22 = vsub.f32 %v7828_v25, %v3866_v20 }
 0x8ab   : > { %4084 = vst [vmem:[%s5959_s25 + $0x10] sm:$0xff] %v4068_v24  ;;  %v4069_v2 = vadd.f32 %v7923_v13, %v4047_v0  ;;  %v3903_v4 = vpop.xlane.xlu0 %3902 }
 0x8ac   : > { %v3930_v53 = vmul.f32 0.0078125, %v3903_v4  ;;  %v3947_v7 = vmul.f32 %v3867_v37, %v3867_v37  ;;  %v3979_v3 = vsub.f32 %v7832_v52, %v3867_v37 }
 0x8ad   : > { %4085 = vst [vmem:[%s5959_s25 + $0x18] sm:$0xff] %v4069_v2  ;;  %v3905_v1 = vpop.xlane.xlu1 %3904 }
 0x8ae   : > { %v3962_v31 = vsub.f32 %v3930_v53, %v3946_v59  ;;  %v3931_v8 = vmul.f32 0.0078125, %v3905_v1 }
 0x8af   : > { %v3843_v51 = vpop.xlane.xlu0 %3842 }
 0x8b0   : > { %v3994_v46 = vadd.f32 1e-12, %v3962_v31  ;;  %v3963_v6 = vsub.f32 %v3931_v8, %v3947_v7  ;;  %v3868_v11 = vmul.f32 0.0078125, %v3843_v51 }
 0x8b1   : > { %v3845_v57 = vpop.xlane.xlu1 %3844 }
 0x8b2   : > { %5552 = vrsqrt.f32 %v3994_v46  ;;  %v3995_v26 = vadd.f32 1e-12, %v3963_v6  ;;  %v3869_v54 = vmul.f32 0.0078125, %v3845_v57  ;;  %v3948_v17 = vmul.f32 %v3868_v11, %v3868_v11 }
 0x8b3   : > { %v3907_v23 = vpop.xlane.xlu0 %3906  ;;  %v3980_v1 = vsub.f32 %v7842_v38, %v3868_v11 }
 0x8b4   : > { %5554 = vrsqrt.f32 %v3995_v26  ;;  %v3932_v48 = vmul.f32 0.0078125, %v3907_v23  ;;  %v3949_v44 = vmul.f32 %v3869_v54, %v3869_v54  ;;  %v3981_v20 = vsub.f32 %v7846_v28, %v3869_v54 }
 0x8b5   : > { %v3909_v49 = vpop.xlane.xlu1 %3908 }
 0x8b6   : > { %v3964_v43 = vsub.f32 %v3932_v48, %v3948_v17  ;;  %v3933_v35 = vmul.f32 0.0078125, %v3909_v49 }
 0x8b8   : > { %v3996_v61 = vadd.f32 1e-12, %v3964_v43  ;;  %v3965_v55 = vsub.f32 %v3933_v35, %v3949_v44 }
 0x8ba   : > { %5556 = vrsqrt.f32 %v3996_v61  ;;  %v3997_v40 = vadd.f32 1e-12, %v3965_v55 }
 0x8bc   : > { %v5553_v30 = vpop.eup %5552  ;;  %5558 = vrsqrt.f32 %v3997_v40 }
 0x8bd   : > { %v4026_v24 = vmul.f32 %v5553_v30, %v3978_v22 }
 0x8be   : > { %v5555_v0 = vpop.eup %5554 }
 0x8bf   : > { %v4048_v56 = vmul.f32 %v7915_v19, %v4026_v24  ;;  %v4027_v2 = vmul.f32 %v5555_v0, %v3979_v3 }
 0x8c1   : > { %v4070_v4 = vadd.f32 %v7923_v13, %v4048_v56  ;;  %v4049_v59 = vmul.f32 %v7915_v19, %v4027_v2 }
 0x8c3   : > { %4086 = vst [vmem:[%s5959_s25 + $0x20] sm:$0xff] %v4070_v4  ;;  %v4071_v53 = vadd.f32 %v7923_v13, %v4049_v59 }
 0x8c4   : > { %v5557_v25 = vpop.eup %5556 }
 0x8c5   : > { %4087 = vst [vmem:[%s5959_s25 + $0x28] sm:$0xff] %v4071_v53  ;;  %v4028_v52 = vmul.f32 %v5557_v25, %v3980_v1 }
 0x8c6   : > { %v5559_v37 = vpop.eup %5558 }
 0x8c7   : > { %v4050_v7 = vmul.f32 %v7915_v19, %v4028_v52  ;;  %v4029_v31 = vmul.f32 %v5559_v37, %v3981_v20  ;;  %v3847_v8 = vpop.xlane.xlu0 %3846 }
 0x8c8   : > { %v3870_v51 = vmul.f32 0.0078125, %v3847_v8 }
 0x8c9   : > { %v4072_v46 = vadd.f32 %v7923_v13, %v4050_v7  ;;  %v4051_v6 = vmul.f32 %v7915_v19, %v4029_v31  ;;  %v3849_v57 = vpop.xlane.xlu1 %3848 }
 0x8ca   : > { %v3871_v26 = vmul.f32 0.0078125, %v3849_v57  ;;  %v3950_v23 = vmul.f32 %v3870_v51, %v3870_v51  ;;  %v3982_v25 = vsub.f32 %v7856_v60, %v3870_v51 }
 0x8cb   : > { %4088 = vst [vmem:[%s5959_s25 + $0x30] sm:$0xff] %v4072_v46  ;;  %v4073_v38 = vadd.f32 %v7923_v13, %v4051_v6  ;;  %v3911_v11 = vpop.xlane.xlu0 %3910 }
 0x8cc   : > { %v3934_v28 = vmul.f32 0.0078125, %v3911_v11  ;;  %v3951_v17 = vmul.f32 %v3871_v26, %v3871_v26  ;;  %v3983_v52 = vsub.f32 %v7860_v9, %v3871_v26 }
 0x8cd   : > { %4089 = vst [vmem:[%s5959_s25 + $0x38] sm:$0xff] %v4073_v38  ;;  %v3913_v54 = vpop.xlane.xlu1 %3912 }
 0x8ce   : > { %v3966_v48 = vsub.f32 %v3934_v28, %v3950_v23  ;;  %v3935_v49 = vmul.f32 0.0078125, %v3913_v54 }
 0x8cf   : > { %v3851_v44 = vpop.xlane.xlu0 %3850 }
 0x8d0   : > { %v3998_v43 = vadd.f32 1e-12, %v3966_v48  ;;  %v3967_v35 = vsub.f32 %v3935_v49, %v3951_v17  ;;  %v3872_v61 = vmul.f32 0.0078125, %v3851_v44 }
 0x8d1   : > { %v3853_v55 = vpop.xlane.xlu1 %3852 }
 0x8d2   : > { %5560 = vrsqrt.f32 %v3998_v43  ;;  %v3999_v40 = vadd.f32 1e-12, %v3967_v35  ;;  %v3873_v22 = vmul.f32 0.0078125, %v3853_v55  ;;  %v3952_v3 = vmul.f32 %v3872_v61, %v3872_v61 }
 0x8d3   : > { %v3915_v30 = vpop.xlane.xlu0 %3914  ;;  %v3984_v38 = vsub.f32 %v7870_v32, %v3872_v61 }
 0x8d4   : > { %5562 = vrsqrt.f32 %v3999_v40  ;;  %v3936_v24 = vmul.f32 0.0078125, %v3915_v30  ;;  %v3953_v56 = vmul.f32 %v3873_v22, %v3873_v22  ;;  %v3985_v51 = vsub.f32 %v7874_v15, %v3873_v22 }
 0x8d5   : > { %v3917_v0 = vpop.xlane.xlu1 %3916 }
 0x8d6   : > { %v3968_v2 = vsub.f32 %v3936_v24, %v3952_v3  ;;  %v3937_v4 = vmul.f32 0.0078125, %v3917_v0 }
 0x8d8   : > { %v4000_v59 = vadd.f32 1e-12, %v3968_v2  ;;  %v3969_v53 = vsub.f32 %v3937_v4, %v3953_v56 }
 0x8da   : > { %5564 = vrsqrt.f32 %v4000_v59  ;;  %v4001_v1 = vadd.f32 1e-12, %v3969_v53 }
 0x8dc   : > { %v5561_v20 = vpop.eup %5560  ;;  %5566 = vrsqrt.f32 %v4001_v1 }
 0x8dd   : > { %v4030_v37 = vmul.f32 %v5561_v20, %v3982_v25 }
 0x8de   : > { %v5563_v7 = vpop.eup %5562 }
 0x8df   : > { %v4052_v31 = vmul.f32 %v7915_v19, %v4030_v37  ;;  %v4031_v8 = vmul.f32 %v5563_v7, %v3983_v52 }
 0x8e1   : > { %v4074_v46 = vadd.f32 %v7923_v13, %v4052_v31  ;;  %v4053_v6 = vmul.f32 %v7915_v19, %v4031_v8 }
 0x8e3   : > { %4090 = vst [vmem:[%s5959_s25 + $0x40] sm:$0xff] %v4074_v46  ;;  %v4075_v57 = vadd.f32 %v7923_v13, %v4053_v6 }
 0x8e4   : > { %v5565_v60 = vpop.eup %5564 }
 0x8e5   : > { %4091 = vst [vmem:[%s5959_s25 + $0x48] sm:$0xff] %v4075_v57  ;;  %v4032_v9 = vmul.f32 %v5565_v60, %v3984_v38 }
 0x8e6   : > { %v5567_v26 = vpop.eup %5566  ;;  %v3855_v11 = vpop.xlane.xlu0 %3854 }
 0x8e7   : > { %v4054_v23 = vmul.f32 %v7915_v19, %v4032_v9  ;;  %v4033_v28 = vmul.f32 %v5567_v26, %v3985_v51  ;;  %v3874_v54 = vmul.f32 0.0078125, %v3855_v11 }
 0x8e8   : > { %v3857_v17 = vpop.xlane.xlu1 %3856 }
 0x8e9   : > { %v4076_v48 = vadd.f32 %v7923_v13, %v4054_v23  ;;  %v4055_v49 = vmul.f32 %v7915_v19, %v4033_v28  ;;  %v3875_v44 = vmul.f32 0.0078125, %v3857_v17  ;;  %v3954_v35 = vmul.f32 %v3874_v54, %v3874_v54 }
 0x8ea   : > { %v3919_v43 = vpop.xlane.xlu0 %3918  ;;  %v3986_v46 = vsub.f32 %v7884_v21, %v3874_v54 }
 0x8eb   : > { %4092 = vst [vmem:[%s5959_s25 + $0x50] sm:$0xff] %v4076_v48  ;;  %v4077_v32 = vadd.f32 %v7923_v13, %v4055_v49  ;;  %v3938_v15 = vmul.f32 0.0078125, %v3919_v43  ;;  %v3955_v55 = vmul.f32 %v3875_v44, %v3875_v44  ;;  %v3987_v57 = vsub.f32 %v7888_v5, %v3875_v44 }
 0x8ec   : > { %v3921_v61 = vpop.xlane.xlu1 %3920 }
 0x8ed   : > { %4093 = vst [vmem:[%s5959_s25 + $0x58] sm:$0xff] %v4077_v32  ;;  %v3970_v40 = vsub.f32 %v3938_v15, %v3954_v35  ;;  %v3939_v22 = vmul.f32 0.0078125, %v3921_v61  ;;  %v8528_v35 = vld [vmem:[#allocation67_spill] sm:$0xff] (!%p4568_p1)  ;;  %v8529_v15 = vld [vmem:[#allocation64_spill] sm:$0xff] (!%p4568_p1)  ;;  %v8530_v61 = vld [vmem:[#allocation73_spill] sm:$0xff] (!%p4568_p1) }
 0x8ee   : > { %v3859_v30 = vpop.xlane.xlu0 %3858  ;;  %4591 = vst [vmem:[%s5961_s18 + $0x130] sm:$0xff] (!%p4568_p1), %v8528_v35  ;;  %4592 = vst [vmem:[%s5961_s18 + $0x138] sm:$0xff] (!%p4568_p1), %v8529_v15 }
 0x8ef   : > { %v4002_v3 = vadd.f32 1e-12, %v3970_v40  ;;  %v3971_v24 = vsub.f32 %v3939_v22, %v3955_v55  ;;  %v3876_v0 = vmul.f32 0.0078125, %v3859_v30  ;;  %4593 = vst [vmem:[%s5961_s18 + $0x140] sm:$0xff] (!%p4568_p1), %v8530_v61  ;;  %v8531_v55 = vld [vmem:[#allocation70_spill] sm:$0xff] (!%p4568_p1)  ;;  %v8533_v22 = vld [vmem:[#allocation76_spill] sm:$0xff] (!%p4568_p1) }
 0x8f0   : > { %v3861_v56 = vpop.xlane.xlu1 %3860  ;;  %4594 = vst [vmem:[%s5961_s18 + $0x148] sm:$0xff] (!%p4568_p1), %v8531_v55  ;;  %v8532_v40 = vld [vmem:[#allocation26_spill] sm:$0xff] (!%p4568_p1)  ;;  %4596 = vst [vmem:[%s5961_s18 + $0x158] sm:$0xff] (!%p4568_p1), %v8533_v22 }
 0x8f1   : > { %5568 = vrsqrt.f32 %v4002_v3  ;;  %v4003_v2 = vadd.f32 1e-12, %v3971_v24  ;;  %v3877_v4 = vmul.f32 0.0078125, %v3861_v56  ;;  %v3956_v53 = vmul.f32 %v3876_v0, %v3876_v0  ;;  %4595 = vst [vmem:[%s5961_s18 + $0x150] sm:$0xff] (!%p4568_p1), %v8532_v40  ;;  %v8534_v30 = vld [vmem:[#allocation34_spill] sm:$0xff] (!%p4568_p1)  ;;  %v8535_v3 = vld [vmem:[#allocation36_spill] sm:$0xff] (!%p4568_p1) }
 0x8f2   : > { %v3923_v59 = vpop.xlane.xlu0 %3922  ;;  %v3988_v21 = vsub.f32 %v7898_v29, %v3876_v0  ;;  %v8524_v29 = vld [vmem:[#allocation55_spill] sm:$0xff] (!%p4568_p1)  ;;  %4597 = vst [vmem:[%s5961_s18 + $0x160] sm:$0xff] (!%p4568_p1), %v8534_v30  ;;  %4598 = vst [vmem:[%s5961_s18 + $0x168] sm:$0xff] (!%p4568_p1), %v8535_v3  ;;  %v8536_v24 = vld [vmem:[#allocation40_spill] sm:$0xff] (!%p4568_p1) }
 0x8f3   : > { %5570 = vrsqrt.f32 %v4003_v2  ;;  %v3940_v1 = vmul.f32 0.0078125, %v3923_v59  ;;  %v3957_v20 = vmul.f32 %v3877_v4, %v3877_v4  ;;  %v3989_v5 = vsub.f32 %v7902_v27, %v3877_v4  ;;  %4587 = vst [vmem:[%s5961_s18 + $0x110] sm:$0xff] (!%p4568_p1), %v8524_v29  ;;  %v8525_v27 = vld [vmem:[#allocation52_spill] sm:$0xff] (!%p4568_p1)  ;;  %4599 = vst [vmem:[%s5961_s18 + $0x170] sm:$0xff] (!%p4568_p1), %v8536_v24  ;;  %v8537_v0 = vld [vmem:[#allocation39_spill] sm:$0xff] (!%p4568_p1) }
 0x8f4   : > { %v3925_v25 = vpop.xlane.xlu1 %3924  ;;  %4588 = vst [vmem:[%s5961_s18 + $0x118] sm:$0xff] (!%p4568_p1), %v8525_v27  ;;  %4600 = vst [vmem:[%s5961_s18 + $0x178] sm:$0xff] (!%p4568_p1), %v8537_v0  ;;  %v8538_v56 = vld [vmem:[#allocation47_spill] sm:$0xff] (!%p4568_p1)  ;;  %v8539_v2 = vld [vmem:[#allocation48_spill] sm:$0xff] (!%p4568_p1) }
 0x8f5   : > { %v3972_v52 = vsub.f32 %v3940_v1, %v3956_v53  ;;  %v3941_v37 = vmul.f32 0.0078125, %v3925_v25  ;;  %4601 = vst [vmem:[%s5961_s18 + $0x180] sm:$0xff] (!%p4568_p1), %v8538_v56  ;;  %4602 = vst [vmem:[%s5961_s18 + $0x188] sm:$0xff] (!%p4568_p1), %v8539_v2  ;;  %v8540_v4 = vld [vmem:[#allocation53_spill] sm:$0xff] (!%p4568_p1)  ;;  %v8541_v59 = vld [vmem:[#allocation54_spill] sm:$0xff] (!%p4568_p1) }
 0x8f6   : > { %4603 = vst [vmem:[%s5961_s18 + $0x190] sm:$0xff] (!%p4568_p1), %v8540_v4  ;;  %4604 = vst [vmem:[%s5961_s18 + $0x198] sm:$0xff] (!%p4568_p1), %v8541_v59  ;;  %v8542_v53 = vld [vmem:[#allocation59_spill] sm:$0xff] (!%p4568_p1)  ;;  %v8543_v1 = vld [vmem:[#allocation60_spill] sm:$0xff] (!%p4568_p1) }
 0x8f7   : > { %v4004_v7 = vadd.f32 1e-12, %v3972_v52  ;;  %v3973_v31 = vsub.f32 %v3941_v37, %v3957_v20  ;;  %4605 = vst [vmem:[%s5961_s18 + $0x1a0] sm:$0xff] (!%p4568_p1), %v8542_v53  ;;  %4606 = vst [vmem:[%s5961_s18 + $0x1a8] sm:$0xff] (!%p4568_p1), %v8543_v1  ;;  %v8544_v25 = vld [vmem:[#allocation65_spill] sm:$0xff] (!%p4568_p1)  ;;  %v8545_v20 = vld [vmem:[#allocation66_spill] sm:$0xff] (!%p4568_p1) }
 0x8f8   : > { %4607 = vst [vmem:[%s5961_s18 + $0x1b0] sm:$0xff] (!%p4568_p1), %v8544_v25  ;;  %4608 = vst [vmem:[%s5961_s18 + $0x1b8] sm:$0xff] (!%p4568_p1), %v8545_v20  ;;  %v8546_v52 = vld [vmem:[#allocation71_spill] sm:$0xff] (!%p4568_p1)  ;;  %v8547_v37 = vld [vmem:[#allocation72_spill] sm:$0xff] (!%p4568_p1) }
 0x8f9   : > { %5572 = vrsqrt.f32 %v4004_v7  ;;  %v4005_v8 = vadd.f32 1e-12, %v3973_v31  ;;  %4609 = vst [vmem:[%s5961_s18 + $0x1c0] sm:$0xff] (!%p4568_p1), %v8546_v52  ;;  %4610 = vst [vmem:[%s5961_s18 + $0x1c8] sm:$0xff] (!%p4568_p1), %v8547_v37  ;;  %v8548_v7 = vld [vmem:[#allocation27_spill] sm:$0xff] (!%p4568_p1)  ;;  %v8549_v31 = vld [vmem:[#allocation29_spill] sm:$0xff] (!%p4568_p1) }
 0x8fa   : > { %4611 = vst [vmem:[%s5961_s18 + $0x1d0] sm:$0xff] (!%p4568_p1), %v8548_v7  ;;  %4612 = vst [vmem:[%s5961_s18 + $0x1d8] sm:$0xff] (!%p4568_p1), %v8549_v31 }
 0x8fb   : > { %v5569_v6 = vpop.eup %5568  ;;  %5574 = vrsqrt.f32 %v4005_v8  ;;  %v8550_v8 = vld [vmem:[#allocation28_spill] sm:$0xff] (!%p4568_p1) }
 0x8fc   : > { %v4034_v38 = vmul.f32 %v5569_v6, %v3986_v46  ;;  %4613 = vst [vmem:[%s5961_s18 + $0x1e0] sm:$0xff] (!%p4568_p1), %v8550_v8  ;;  %v8551_v46 = vld [vmem:[#allocation33_spill] sm:$0xff] (!%p4568_p1)  ;;  %v8552_v6 = vld [vmem:[#allocation38_spill] sm:$0xff] (!%p4568_p1) }
 0x8fd   : > { %v5571_v60 = vpop.eup %5570  ;;  %4614 = vst [vmem:[%s5961_s18 + $0x1e8] sm:$0xff] (!%p4568_p1), %v8551_v46  ;;  %4615 = vst [vmem:[%s5961_s18 + $0x1f0] sm:$0xff] (!%p4568_p1), %v8552_v6 }
 0x8fe   : > { %v4056_v51 = vmul.f32 %v7915_v19, %v4034_v38  ;;  %v4035_v9 = vmul.f32 %v5571_v60, %v3987_v57  ;;  %v8553_v57 = vld [vmem:[#allocation37_spill] sm:$0xff] (!%p4568_p1) }
 0x8ff   : > { %4616 = vst [vmem:[%s5961_s18 + $0x1f8] sm:$0xff] (!%p4568_p1), %v8553_v57 }
 0x900   : > { %v4078_v26 = vadd.f32 %v7923_v13, %v4056_v51  ;;  %v4057_v11 = vmul.f32 %v7915_v19, %v4035_v9 }
 0x902   : > { %4094 = vst [vmem:[%s5959_s25 + $0x60] sm:$0xff] %v4078_v26  ;;  %v4079_v23 = vadd.f32 %v7923_v13, %v4057_v11 }
 0x903   : > { %v5573_v28 = vpop.eup %5572 }
 0x904   : > { %4095 = vst [vmem:[%s5959_s25 + $0x68] sm:$0xff] %v4079_v23  ;;  %v4036_v54 = vmul.f32 %v5573_v28, %v3988_v21 }
 0x905   : > { %v5575_v17 = vpop.eup %5574 }
 0x906   : > { %v4058_v48 = vmul.f32 %v7915_v19, %v4036_v54  ;;  %v4037_v49 = vmul.f32 %v5575_v17, %v3989_v5  ;;  %4101 = sbr.rel (%p4568_p1) target bundleno = 2317 (0x90d), region = 88 }
 0x908   : > { %v4080_v44 = vadd.f32 %v7923_v13, %v4058_v48  ;;  %v4059_v43 = vmul.f32 %v7915_v19, %v4037_v49  ;;  %v8526_v19 = vld [vmem:[#allocation61_spill] sm:$0xff] (!%p4568_p1) }
 0x909   : > { %4589 = vst [vmem:[%s5961_s18 + $0x120] sm:$0xff] (!%p4568_p1), %v8526_v19 }
 0x90a   : > { %4096 = vst [vmem:[%s5959_s25 + $0x70] sm:$0xff] %v4080_v44  ;;  %v4081_v32 = vadd.f32 %v7923_v13, %v4059_v43  ;;  %v8527_v13 = vld [vmem:[#allocation58_spill] sm:$0xff] (!%p4568_p1) }
 0x90b   : > { %4590 = vst [vmem:[%s5961_s18 + $0x128] sm:$0xff] (!%p4568_p1), %v8527_v13 }
 0x90c   : > { %4097 = vst [vmem:[%s5959_s25 + $0x78] sm:$0xff] %v4081_v32 }
 0x90d PF: > { %s8554_s22 = sld [smem:[#allocation12_spill]]  ;;  %s8555_s19 = sld [smem:[#allocation21_spill]] }
 0x90e   : > { %s8557_s0 = sld [smem:[#allocation86_spill]]  ;;  %s4188_s29 = sshll.u32 %s5959_s25, 4  ;;  %s8123_s29 = int_to_ptr.vmem [resolvable:$true] %s4188_s29 }
 0x90f   : > { %s5592_s28 = scalar_lea.vmem %s8123_s29, 2048  ;;  %s5721_s1 = smov [#allocation2]  }
 0x910   : > { %p5593_p2 = scmp.ne.s32.totalorder %s8123_s29, %s5592_s28  ;;  %s5596_s4 = sshll.u32 %s5721_s1, 4  ;;  %s5597_s4 = int_to_ptr.vmem [resolvable:$false] %s5596_s4 }
 0x911   : > { %s5598_s9 = scalar_lea.vmem %s5597_s4, 4096  ;;  %p5599_p6 = scmp.lt.s32.totalorder %s8123_s29, %s5597_s4 }
 0x912   : > { %p5594_p4 = pnand %p5593_p2, %p5859_p3  ;;  %p5600_p7 = scmp.lt.s32.totalorder %s5598_s9, %s5592_s28 }
 0x913   : > { %s4629_s17 = sshll.u32 %s8554_s22, 11  ;;  %s4170_s30 = scalar_lea.sflag [#allocation3], %s8555_s19 }
 0x914   : > { %s8120_s3 = scalar_lea.hbm %s8557_s0, %s4629_s17  ;;  %p5595_p5 = pneg %p5594_p4 }
 0x915   : > { %p5601_p8 = por %p5600_p7, %p5599_p6 }
 0x917   : > { %p5602_p10 = pnand %p5601_p8, %p5595_p5 }
 0x919   : > { %5605 = shalt.err (!%p5602_p10)
}
 0x91a   : > { %s5606_s25 = scalar_lea.hbm %s8120_s3, 2048  ;;  %s5610_s16 = scalar_lea.hbm %s8557_s0, 4096 }
 0x91b   : > { %p5607_p11 = scmp.ne.s32.totalorder %s8120_s3, %s5606_s25  ;;  %p5611_p0 = scmp.lt.u32.totalorder %s8120_s3, %s8557_s0 }
 0x91c   : > { %p5612_p1 = scmp.lt.u32.totalorder %s5610_s16, %s5606_s25  ;;  %p5614_p4 = scmp.lt.u32.totalorder %s5606_s25, %s8120_s3 }
 0x91d   : > { %p5608_p12 = pnand %p5607_p11, %p5859_p3 }
 0x91e   : > { %p5613_p2 = por %p5612_p1, %p5611_p0 }
 0x91f   : > { %p5609_p13 = pneg %p5608_p12 }
 0x920   : > { %p5615_p5 = por %p5614_p4, %p5613_p2 }
 0x922   : > { %p5616_p6 = pnand %p5615_p5, %p5609_p13 }
 0x924   : > { %5619 = shalt.err (!%p5616_p6)
}
 0x925   : > { %s5722_s26 = smov 128   ;;  %s5723_s20 = smov 8  }
 0x926   : > { %5001 = dma.vmem_to_hbm [thread:$0]  (%p5859_p3), %s8123_s29, 2048, %s8120_s3, %s4170_s30, %s5722_s26, %s5722_s26, %s5723_s20  }
 0x927   : > { %s4630_s8 = sshll.u32 %s8554_s22, 13  ;;  %s4204_s17 = sshll.u32 %s5961_s18, 4  ;;  %s8159_s17 = int_to_ptr.vmem [resolvable:$true] %s4204_s17 }
 0x928   : > { %s8558_s28 = sld [smem:[#allocation87_spill]]  ;;  %s4175_s9 = scalar_lea.sflag [#allocation5], %s8555_s19 }
 0x929   : > { %s5620_s25 = scalar_lea.vmem %s8159_s17, 8192  ;;  %s5724_s2 = smov [#allocation4]  }
 0x92a   : > { %p5621_p7 = scmp.ne.s32.totalorder %s8159_s17, %s5620_s25  ;;  %s5624_s3 = sshll.u32 %s5724_s2, 4  ;;  %s5625_s3 = int_to_ptr.vmem [resolvable:$false] %s5624_s3 }
 0x92b   : > { %s5626_s18 = scalar_lea.vmem %s5625_s3, 16384  ;;  %p5627_p11 = scmp.lt.s32.totalorder %s8159_s17, %s5625_s3 }
 0x92c   : > { %p5622_p8 = pnand %p5621_p7, %p5859_p3  ;;  %p5628_p12 = scmp.lt.s32.totalorder %s5626_s18, %s5620_s25 }
 0x92e   : > { %s8559_s1 = smov %s8558_s28  ;;  %s8157_s4 = scalar_lea.hbm %s8558_s28, %s4630_s8 }
 0x92f   : > { %p5623_p10 = pneg %p5622_p8  ;;  %p5629_p13 = por %p5628_p12, %p5627_p11 }
 0x931   : > { %p5630_p0 = pnand %p5629_p13, %p5623_p10 }
 0x933   : > { %5633 = shalt.err (!%p5630_p0)
}
 0x934   : > { %s5634_s22 = scalar_lea.hbm %s8157_s4, 8192  ;;  %s5638_s14 = scalar_lea.hbm %s8559_s1, 16384 }
 0x935   : > { %p5635_p1 = scmp.ne.s32.totalorder %s8157_s4, %s5634_s22  ;;  %p5639_p5 = scmp.lt.u32.totalorder %s8157_s4, %s8559_s1 }
 0x936   : > { %p5640_p6 = scmp.lt.u32.totalorder %s5638_s14, %s5634_s22  ;;  %p5642_p8 = scmp.lt.u32.totalorder %s5634_s22, %s8157_s4 }
 0x937   : > { %p5636_p2 = pnand %p5635_p1, %p5859_p3 }
 0x938   : > { %p5641_p7 = por %p5640_p6, %p5639_p5 }
 0x939   : > { %p5637_p4 = pneg %p5636_p2 }
 0x93a   : > { %p5643_p10 = por %p5642_p8, %p5641_p7 }
 0x93c   : > { %p5644_p11 = pnand %p5643_p10, %p5637_p4 }
 0x93e   : > { %5647 = shalt.err (!%p5644_p11)
}
 0x93f   : > { %5002 = dma.vmem_to_hbm [thread:$0]  (%p5859_p3), %s8159_s17, 8192, %s8157_s4, %s4175_s9, %s5722_s26, %s5722_s26, %s5723_s20  }
 0x940 PF: > { %s8560_s23 = sld [smem:[#allocation15_spill]]  ;;  %s8561_s8 = sld [smem:[#allocation8_spill]] }
 0x946   : > { %p5012_p12 = scmp.ge.s32.totalorder %s8560_s23, 2  ;;  %s4219_s24 = sand.u32 1, %s8561_s8  }
 0x947   : > { %s4220_s28 = scalar_lea.sflag [#allocation3], %s4219_s24 }
 0x948   : > { %p5006_p13 = pnand %p5012_p12, %p5869_p9 }
 0x94a   : > { %5681 = dma.done.wait (!%p5006_p13), %s4220_s28, 2048  }
 0x94b   : > { %5683 = vsyncadd (!%p5006_p13), %s4220_s28, 4294965248  ;;  %s4229_s15 = scalar_lea.sflag [#allocation5], %s4219_s24 }
 0x94c   : > { %5685 = dma.done.wait (!%p5006_p13), %s4229_s15, 8192  }
 0x94d   : > { %5687 = vsyncadd (!%p5006_p13), %s4229_s15, 4294959104  ;;  %s33_s28 = sadd.s32 1, %s8560_s23   ;;  %s8563_s21 = sld [smem:[#allocation9_spill]] }
 0x94e   : > { %p30_p0 = scmp.ge.s32.totalorder %s33_s28, 6   ;;  %s8564_s22 = sld [smem:[#allocation10_spill]] }
 0x94f   : > { %s8565_s23 = sld [smem:[#allocation20_spill]]  ;;  %s8566_s24 = sld [smem:[#allocation13_spill]] }
 0x950   : > { %s8567_s25 = sld [smem:[#allocation14_spill]]  ;;  %s8568_s26 = sld [smem:[#allocation16_spill]] }
 0x951   : > { %s8569_s27 = sld [smem:[#allocation18_spill]]  ;;  %32 = sbr.rel (!%p30_p0) target bundleno = 19 (0x13), region = 182 }
 0x958   :  { %4234 = vsyncpa [#allocation3], 1 }
 0x959   :  { %4236 = vsyncpa [#allocation3 + $0x1], 1 }
 0x95a   :  { %4237 = vsyncpa [#allocation5], 1 }
 0x95b   :  { %4239 = vsyncpa [#allocation5 + $0x1], 1 }

</bundles_post_ra>
